<compile_context>
chip_gen: v7x
topology: tpu7x:2x2x1
jax: 0.10.0
libtpu: 0.0.40
codegen_flags: <defaults>
</compile_context>

<pallas_src>
import functools
import math

import jax
import jax.numpy as jnp
from jax.experimental import pallas as pl
from jax.experimental.pallas import tpu as pltpu

# Set to jnp.bfloat16 on v5e/v6e/v7x for higher MXU throughput at DETR scale
# (fp32 accumulation is kept either way). fp32 default preserves exact
# numerics vs the PyTorch reference.
MXU_DTYPE = jnp.float32
LN_EPS = 1e-5

_VMEM = pl.BlockSpec(memory_space=pltpu.MemorySpace.VMEM)


# ----------------------------------------------------------------------------
# In-kernel helpers
# ----------------------------------------------------------------------------

def _ln(x, g, b, eps):
    mean = jnp.mean(x, axis=-1, keepdims=True)
    var = jnp.mean((x - mean) ** 2, axis=-1, keepdims=True)
    return (x - mean) * jax.lax.rsqrt(var + eps) * g + b


def _mm(a, b):
    return jnp.dot(a.astype(MXU_DTYPE), b.astype(MXU_DTYPE),
                   preferred_element_type=jnp.float32)


def _mm_nt(a, b):
    # a @ b.T  (contract last dim of both)
    return jax.lax.dot_general(a.astype(MXU_DTYPE), b.astype(MXU_DTYPE),
                               (((1,), (1,)), ((), ())),
                               preferred_element_type=jnp.float32)


# ----------------------------------------------------------------------------
# Fused attention-block kernel:
#   q_in = qsrc + qpos ; k_in = ksrc + kpos ; v_in = ksrc
#   MHA(q_in, k_in, v_in) -> out-proj -> (+ residual qsrc) -> LN1 (-> LN2(2*x))
# Gridded over batch; heads unrolled inside; output written lane-dense (L, E).
# ----------------------------------------------------------------------------

def _attn_block_kernel(qsrc_ref, qpos_ref, ksrc_ref, kpos_ref, bias_ref,
                       w_in_ref, b_in_ref, wo_ref, bo_ref,
                       g1_ref, be1_ref, g2_ref, be2_ref,
                       o_ref, *, nhead, scale, residual, double_ln, eps):
    E = qsrc_ref.shape[-1]
    Dh = E // nhead

    x = qsrc_ref[0]                  # (L, E) residual base
    q_in = x + qpos_ref[0]           # (L, E)
    k_src = ksrc_ref[0]              # (S, E)  (also the value input)
    k_in = k_src + kpos_ref[0]       # (S, E)
    bias = bias_ref[0]               # (1, S) additive key-padding bias

    w_in = w_in_ref[...]             # (E, 3E) = [Wq^T | Wk^T | Wv^T]
    b_in = b_in_ref[...]             # (1, 3E)
    q = _mm(q_in, w_in[:, :E]) + b_in[:, :E]
    k = _mm(k_in, w_in[:, E:2 * E]) + b_in[:, E:2 * E]
    v = _mm(k_src, w_in[:, 2 * E:]) + b_in[:, 2 * E:]
    q = q * scale                    # fold softmax scale into q

    heads = []
    for h in range(nhead):           # static unroll, all in VMEM
        sl = slice(h * Dh, (h + 1) * Dh)
        s = _mm_nt(q[:, sl], k[:, sl]) + bias                 # (L, S)
        m = jnp.max(s, axis=-1, keepdims=True)
        p = jnp.exp(s - m)
        p = p * pl.reciprocal(jnp.sum(p, axis=-1, keepdims=True), approx=True)
        heads.append(_mm(p, v[:, sl]))                        # (L, Dh)
    attn = jnp.concatenate(heads, axis=-1)                    # (L, E) lane-dense

    y = _mm(attn, wo_ref[...]) + bo_ref[...]                  # output projection
    if residual:
        y = x + y
    y = _ln(y, g1_ref[...], be1_ref[...], eps)
    if double_ln:                    # decoder bug: norm3(2 * norm2(...))
        y = _ln(2.0 * y, g2_ref[...], be2_ref[...], eps)
    o_ref[0] = y


def attention_block(qsrc, qpos, ksrc, kpos, bias, p_attn, g1, be1, g2, be2,
                    *, nhead, residual, double_ln):
    N, L, E = qsrc.shape
    S = ksrc.shape[1]
    scale = 1.0 / math.sqrt(E // nhead)
    kernel = functools.partial(_attn_block_kernel, nhead=nhead, scale=scale,
                               residual=residual, double_ln=double_ln,
                               eps=LN_EPS)

    def full(shape):
        return pl.BlockSpec(shape, lambda *_: (0,) * len(shape))

    return pl.pallas_call(
        kernel,
        out_shape=jax.ShapeDtypeStruct((N, L, E), jnp.float32),
        grid=(N,),
        in_specs=[
            pl.BlockSpec((1, L, E), lambda b: (b, 0, 0)),   # qsrc
            pl.BlockSpec((1, L, E), lambda b: (b, 0, 0)),   # qpos
            pl.BlockSpec((1, S, E), lambda b: (b, 0, 0)),   # ksrc (= value src)
            pl.BlockSpec((1, S, E), lambda b: (b, 0, 0)),   # kpos
            pl.BlockSpec((1, 1, S), lambda b: (b, 0, 0)),   # additive bias
            full((E, 3 * E)),                               # fused in-proj W^T
            full((1, 3 * E)),                               # fused in-proj bias
            full((E, E)),                                   # out-proj W^T
            full((1, E)),                                   # out-proj bias
            full((1, E)), full((1, E)),                     # LN1 gamma/beta
            full((1, E)), full((1, E)),                     # LN2 gamma/beta
        ],
        out_specs=pl.BlockSpec((1, L, E), lambda b: (b, 0, 0)),
        compiler_params=pltpu.CompilerParams(
            dimension_semantics=("parallel",)),
    )(qsrc, qpos, ksrc, kpos, bias,
      p_attn["w_in_t"], p_attn["b_in"].reshape(1, 3 * E),
      p_attn["wo_t"], p_attn["bo"].reshape(1, E),
      g1.reshape(1, E), be1.reshape(1, E),
      g2.reshape(1, E), be2.reshape(1, E))


# ----------------------------------------------------------------------------
# Fused FFN block kernel: relu(x@W1+b1)@W2+b2, residual add, LayerNorm.
# ----------------------------------------------------------------------------

def _ffn_block_kernel(x_ref, w1_ref, b1_ref, w2_ref, b2_ref, g_ref, be_ref,
                      o_ref, *, eps):
    x = x_ref[...]
    h = jnp.maximum(_mm(x, w1_ref[...]) + b1_ref[...], 0.0)
    y = _mm(h, w2_ref[...]) + b2_ref[...]
    o_ref[...] = _ln(x + y, g_ref[...], be_ref[...], eps)


def ffn_block(x2d, p, g, be):
    M, E = x2d.shape
    F = p["lin1_wt"].shape[1]
    kernel = functools.partial(_ffn_block_kernel, eps=LN_EPS)
    return pl.pallas_call(
        kernel,
        out_shape=jax.ShapeDtypeStruct((M, E), jnp.float32),
        in_specs=[_VMEM] * 7,
        out_specs=_VMEM,
    )(x2d, p["lin1_wt"], p["lin1_b"].reshape(1, F),
      p["lin2_wt"], p["lin2_b"].reshape(1, E),
      g.reshape(1, E), be.reshape(1, E))


# ----------------------------------------------------------------------------
# Standalone LayerNorm (used once, batched over all decoder intermediates)
# ----------------------------------------------------------------------------

def _layernorm_kernel(x_ref, g_ref, b_ref, o_ref, *, eps):
    o_ref[...] = _ln(x_ref[...], g_ref[...], b_ref[...], eps)


def layernorm2d(x, gamma, beta, eps=LN_EPS):
    M, E = x.shape
    kernel = functools.partial(_layernorm_kernel, eps=eps)
    return pl.pallas_call(
        kernel,
        out_shape=jax.ShapeDtypeStruct((M, E), jnp.float32),
        in_specs=[_VMEM, _VMEM, _VMEM],
        out_specs=_VMEM,
    )(x, gamma.reshape(1, E), beta.reshape(1, E))


# ----------------------------------------------------------------------------
# Encoder / decoder layers (forward_post, eval mode), batch-first (N, L, E)
# ----------------------------------------------------------------------------

def encoder_layer_fwd(p, src, pos, key_bias, nhead):
    N, S, E = src.shape
    # self-attn + out-proj + norm1 in one kernel.
    # torch bug reproduced: residual `src + dropout1(src2)` is overwritten by
    # `src = self.norm1(src2)`  ->  residual=False.
    src = attention_block(src, pos, src, pos, key_bias, p["self_attn"],
                          p["norm1_g"], p["norm1_b"], p["norm1_g"], p["norm1_b"],
                          nhead=nhead, residual=False, double_ln=False)
    # FFN + residual + norm2 in one kernel.
    src = ffn_block(src.reshape(N * S, E), p,
                    p["norm2_g"], p["norm2_b"]).reshape(N, S, E)
    return src


def decoder_layer_fwd(p, tgt, memory, mem_bias, zero_bias, pos, query_pos, nhead):
    # self-attn + residual + norm1 in one kernel.
    tgt = attention_block(tgt, query_pos, tgt, query_pos, zero_bias,
                          p["self_attn"],
                          p["norm1_g"], p["norm1_b"], p["norm1_g"], p["norm1_b"],
                          nhead=nhead, residual=True, double_ln=False)
    # cross-attn + residual + norm2, then norm3(2*x), in one kernel.
    # torch bug reproduced: `tgt = tgt + self.dropout3(tgt)` discards the FFN
    # output, so linear1/linear2 are dead code and are elided (output identical).
    tgt = attention_block(tgt, query_pos, memory, pos, mem_bias,
                          p["cross_attn"],
                          p["norm2_g"], p["norm2_b"], p["norm3_g"], p["norm3_b"],
                          nhead=nhead, residual=True, double_ln=True)
    return tgt


# ----------------------------------------------------------------------------
# Full Transformer forward (jitted, batch-first internally)
# ----------------------------------------------------------------------------

@functools.partial(jax.jit, static_argnames=("nhead",))
def transformer_forward(params, src, mask, query_embed, pos_embed, nhead):
    bs, c, h, w = src.shape
    S = h * w
    E = c
    src_bf = src.reshape(bs, c, S).transpose(0, 2, 1)         # (N, S, E)
    pos_bf = pos_embed.reshape(bs, c, S).transpose(0, 2, 1)   # (N, S, E)
    Lq = query_embed.shape[0]
    query_pos = jnp.broadcast_to(query_embed[None], (bs, Lq, E))
    tgt = jnp.zeros((bs, Lq, E), jnp.float32)

    # Additive key-padding bias: built once, reused by every layer, broadcast
    # over heads inside the kernel (no nhead repeat, no per-layer rebuild).
    mask_flat = mask.reshape(bs, S)
    key_bias = jnp.where(mask_flat[:, None, :], -1e30, 0.0).astype(jnp.float32)
    zero_bias = jnp.zeros((bs, 1, Lq), jnp.float32)

    # encoder
    memory = src_bf
    for lp in params["enc"]:
        memory = encoder_layer_fwd(lp, memory, pos_bf, key_bias, nhead)

    # decoder (return_intermediate=True)
    output = tgt
    intermediate = []
    for lp in params["dec"]:
        output = decoder_layer_fwd(lp, output, memory, key_bias, zero_bias,
                                   pos_bf, query_pos, nhead)
        intermediate.append(output)
    # All intermediates go through the shared final LayerNorm; the reference's
    # `output = norm(output)` replacing the last entry is identical, so one
    # batched LN call covers everything.
    stacked = jnp.stack(intermediate)                          # (num_dec, N, Lq, E)
    nd = stacked.shape[0]
    hs = layernorm2d(stacked.reshape(nd * bs * Lq, E),
                     params["dec_norm_g"],
                     params["dec_norm_b"]).reshape(nd, bs, Lq, E)
    # hs is already the torch hs.transpose(1, 2) layout: (num_dec, bs, Lq, E).
    mem_out = memory.transpose(0, 2, 1).reshape(bs, c, h, w)
    return hs, mem_out


# ----------------------------------------------------------------------------
# Deterministic parameter initialization (xavier uniform for 2-D weights)
# ----------------------------------------------------------------------------

def xavier(key, shape):
    fan_out, fan_in = shape
    bound = math.sqrt(6.0 / (fan_in + fan_out))
    return jax.random.uniform(key, shape, jnp.float32, -bound, bound)


def init_mha(key, E):
    k1, k2 = jax.random.split(key)
    in_proj = xavier(k1, (3 * E, E))          # torch in_proj_weight [Wq; Wk; Wv]
    out_proj = xavier(k2, (E, E))
    return dict(w_in_t=in_proj.T,             # (E, 3E) = [Wq^T | Wk^T | Wv^T]
                b_in=jnp.zeros((3 * E,), jnp.float32),
                wo_t=out_proj.T, bo=jnp.zeros((E,), jnp.float32))


def init_enc_layer(key, E, F):
    ks = jax.random.split(key, 3)
    return dict(
        self_attn=init_mha(ks[0], E),
        lin1_wt=xavier(ks[1], (F, E)).T, lin1_b=jnp.zeros((F,), jnp.float32),
        lin2_wt=xavier(ks[2], (E, F)).T, lin2_b=jnp.zeros((E,), jnp.float32),
        norm1_g=jnp.ones((E,), jnp.float32), norm1_b=jnp.zeros((E,), jnp.float32),
        norm2_g=jnp.ones((E,), jnp.float32), norm2_b=jnp.zeros((E,), jnp.float32),
    )


def init_dec_layer(key, E, F):
    ks = jax.random.split(key, 4)
    return dict(
        self_attn=init_mha(ks[0], E),
        cross_attn=init_mha(ks[1], E),
        lin1_wt=xavier(ks[2], (F, E)).T, lin1_b=jnp.zeros((F,), jnp.float32),
        lin2_wt=xavier(ks[3], (E, F)).T, lin2_b=jnp.zeros((E,), jnp.float32),
        norm1_g=jnp.ones((E,), jnp.float32), norm1_b=jnp.zeros((E,), jnp.float32),
        norm2_g=jnp.ones((E,), jnp.float32), norm2_b=jnp.zeros((E,), jnp.float32),
        norm3_g=jnp.ones((E,), jnp.float32), norm3_b=jnp.zeros((E,), jnp.float32),
    )


def init_params(key, E, F, num_enc, num_dec):
    keys = jax.random.split(key, num_enc + num_dec)
    enc = [init_enc_layer(keys[i], E, F) for i in range(num_enc)]
    dec = [init_dec_layer(keys[num_enc + i], E, F) for i in range(num_dec)]
    return dict(enc=enc, dec=dec,
                dec_norm_g=jnp.ones((E,), jnp.float32),
                dec_norm_b=jnp.zeros((E,), jnp.float32))


# ----------------------------------------------------------------------------
# Main
# ----------------------------------------------------------------------------

if __name__ == "__main__":
    d_model = 32
    nhead = 4
    num_enc = 2
    num_dec = 2
    dim_ff = 64
    bs, h, w = 2, 4, 4
    num_queries = 8

    root = jax.random.PRNGKey(0)
    kp, ks, kq, kpos = jax.random.split(root, 4)

    params = init_params(kp, d_model, dim_ff, num_enc, num_dec)

    src = jax.random.normal(ks, (bs, d_model, h, w), jnp.float32)
    pos_embed = jax.random.normal(kpos, (bs, d_model, h, w), jnp.float32)
    query_embed = jax.random.normal(kq, (num_queries, d_model), jnp.float32)
    mask = jnp.zeros((bs, h, w), dtype=bool)   # no padded positions

    hs, mem = transformer_forward(params, src, mask, query_embed, pos_embed,
                                  nhead=nhead)
    hs = jax.block_until_ready(hs)
    mem = jax.block_until_ready(mem)

    assert hs.shape == (num_dec, bs, num_queries, d_model), hs.shape
    assert mem.shape == (bs, d_model, h, w), mem.shape
    assert jnp.all(jnp.isfinite(hs)) and jnp.all(jnp.isfinite(mem))
    print("KERNEL_OK")
</pallas_src>

<mosaic_0001>
module attributes {stable_mosaic.version = 11 : i64} {
  func.func @_attn_block_kernel(%arg0: i32, %arg1: memref<1x16x32xf32, #tpu.memory_space<vmem>>, %arg2: memref<1x16x32xf32, #tpu.memory_space<vmem>>, %arg3: memref<1x16x32xf32, #tpu.memory_space<vmem>>, %arg4: memref<1x16x32xf32, #tpu.memory_space<vmem>>, %arg5: memref<1x1x16xf32, #tpu.memory_space<vmem>>, %arg6: memref<32x96xf32, #tpu.memory_space<vmem>>, %arg7: memref<1x96xf32, #tpu.memory_space<vmem>>, %arg8: memref<32x32xf32, #tpu.memory_space<vmem>>, %arg9: memref<1x32xf32, #tpu.memory_space<vmem>>, %arg10: memref<1x32xf32, #tpu.memory_space<vmem>>, %arg11: memref<1x32xf32, #tpu.memory_space<vmem>>, %arg12: memref<1x32xf32, #tpu.memory_space<vmem>>, %arg13: memref<1x32xf32, #tpu.memory_space<vmem>>, %arg14: memref<1x16x32xf32, #tpu.memory_space<vmem>>) attributes {dimension_semantics = [#tpu.dimension_semantics<parallel>], iteration_bounds = array<i64: 2>, scalar_prefetch = 0 : i64, scratch_operands = 0 : i64, tpu.core_type = #tpu.core_type<tc>, window_params = [{transform_indices = @transform_0, window_bounds = array<i64: 1, 16, 32>}, {transform_indices = @transform_1, window_bounds = array<i64: 1, 16, 32>}, {transform_indices = @transform_2, window_bounds = array<i64: 1, 16, 32>}, {transform_indices = @transform_3, window_bounds = array<i64: 1, 16, 32>}, {transform_indices = @transform_4, window_bounds = array<i64: 1, 1, 16>}, {pipeline_mode = #tpu.pipeline_mode<synchronous>, transform_indices = @transform_5, window_bounds = array<i64: 32, 96>}, {pipeline_mode = #tpu.pipeline_mode<synchronous>, transform_indices = @transform_6, window_bounds = array<i64: 1, 96>}, {pipeline_mode = #tpu.pipeline_mode<synchronous>, transform_indices = @transform_7, window_bounds = array<i64: 32, 32>}, {pipeline_mode = #tpu.pipeline_mode<synchronous>, transform_indices = @transform_8, window_bounds = array<i64: 1, 32>}, {pipeline_mode = #tpu.pipeline_mode<synchronous>, transform_indices = @transform_9, window_bounds = array<i64: 1, 32>}, {pipeline_mode = #tpu.pipeline_mode<synchronous>, transform_indices = @transform_10, window_bounds = array<i64: 1, 32>}, {pipeline_mode = #tpu.pipeline_mode<synchronous>, transform_indices = @transform_11, window_bounds = array<i64: 1, 32>}, {pipeline_mode = #tpu.pipeline_mode<synchronous>, transform_indices = @transform_12, window_bounds = array<i64: 1, 32>}, {transform_indices = @transform_13, window_bounds = array<i64: 1, 16, 32>}]} {
    %c0 = arith.constant 0 : index
    %c0_0 = arith.constant 0 : index
    %c0_1 = arith.constant 0 : index
    %0 = vector.load %arg1[%c0, %c0_0, %c0_1] : memref<1x16x32xf32, #tpu.memory_space<vmem>>, vector<1x16x32xf32>
    %1 = vector.shape_cast %0 : vector<1x16x32xf32> to vector<16x32xf32>
    %c0_2 = arith.constant 0 : index
    %c0_3 = arith.constant 0 : index
    %c0_4 = arith.constant 0 : index
    %2 = vector.load %arg2[%c0_2, %c0_3, %c0_4] : memref<1x16x32xf32, #tpu.memory_space<vmem>>, vector<1x16x32xf32>
    %3 = vector.shape_cast %2 : vector<1x16x32xf32> to vector<16x32xf32>
    %4 = arith.addf %1, %3 : vector<16x32xf32>
    %c0_5 = arith.constant 0 : index
    %c0_6 = arith.constant 0 : index
    %c0_7 = arith.constant 0 : index
    %5 = vector.load %arg3[%c0_5, %c0_6, %c0_7] : memref<1x16x32xf32, #tpu.memory_space<vmem>>, vector<1x16x32xf32>
    %6 = vector.shape_cast %5 : vector<1x16x32xf32> to vector<16x32xf32>
    %c0_8 = arith.constant 0 : index
    %c0_9 = arith.constant 0 : index
    %c0_10 = arith.constant 0 : index
    %7 = vector.load %arg4[%c0_8, %c0_9, %c0_10] : memref<1x16x32xf32, #tpu.memory_space<vmem>>, vector<1x16x32xf32>
    %8 = vector.shape_cast %7 : vector<1x16x32xf32> to vector<16x32xf32>
    %9 = arith.addf %6, %8 : vector<16x32xf32>
    %c0_11 = arith.constant 0 : index
    %c0_12 = arith.constant 0 : index
    %c0_13 = arith.constant 0 : index
    %10 = vector.load %arg5[%c0_11, %c0_12, %c0_13] : memref<1x1x16xf32, #tpu.memory_space<vmem>>, vector<1x1x16xf32>
    %11 = vector.shape_cast %10 : vector<1x1x16xf32> to vector<1x16xf32>
    %c0_14 = arith.constant 0 : index
    %c0_15 = arith.constant 0 : index
    %12 = vector.load %arg6[%c0_14, %c0_15] : memref<32x96xf32, #tpu.memory_space<vmem>>, vector<32x96xf32>
    %c0_16 = arith.constant 0 : index
    %c0_17 = arith.constant 0 : index
    %13 = vector.load %arg7[%c0_16, %c0_17] : memref<1x96xf32, #tpu.memory_space<vmem>>, vector<1x96xf32>
    %14 = vector.extract_strided_slice %12 {offsets = [0, 0], sizes = [32, 32], strides = [1, 1]} : vector<32x96xf32> to vector<32x32xf32>
    %cst = arith.constant dense<0.000000e+00> : vector<16x32xf32>
    %15 = tpu.matmul %4, %14, %cst {dimension_numbers = #tpu.dot_dimension_numbers<[1], [0], [0], [1], [0, 0, 1, 1], [], []>} : vector<16x32xf32>, vector<32x32xf32>, vector<16x32xf32> -> vector<16x32xf32>
    %16 = vector.extract_strided_slice %13 {offsets = [0, 0], sizes = [1, 32], strides = [1, 1]} : vector<1x96xf32> to vector<1x32xf32>
    %17 = vector.broadcast %16 : vector<1x32xf32> to vector<16x32xf32>
    %18 = arith.addf %15, %17 : vector<16x32xf32>
    %19 = vector.extract_strided_slice %12 {offsets = [0, 32], sizes = [32, 32], strides = [1, 1]} : vector<32x96xf32> to vector<32x32xf32>
    %cst_18 = arith.constant dense<0.000000e+00> : vector<16x32xf32>
    %20 = tpu.matmul %9, %19, %cst_18 {dimension_numbers = #tpu.dot_dimension_numbers<[1], [0], [0], [1], [0, 0, 1, 1], [], []>} : vector<16x32xf32>, vector<32x32xf32>, vector<16x32xf32> -> vector<16x32xf32>
    %21 = vector.extract_strided_slice %13 {offsets = [0, 32], sizes = [1, 32], strides = [1, 1]} : vector<1x96xf32> to vector<1x32xf32>
    %22 = vector.broadcast %21 : vector<1x32xf32> to vector<16x32xf32>
    %23 = arith.addf %20, %22 : vector<16x32xf32>
    %24 = vector.extract_strided_slice %12 {offsets = [0, 64], sizes = [32, 32], strides = [1, 1]} : vector<32x96xf32> to vector<32x32xf32>
    %cst_19 = arith.constant dense<0.000000e+00> : vector<16x32xf32>
    %25 = tpu.matmul %6, %24, %cst_19 {dimension_numbers = #tpu.dot_dimension_numbers<[1], [0], [0], [1], [0, 0, 1, 1], [], []>} : vector<16x32xf32>, vector<32x32xf32>, vector<16x32xf32> -> vector<16x32xf32>
    %26 = vector.extract_strided_slice %13 {offsets = [0, 64], sizes = [1, 32], strides = [1, 1]} : vector<1x96xf32> to vector<1x32xf32>
    %27 = vector.broadcast %26 : vector<1x32xf32> to vector<16x32xf32>
    %28 = arith.addf %25, %27 : vector<16x32xf32>
    %cst_20 = arith.constant 0.353553385 : f32
    %29 = vector.broadcast %cst_20 : f32 to vector<16x32xf32>
    %30 = arith.mulf %18, %29 : vector<16x32xf32>
    %31 = vector.extract_strided_slice %30 {offsets = [0, 0], sizes = [16, 8], strides = [1, 1]} : vector<16x32xf32> to vector<16x8xf32>
    %32 = vector.extract_strided_slice %23 {offsets = [0, 0], sizes = [16, 8], strides = [1, 1]} : vector<16x32xf32> to vector<16x8xf32>
    %cst_21 = arith.constant dense<0.000000e+00> : vector<16x16xf32>
    %33 = tpu.matmul %31, %32, %cst_21 {dimension_numbers = #tpu.dot_dimension_numbers<[1], [1], [0], [0], [0, 0, 1, 0], [], []>} : vector<16x8xf32>, vector<16x8xf32>, vector<16x16xf32> -> vector<16x16xf32>
    %34 = vector.broadcast %11 : vector<1x16xf32> to vector<16x16xf32>
    %35 = arith.addf %33, %34 : vector<16x16xf32>
    %cst_22 = arith.constant dense<0xFF800000> : vector<16xf32>
    %36 = vector.multi_reduction <maximumf>, %35, %cst_22 [1] : vector<16x16xf32> to vector<16xf32>
    %37 = vector.shape_cast %36 : vector<16xf32> to vector<16x1xf32>
    %38 = vector.broadcast %37 : vector<16x1xf32> to vector<16x16xf32>
    %39 = arith.subf %35, %38 : vector<16x16xf32>
    %40 = math.exp %39 : vector<16x16xf32>
    %cst_23 = arith.constant dense<0.000000e+00> : vector<16xf32>
    %41 = vector.multi_reduction <add>, %40, %cst_23 [1] : vector<16x16xf32> to vector<16xf32>
    %42 = vector.shape_cast %41 : vector<16xf32> to vector<16x1xf32>
    %43 = tpu.reciprocal %42 {approx = true} : vector<16x1xf32> -> vector<16x1xf32>
    %44 = vector.broadcast %43 : vector<16x1xf32> to vector<16x16xf32>
    %45 = arith.mulf %40, %44 : vector<16x16xf32>
    %46 = vector.extract_strided_slice %28 {offsets = [0, 0], sizes = [16, 8], strides = [1, 1]} : vector<16x32xf32> to vector<16x8xf32>
    %cst_24 = arith.constant dense<0.000000e+00> : vector<16x8xf32>
    %47 = tpu.matmul %45, %46, %cst_24 {dimension_numbers = #tpu.dot_dimension_numbers<[1], [0], [0], [1], [0, 0, 1, 1], [], []>} : vector<16x16xf32>, vector<16x8xf32>, vector<16x8xf32> -> vector<16x8xf32>
    %48 = vector.extract_strided_slice %30 {offsets = [0, 8], sizes = [16, 8], strides = [1, 1]} : vector<16x32xf32> to vector<16x8xf32>
    %49 = vector.extract_strided_slice %23 {offsets = [0, 8], sizes = [16, 8], strides = [1, 1]} : vector<16x32xf32> to vector<16x8xf32>
    %cst_25 = arith.constant dense<0.000000e+00> : vector<16x16xf32>
    %50 = tpu.matmul %48, %49, %cst_25 {dimension_numbers = #tpu.dot_dimension_numbers<[1], [1], [0], [0], [0, 0, 1, 0], [], []>} : vector<16x8xf32>, vector<16x8xf32>, vector<16x16xf32> -> vector<16x16xf32>
    %51 = vector.broadcast %11 : vector<1x16xf32> to vector<16x16xf32>
    %52 = arith.addf %50, %51 : vector<16x16xf32>
    %cst_26 = arith.constant dense<0xFF800000> : vector<16xf32>
    %53 = vector.multi_reduction <maximumf>, %52, %cst_26 [1] : vector<16x16xf32> to vector<16xf32>
    %54 = vector.shape_cast %53 : vector<16xf32> to vector<16x1xf32>
    %55 = vector.broadcast %54 : vector<16x1xf32> to vector<16x16xf32>
    %56 = arith.subf %52, %55 : vector<16x16xf32>
    %57 = math.exp %56 : vector<16x16xf32>
    %cst_27 = arith.constant dense<0.000000e+00> : vector<16xf32>
    %58 = vector.multi_reduction <add>, %57, %cst_27 [1] : vector<16x16xf32> to vector<16xf32>
    %59 = vector.shape_cast %58 : vector<16xf32> to vector<16x1xf32>
    %60 = tpu.reciprocal %59 {approx = true} : vector<16x1xf32> -> vector<16x1xf32>
    %61 = vector.broadcast %60 : vector<16x1xf32> to vector<16x16xf32>
    %62 = arith.mulf %57, %61 : vector<16x16xf32>
    %63 = vector.extract_strided_slice %28 {offsets = [0, 8], sizes = [16, 8], strides = [1, 1]} : vector<16x32xf32> to vector<16x8xf32>
    %cst_28 = arith.constant dense<0.000000e+00> : vector<16x8xf32>
    %64 = tpu.matmul %62, %63, %cst_28 {dimension_numbers = #tpu.dot_dimension_numbers<[1], [0], [0], [1], [0, 0, 1, 1], [], []>} : vector<16x16xf32>, vector<16x8xf32>, vector<16x8xf32> -> vector<16x8xf32>
    %65 = vector.extract_strided_slice %30 {offsets = [0, 16], sizes = [16, 8], strides = [1, 1]} : vector<16x32xf32> to vector<16x8xf32>
    %66 = vector.extract_strided_slice %23 {offsets = [0, 16], sizes = [16, 8], strides = [1, 1]} : vector<16x32xf32> to vector<16x8xf32>
    %cst_29 = arith.constant dense<0.000000e+00> : vector<16x16xf32>
    %67 = tpu.matmul %65, %66, %cst_29 {dimension_numbers = #tpu.dot_dimension_numbers<[1], [1], [0], [0], [0, 0, 1, 0], [], []>} : vector<16x8xf32>, vector<16x8xf32>, vector<16x16xf32> -> vector<16x16xf32>
    %68 = vector.broadcast %11 : vector<1x16xf32> to vector<16x16xf32>
    %69 = arith.addf %67, %68 : vector<16x16xf32>
    %cst_30 = arith.constant dense<0xFF800000> : vector<16xf32>
    %70 = vector.multi_reduction <maximumf>, %69, %cst_30 [1] : vector<16x16xf32> to vector<16xf32>
    %71 = vector.shape_cast %70 : vector<16xf32> to vector<16x1xf32>
    %72 = vector.broadcast %71 : vector<16x1xf32> to vector<16x16xf32>
    %73 = arith.subf %69, %72 : vector<16x16xf32>
    %74 = math.exp %73 : vector<16x16xf32>
    %cst_31 = arith.constant dense<0.000000e+00> : vector<16xf32>
    %75 = vector.multi_reduction <add>, %74, %cst_31 [1] : vector<16x16xf32> to vector<16xf32>
    %76 = vector.shape_cast %75 : vector<16xf32> to vector<16x1xf32>
    %77 = tpu.reciprocal %76 {approx = true} : vector<16x1xf32> -> vector<16x1xf32>
    %78 = vector.broadcast %77 : vector<16x1xf32> to vector<16x16xf32>
    %79 = arith.mulf %74, %78 : vector<16x16xf32>
    %80 = vector.extract_strided_slice %28 {offsets = [0, 16], sizes = [16, 8], strides = [1, 1]} : vector<16x32xf32> to vector<16x8xf32>
    %cst_32 = arith.constant dense<0.000000e+00> : vector<16x8xf32>
    %81 = tpu.matmul %79, %80, %cst_32 {dimension_numbers = #tpu.dot_dimension_numbers<[1], [0], [0], [1], [0, 0, 1, 1], [], []>} : vector<16x16xf32>, vector<16x8xf32>, vector<16x8xf32> -> vector<16x8xf32>
    %82 = vector.extract_strided_slice %30 {offsets = [0, 24], sizes = [16, 8], strides = [1, 1]} : vector<16x32xf32> to vector<16x8xf32>
    %83 = vector.extract_strided_slice %23 {offsets = [0, 24], sizes = [16, 8], strides = [1, 1]} : vector<16x32xf32> to vector<16x8xf32>
    %cst_33 = arith.constant dense<0.000000e+00> : vector<16x16xf32>
    %84 = tpu.matmul %82, %83, %cst_33 {dimension_numbers = #tpu.dot_dimension_numbers<[1], [1], [0], [0], [0, 0, 1, 0], [], []>} : vector<16x8xf32>, vector<16x8xf32>, vector<16x16xf32> -> vector<16x16xf32>
    %85 = vector.broadcast %11 : vector<1x16xf32> to vector<16x16xf32>
    %86 = arith.addf %84, %85 : vector<16x16xf32>
    %cst_34 = arith.constant dense<0xFF800000> : vector<16xf32>
    %87 = vector.multi_reduction <maximumf>, %86, %cst_34 [1] : vector<16x16xf32> to vector<16xf32>
    %88 = vector.shape_cast %87 : vector<16xf32> to vector<16x1xf32>
    %89 = vector.broadcast %88 : vector<16x1xf32> to vector<16x16xf32>
    %90 = arith.subf %86, %89 : vector<16x16xf32>
    %91 = math.exp %90 : vector<16x16xf32>
    %cst_35 = arith.constant dense<0.000000e+00> : vector<16xf32>
    %92 = vector.multi_reduction <add>, %91, %cst_35 [1] : vector<16x16xf32> to vector<16xf32>
    %93 = vector.shape_cast %92 : vector<16xf32> to vector<16x1xf32>
    %94 = tpu.reciprocal %93 {approx = true} : vector<16x1xf32> -> vector<16x1xf32>
    %95 = vector.broadcast %94 : vector<16x1xf32> to vector<16x16xf32>
    %96 = arith.mulf %91, %95 : vector<16x16xf32>
    %97 = vector.extract_strided_slice %28 {offsets = [0, 24], sizes = [16, 8], strides = [1, 1]} : vector<16x32xf32> to vector<16x8xf32>
    %cst_36 = arith.constant dense<0.000000e+00> : vector<16x8xf32>
    %98 = tpu.matmul %96, %97, %cst_36 {dimension_numbers = #tpu.dot_dimension_numbers<[1], [0], [0], [1], [0, 0, 1, 1], [], []>} : vector<16x16xf32>, vector<16x8xf32>, vector<16x8xf32> -> vector<16x8xf32>
    %99 = tpu.concatenate %47, %64, %81, %98 in 1 : vector<16x8xf32>, vector<16x8xf32>, vector<16x8xf32>, vector<16x8xf32> -> vector<16x32xf32>
    %c0_37 = arith.constant 0 : index
    %c0_38 = arith.constant 0 : index
    %100 = vector.load %arg8[%c0_37, %c0_38] : memref<32x32xf32, #tpu.memory_space<vmem>>, vector<32x32xf32>
    %cst_39 = arith.constant dense<0.000000e+00> : vector<16x32xf32>
    %101 = tpu.matmul %99, %100, %cst_39 {dimension_numbers = #tpu.dot_dimension_numbers<[1], [0], [0], [1], [0, 0, 1, 1], [], []>} : vector<16x32xf32>, vector<32x32xf32>, vector<16x32xf32> -> vector<16x32xf32>
    %c0_40 = arith.constant 0 : index
    %c0_41 = arith.constant 0 : index
    %102 = vector.load %arg9[%c0_40, %c0_41] : memref<1x32xf32, #tpu.memory_space<vmem>>, vector<1x32xf32>
    %103 = vector.broadcast %102 : vector<1x32xf32> to vector<16x32xf32>
    %104 = arith.addf %101, %103 : vector<16x32xf32>
    %c0_42 = arith.constant 0 : index
    %c0_43 = arith.constant 0 : index
    %105 = vector.load %arg10[%c0_42, %c0_43] : memref<1x32xf32, #tpu.memory_space<vmem>>, vector<1x32xf32>
    %c0_44 = arith.constant 0 : index
    %c0_45 = arith.constant 0 : index
    %106 = vector.load %arg11[%c0_44, %c0_45] : memref<1x32xf32, #tpu.memory_space<vmem>>, vector<1x32xf32>
    %cst_46 = arith.constant dense<0.000000e+00> : vector<16xf32>
    %107 = vector.multi_reduction <add>, %104, %cst_46 [1] : vector<16x32xf32> to vector<16xf32>
    %108 = vector.shape_cast %107 : vector<16xf32> to vector<16x1xf32>
    %cst_47 = arith.constant 3.200000e+01 : f32
    %109 = vector.broadcast %cst_47 : f32 to vector<16x1xf32>
    %110 = arith.divf %108, %109 : vector<16x1xf32>
    %111 = vector.broadcast %110 : vector<16x1xf32> to vector<16x32xf32>
    %112 = arith.subf %104, %111 : vector<16x32xf32>
    %113 = arith.mulf %112, %112 : vector<16x32xf32>
    %cst_48 = arith.constant dense<0.000000e+00> : vector<16xf32>
    %114 = vector.multi_reduction <add>, %113, %cst_48 [1] : vector<16x32xf32> to vector<16xf32>
    %115 = vector.shape_cast %114 : vector<16xf32> to vector<16x1xf32>
    %cst_49 = arith.constant 3.200000e+01 : f32
    %116 = vector.broadcast %cst_49 : f32 to vector<16x1xf32>
    %117 = arith.divf %115, %116 : vector<16x1xf32>
    %118 = vector.broadcast %110 : vector<16x1xf32> to vector<16x32xf32>
    %119 = arith.subf %104, %118 : vector<16x32xf32>
    %cst_50 = arith.constant 9.99999974E-6 : f32
    %120 = vector.broadcast %cst_50 : f32 to vector<16x1xf32>
    %121 = arith.addf %117, %120 : vector<16x1xf32>
    %122 = math.rsqrt %121 : vector<16x1xf32>
    %123 = vector.broadcast %122 : vector<16x1xf32> to vector<16x32xf32>
    %124 = arith.mulf %119, %123 : vector<16x32xf32>
    %125 = vector.broadcast %105 : vector<1x32xf32> to vector<16x32xf32>
    %126 = arith.mulf %124, %125 : vector<16x32xf32>
    %127 = vector.broadcast %106 : vector<1x32xf32> to vector<16x32xf32>
    %128 = arith.addf %126, %127 : vector<16x32xf32>
    %c0_51 = arith.constant 0 : index
    %c0_52 = arith.constant 0 : index
    %c0_53 = arith.constant 0 : index
    %129 = vector.load %arg14[%c0_51, %c0_52, %c0_53] : memref<1x16x32xf32, #tpu.memory_space<vmem>>, vector<1x16x32xf32>
    %130 = vector.shape_cast %129 : vector<1x16x32xf32> to vector<16x32xf32>
    %131 = vector.shape_cast %128 : vector<16x32xf32> to vector<1x16x32xf32>
    tpu.vector_store %arg14[%c0_51, %c0_52, %c0_53], %131 {strides = array<i32>} : memref<1x16x32xf32, #tpu.memory_space<vmem>>, vector<1x16x32xf32>,
    return
  }
  func.func @transform_0(%arg0: i32) -> (i32, i32, i32) {
    %c0_i32 = arith.constant 0 : i32
    %c0_i32_0 = arith.constant 0 : i32
    %c0_i32_1 = arith.constant 0 : i32
    return %arg0, %c0_i32, %c0_i32_0 : i32, i32, i32
  }
  func.func @transform_1(%arg0: i32) -> (i32, i32, i32) {
    %c0_i32 = arith.constant 0 : i32
    %c0_i32_0 = arith.constant 0 : i32
    %c0_i32_1 = arith.constant 0 : i32
    return %arg0, %c0_i32, %c0_i32_0 : i32, i32, i32
  }
  func.func @transform_2(%arg0: i32) -> (i32, i32, i32) {
    %c0_i32 = arith.constant 0 : i32
    %c0_i32_0 = arith.constant 0 : i32
    %c0_i32_1 = arith.constant 0 : i32
    return %arg0, %c0_i32, %c0_i32_0 : i32, i32, i32
  }
  func.func @transform_3(%arg0: i32) -> (i32, i32, i32) {
    %c0_i32 = arith.constant 0 : i32
    %c0_i32_0 = arith.constant 0 : i32
    %c0_i32_1 = arith.constant 0 : i32
    return %arg0, %c0_i32, %c0_i32_0 : i32, i32, i32
  }
  func.func @transform_4(%arg0: i32) -> (i32, i32, i32) {
    %c0_i32 = arith.constant 0 : i32
    %c0_i32_0 = arith.constant 0 : i32
    %c0_i32_1 = arith.constant 0 : i32
    return %arg0, %c0_i32, %c0_i32_0 : i32, i32, i32
  }
  func.func @transform_5(%arg0: i32) -> (i32, i32) {
    %c0_i32 = arith.constant 0 : i32
    %c0_i32_0 = arith.constant 0 : i32
    %c0_i32_1 = arith.constant 0 : i32
    return %c0_i32, %c0_i32_0 : i32, i32
  }
  func.func @transform_6(%arg0: i32) -> (i32, i32) {
    %c0_i32 = arith.constant 0 : i32
    %c0_i32_0 = arith.constant 0 : i32
    %c0_i32_1 = arith.constant 0 : i32
    return %c0_i32, %c0_i32_0 : i32, i32
  }
  func.func @transform_7(%arg0: i32) -> (i32, i32) {
    %c0_i32 = arith.constant 0 : i32
    %c0_i32_0 = arith.constant 0 : i32
    %c0_i32_1 = arith.constant 0 : i32
    return %c0_i32, %c0_i32_0 : i32, i32
  }
  func.func @transform_8(%arg0: i32) -> (i32, i32) {
    %c0_i32 = arith.constant 0 : i32
    %c0_i32_0 = arith.constant 0 : i32
    %c0_i32_1 = arith.constant 0 : i32
    return %c0_i32, %c0_i32_0 : i32, i32
  }
  func.func @transform_9(%arg0: i32) -> (i32, i32) {
    %c0_i32 = arith.constant 0 : i32
    %c0_i32_0 = arith.constant 0 : i32
    %c0_i32_1 = arith.constant 0 : i32
    return %c0_i32, %c0_i32_0 : i32, i32
  }
  func.func @transform_10(%arg0: i32) -> (i32, i32) {
    %c0_i32 = arith.constant 0 : i32
    %c0_i32_0 = arith.constant 0 : i32
    %c0_i32_1 = arith.constant 0 : i32
    return %c0_i32, %c0_i32_0 : i32, i32
  }
  func.func @transform_11(%arg0: i32) -> (i32, i32) {
    %c0_i32 = arith.constant 0 : i32
    %c0_i32_0 = arith.constant 0 : i32
    %c0_i32_1 = arith.constant 0 : i32
    return %c0_i32, %c0_i32_0 : i32, i32
  }
  func.func @transform_12(%arg0: i32) -> (i32, i32) {
    %c0_i32 = arith.constant 0 : i32
    %c0_i32_0 = arith.constant 0 : i32
    %c0_i32_1 = arith.constant 0 : i32
    return %c0_i32, %c0_i32_0 : i32, i32
  }
  func.func @transform_13(%arg0: i32) -> (i32, i32, i32) {
    %c0_i32 = arith.constant 0 : i32
    %c0_i32_0 = arith.constant 0 : i32
    %c0_i32_1 = arith.constant 0 : i32
    return %arg0, %c0_i32, %c0_i32_0 : i32, i32, i32
  }
}

module attributes {stable_mosaic.version = 11 : i64} {
  func.func @_ffn_block_kernel(%arg0: memref<32x32xf32, #tpu.memory_space<vmem>>, %arg1: memref<32x64xf32, #tpu.memory_space<vmem>>, %arg2: memref<1x64xf32, #tpu.memory_space<vmem>>, %arg3: memref<64x32xf32, #tpu.memory_space<vmem>>, %arg4: memref<1x32xf32, #tpu.memory_space<vmem>>, %arg5: memref<1x32xf32, #tpu.memory_space<vmem>>, %arg6: memref<1x32xf32, #tpu.memory_space<vmem>>, %arg7: memref<32x32xf32, #tpu.memory_space<vmem>>) attributes {dimension_semantics = [], scalar_prefetch = 0 : i64, scratch_operands = 0 : i64, tpu.core_type = #tpu.core_type<tc>} {
    %c0 = arith.constant 0 : index
    %c0_0 = arith.constant 0 : index
    %0 = vector.load %arg0[%c0, %c0_0] : memref<32x32xf32, #tpu.memory_space<vmem>>, vector<32x32xf32>
    %c0_1 = arith.constant 0 : index
    %c0_2 = arith.constant 0 : index
    %1 = vector.load %arg1[%c0_1, %c0_2] : memref<32x64xf32, #tpu.memory_space<vmem>>, vector<32x64xf32>
    %cst = arith.constant dense<0.000000e+00> : vector<32x64xf32>
    %2 = tpu.matmul %0, %1, %cst {dimension_numbers = #tpu.dot_dimension_numbers<[1], [0], [0], [1], [0, 0, 1, 1], [], []>} : vector<32x32xf32>, vector<32x64xf32>, vector<32x64xf32> -> vector<32x64xf32>
    %c0_3 = arith.constant 0 : index
    %c0_4 = arith.constant 0 : index
    %3 = vector.load %arg2[%c0_3, %c0_4] : memref<1x64xf32, #tpu.memory_space<vmem>>, vector<1x64xf32>
    %4 = vector.broadcast %3 : vector<1x64xf32> to vector<32x64xf32>
    %5 = arith.addf %2, %4 : vector<32x64xf32>
    %cst_5 = arith.constant 0.000000e+00 : f32
    %6 = vector.broadcast %cst_5 : f32 to vector<32x64xf32>
    %7 = arith.maximumf %5, %6 : vector<32x64xf32>
    %c0_6 = arith.constant 0 : index
    %c0_7 = arith.constant 0 : index
    %8 = vector.load %arg3[%c0_6, %c0_7] : memref<64x32xf32, #tpu.memory_space<vmem>>, vector<64x32xf32>
    %cst_8 = arith.constant dense<0.000000e+00> : vector<32x32xf32>
    %9 = tpu.matmul %7, %8, %cst_8 {dimension_numbers = #tpu.dot_dimension_numbers<[1], [0], [0], [1], [0, 0, 1, 1], [], []>} : vector<32x64xf32>, vector<64x32xf32>, vector<32x32xf32> -> vector<32x32xf32>
    %c0_9 = arith.constant 0 : index
    %c0_10 = arith.constant 0 : index
    %10 = vector.load %arg4[%c0_9, %c0_10] : memref<1x32xf32, #tpu.memory_space<vmem>>, vector<1x32xf32>
    %11 = vector.broadcast %10 : vector<1x32xf32> to vector<32x32xf32>
    %12 = arith.addf %9, %11 : vector<32x32xf32>
    %13 = arith.addf %0, %12 : vector<32x32xf32>
    %c0_11 = arith.constant 0 : index
    %c0_12 = arith.constant 0 : index
    %14 = vector.load %arg5[%c0_11, %c0_12] : memref<1x32xf32, #tpu.memory_space<vmem>>, vector<1x32xf32>
    %c0_13 = arith.constant 0 : index
    %c0_14 = arith.constant 0 : index
    %15 = vector.load %arg6[%c0_13, %c0_14] : memref<1x32xf32, #tpu.memory_space<vmem>>, vector<1x32xf32>
    %cst_15 = arith.constant dense<0.000000e+00> : vector<32xf32>
    %16 = vector.multi_reduction <add>, %13, %cst_15 [1] : vector<32x32xf32> to vector<32xf32>
    %17 = vector.shape_cast %16 : vector<32xf32> to vector<32x1xf32>
    %cst_16 = arith.constant 3.200000e+01 : f32
    %18 = vector.broadcast %cst_16 : f32 to vector<32x1xf32>
    %19 = arith.divf %17, %18 : vector<32x1xf32>
    %20 = vector.broadcast %19 : vector<32x1xf32> to vector<32x32xf32>
    %21 = arith.subf %13, %20 : vector<32x32xf32>
    %22 = arith.mulf %21, %21 : vector<32x32xf32>
    %cst_17 = arith.constant dense<0.000000e+00> : vector<32xf32>
    %23 = vector.multi_reduction <add>, %22, %cst_17 [1] : vector<32x32xf32> to vector<32xf32>
    %24 = vector.shape_cast %23 : vector<32xf32> to vector<32x1xf32>
    %cst_18 = arith.constant 3.200000e+01 : f32
    %25 = vector.broadcast %cst_18 : f32 to vector<32x1xf32>
    %26 = arith.divf %24, %25 : vector<32x1xf32>
    %27 = vector.broadcast %19 : vector<32x1xf32> to vector<32x32xf32>
    %28 = arith.subf %13, %27 : vector<32x32xf32>
    %cst_19 = arith.constant 9.99999974E-6 : f32
    %29 = vector.broadcast %cst_19 : f32 to vector<32x1xf32>
    %30 = arith.addf %26, %29 : vector<32x1xf32>
    %31 = math.rsqrt %30 : vector<32x1xf32>
    %32 = vector.broadcast %31 : vector<32x1xf32> to vector<32x32xf32>
    %33 = arith.mulf %28, %32 : vector<32x32xf32>
    %34 = vector.broadcast %14 : vector<1x32xf32> to vector<32x32xf32>
    %35 = arith.mulf %33, %34 : vector<32x32xf32>
    %36 = vector.broadcast %15 : vector<1x32xf32> to vector<32x32xf32>
    %37 = arith.addf %35, %36 : vector<32x32xf32>
    %c0_20 = arith.constant 0 : index
    %c0_21 = arith.constant 0 : index
    %38 = vector.load %arg7[%c0_20, %c0_21] : memref<32x32xf32, #tpu.memory_space<vmem>>, vector<32x32xf32>
    tpu.vector_store %arg7[%c0_20, %c0_21], %37 {strides = array<i32>} : memref<32x32xf32, #tpu.memory_space<vmem>>, vector<32x32xf32>,
    return
  }
}

module attributes {stable_mosaic.version = 11 : i64} {
  func.func @_attn_block_kernel(%arg0: i32, %arg1: memref<1x8x32xf32, #tpu.memory_space<vmem>>, %arg2: memref<1x8x32xf32, #tpu.memory_space<vmem>>, %arg3: memref<1x8x32xf32, #tpu.memory_space<vmem>>, %arg4: memref<1x8x32xf32, #tpu.memory_space<vmem>>, %arg5: memref<1x1x8xf32, #tpu.memory_space<vmem>>, %arg6: memref<32x96xf32, #tpu.memory_space<vmem>>, %arg7: memref<1x96xf32, #tpu.memory_space<vmem>>, %arg8: memref<32x32xf32, #tpu.memory_space<vmem>>, %arg9: memref<1x32xf32, #tpu.memory_space<vmem>>, %arg10: memref<1x32xf32, #tpu.memory_space<vmem>>, %arg11: memref<1x32xf32, #tpu.memory_space<vmem>>, %arg12: memref<1x32xf32, #tpu.memory_space<vmem>>, %arg13: memref<1x32xf32, #tpu.memory_space<vmem>>, %arg14: memref<1x8x32xf32, #tpu.memory_space<vmem>>) attributes {dimension_semantics = [#tpu.dimension_semantics<parallel>], iteration_bounds = array<i64: 2>, scalar_prefetch = 0 : i64, scratch_operands = 0 : i64, tpu.core_type = #tpu.core_type<tc>, window_params = [{transform_indices = @transform_0, window_bounds = array<i64: 1, 8, 32>}, {transform_indices = @transform_1, window_bounds = array<i64: 1, 8, 32>}, {transform_indices = @transform_2, window_bounds = array<i64: 1, 8, 32>}, {transform_indices = @transform_3, window_bounds = array<i64: 1, 8, 32>}, {transform_indices = @transform_4, window_bounds = array<i64: 1, 1, 8>}, {pipeline_mode = #tpu.pipeline_mode<synchronous>, transform_indices = @transform_5, window_bounds = array<i64: 32, 96>}, {pipeline_mode = #tpu.pipeline_mode<synchronous>, transform_indices = @transform_6, window_bounds = array<i64: 1, 96>}, {pipeline_mode = #tpu.pipeline_mode<synchronous>, transform_indices = @transform_7, window_bounds = array<i64: 32, 32>}, {pipeline_mode = #tpu.pipeline_mode<synchronous>, transform_indices = @transform_8, window_bounds = array<i64: 1, 32>}, {pipeline_mode = #tpu.pipeline_mode<synchronous>, transform_indices = @transform_9, window_bounds = array<i64: 1, 32>}, {pipeline_mode = #tpu.pipeline_mode<synchronous>, transform_indices = @transform_10, window_bounds = array<i64: 1, 32>}, {pipeline_mode = #tpu.pipeline_mode<synchronous>, transform_indices = @transform_11, window_bounds = array<i64: 1, 32>}, {pipeline_mode = #tpu.pipeline_mode<synchronous>, transform_indices = @transform_12, window_bounds = array<i64: 1, 32>}, {transform_indices = @transform_13, window_bounds = array<i64: 1, 8, 32>}]} {
    %c0 = arith.constant 0 : index
    %c0_0 = arith.constant 0 : index
    %c0_1 = arith.constant 0 : index
    %0 = vector.load %arg1[%c0, %c0_0, %c0_1] : memref<1x8x32xf32, #tpu.memory_space<vmem>>, vector<1x8x32xf32>
    %1 = vector.shape_cast %0 : vector<1x8x32xf32> to vector<8x32xf32>
    %c0_2 = arith.constant 0 : index
    %c0_3 = arith.constant 0 : index
    %c0_4 = arith.constant 0 : index
    %2 = vector.load %arg2[%c0_2, %c0_3, %c0_4] : memref<1x8x32xf32, #tpu.memory_space<vmem>>, vector<1x8x32xf32>
    %3 = vector.shape_cast %2 : vector<1x8x32xf32> to vector<8x32xf32>
    %4 = arith.addf %1, %3 : vector<8x32xf32>
    %c0_5 = arith.constant 0 : index
    %c0_6 = arith.constant 0 : index
    %c0_7 = arith.constant 0 : index
    %5 = vector.load %arg3[%c0_5, %c0_6, %c0_7] : memref<1x8x32xf32, #tpu.memory_space<vmem>>, vector<1x8x32xf32>
    %6 = vector.shape_cast %5 : vector<1x8x32xf32> to vector<8x32xf32>
    %c0_8 = arith.constant 0 : index
    %c0_9 = arith.constant 0 : index
    %c0_10 = arith.constant 0 : index
    %7 = vector.load %arg4[%c0_8, %c0_9, %c0_10] : memref<1x8x32xf32, #tpu.memory_space<vmem>>, vector<1x8x32xf32>
    %8 = vector.shape_cast %7 : vector<1x8x32xf32> to vector<8x32xf32>
    %9 = arith.addf %6, %8 : vector<8x32xf32>
    %c0_11 = arith.constant 0 : index
    %c0_12 = arith.constant 0 : index
    %c0_13 = arith.constant 0 : index
    %10 = vector.load %arg5[%c0_11, %c0_12, %c0_13] : memref<1x1x8xf32, #tpu.memory_space<vmem>>, vector<1x1x8xf32>
    %11 = vector.shape_cast %10 : vector<1x1x8xf32> to vector<1x8xf32>
    %c0_14 = arith.constant 0 : index
    %c0_15 = arith.constant 0 : index
    %12 = vector.load %arg6[%c0_14, %c0_15] : memref<32x96xf32, #tpu.memory_space<vmem>>, vector<32x96xf32>
    %c0_16 = arith.constant 0 : index
    %c0_17 = arith.constant 0 : index
    %13 = vector.load %arg7[%c0_16, %c0_17] : memref<1x96xf32, #tpu.memory_space<vmem>>, vector<1x96xf32>
    %14 = vector.extract_strided_slice %12 {offsets = [0, 0], sizes = [32, 32], strides = [1, 1]} : vector<32x96xf32> to vector<32x32xf32>
    %cst = arith.constant dense<0.000000e+00> : vector<8x32xf32>
    %15 = tpu.matmul %4, %14, %cst {dimension_numbers = #tpu.dot_dimension_numbers<[1], [0], [0], [1], [0, 0, 1, 1], [], []>} : vector<8x32xf32>, vector<32x32xf32>, vector<8x32xf32> -> vector<8x32xf32>
    %16 = vector.extract_strided_slice %13 {offsets = [0, 0], sizes = [1, 32], strides = [1, 1]} : vector<1x96xf32> to vector<1x32xf32>
    %17 = vector.broadcast %16 : vector<1x32xf32> to vector<8x32xf32>
    %18 = arith.addf %15, %17 : vector<8x32xf32>
    %19 = vector.extract_strided_slice %12 {offsets = [0, 32], sizes = [32, 32], strides = [1, 1]} : vector<32x96xf32> to vector<32x32xf32>
    %cst_18 = arith.constant dense<0.000000e+00> : vector<8x32xf32>
    %20 = tpu.matmul %9, %19, %cst_18 {dimension_numbers = #tpu.dot_dimension_numbers<[1], [0], [0], [1], [0, 0, 1, 1], [], []>} : vector<8x32xf32>, vector<32x32xf32>, vector<8x32xf32> -> vector<8x32xf32>
    %21 = vector.extract_strided_slice %13 {offsets = [0, 32], sizes = [1, 32], strides = [1, 1]} : vector<1x96xf32> to vector<1x32xf32>
    %22 = vector.broadcast %21 : vector<1x32xf32> to vector<8x32xf32>
    %23 = arith.addf %20, %22 : vector<8x32xf32>
    %24 = vector.extract_strided_slice %12 {offsets = [0, 64], sizes = [32, 32], strides = [1, 1]} : vector<32x96xf32> to vector<32x32xf32>
    %cst_19 = arith.constant dense<0.000000e+00> : vector<8x32xf32>
    %25 = tpu.matmul %6, %24, %cst_19 {dimension_numbers = #tpu.dot_dimension_numbers<[1], [0], [0], [1], [0, 0, 1, 1], [], []>} : vector<8x32xf32>, vector<32x32xf32>, vector<8x32xf32> -> vector<8x32xf32>
    %26 = vector.extract_strided_slice %13 {offsets = [0, 64], sizes = [1, 32], strides = [1, 1]} : vector<1x96xf32> to vector<1x32xf32>
    %27 = vector.broadcast %26 : vector<1x32xf32> to vector<8x32xf32>
    %28 = arith.addf %25, %27 : vector<8x32xf32>
    %cst_20 = arith.constant 0.353553385 : f32
    %29 = vector.broadcast %cst_20 : f32 to vector<8x32xf32>
    %30 = arith.mulf %18, %29 : vector<8x32xf32>
    %31 = vector.extract_strided_slice %30 {offsets = [0, 0], sizes = [8, 8], strides = [1, 1]} : vector<8x32xf32> to vector<8x8xf32>
    %32 = vector.extract_strided_slice %23 {offsets = [0, 0], sizes = [8, 8], strides = [1, 1]} : vector<8x32xf32> to vector<8x8xf32>
    %cst_21 = arith.constant dense<0.000000e+00> : vector<8x8xf32>
    %33 = tpu.matmul %31, %32, %cst_21 {dimension_numbers = #tpu.dot_dimension_numbers<[1], [1], [0], [0], [0, 0, 1, 0], [], []>} : vector<8x8xf32>, vector<8x8xf32>, vector<8x8xf32> -> vector<8x8xf32>
    %34 = vector.broadcast %11 : vector<1x8xf32> to vector<8x8xf32>
    %35 = arith.addf %33, %34 : vector<8x8xf32>
    %cst_22 = arith.constant dense<0xFF800000> : vector<8xf32>
    %36 = vector.multi_reduction <maximumf>, %35, %cst_22 [1] : vector<8x8xf32> to vector<8xf32>
    %37 = vector.shape_cast %36 : vector<8xf32> to vector<8x1xf32>
    %38 = vector.broadcast %37 : vector<8x1xf32> to vector<8x8xf32>
    %39 = arith.subf %35, %38 : vector<8x8xf32>
    %40 = math.exp %39 : vector<8x8xf32>
    %cst_23 = arith.constant dense<0.000000e+00> : vector<8xf32>
    %41 = vector.multi_reduction <add>, %40, %cst_23 [1] : vector<8x8xf32> to vector<8xf32>
    %42 = vector.shape_cast %41 : vector<8xf32> to vector<8x1xf32>
    %43 = tpu.reciprocal %42 {approx = true} : vector<8x1xf32> -> vector<8x1xf32>
    %44 = vector.broadcast %43 : vector<8x1xf32> to vector<8x8xf32>
    %45 = arith.mulf %40, %44 : vector<8x8xf32>
    %46 = vector.extract_strided_slice %28 {offsets = [0, 0], sizes = [8, 8], strides = [1, 1]} : vector<8x32xf32> to vector<8x8xf32>
    %cst_24 = arith.constant dense<0.000000e+00> : vector<8x8xf32>
    %47 = tpu.matmul %45, %46, %cst_24 {dimension_numbers = #tpu.dot_dimension_numbers<[1], [0], [0], [1], [0, 0, 1, 1], [], []>} : vector<8x8xf32>, vector<8x8xf32>, vector<8x8xf32> -> vector<8x8xf32>
    %48 = vector.extract_strided_slice %30 {offsets = [0, 8], sizes = [8, 8], strides = [1, 1]} : vector<8x32xf32> to vector<8x8xf32>
    %49 = vector.extract_strided_slice %23 {offsets = [0, 8], sizes = [8, 8], strides = [1, 1]} : vector<8x32xf32> to vector<8x8xf32>
    %cst_25 = arith.constant dense<0.000000e+00> : vector<8x8xf32>
    %50 = tpu.matmul %48, %49, %cst_25 {dimension_numbers = #tpu.dot_dimension_numbers<[1], [1], [0], [0], [0, 0, 1, 0], [], []>} : vector<8x8xf32>, vector<8x8xf32>, vector<8x8xf32> -> vector<8x8xf32>
    %51 = vector.broadcast %11 : vector<1x8xf32> to vector<8x8xf32>
    %52 = arith.addf %50, %51 : vector<8x8xf32>
    %cst_26 = arith.constant dense<0xFF800000> : vector<8xf32>
    %53 = vector.multi_reduction <maximumf>, %52, %cst_26 [1] : vector<8x8xf32> to vector<8xf32>
    %54 = vector.shape_cast %53 : vector<8xf32> to vector<8x1xf32>
    %55 = vector.broadcast %54 : vector<8x1xf32> to vector<8x8xf32>
    %56 = arith.subf %52, %55 : vector<8x8xf32>
    %57 = math.exp %56 : vector<8x8xf32>
    %cst_27 = arith.constant dense<0.000000e+00> : vector<8xf32>
    %58 = vector.multi_reduction <add>, %57, %cst_27 [1] : vector<8x8xf32> to vector<8xf32>
    %59 = vector.shape_cast %58 : vector<8xf32> to vector<8x1xf32>
    %60 = tpu.reciprocal %59 {approx = true} : vector<8x1xf32> -> vector<8x1xf32>
    %61 = vector.broadcast %60 : vector<8x1xf32> to vector<8x8xf32>
    %62 = arith.mulf %57, %61 : vector<8x8xf32>
    %63 = vector.extract_strided_slice %28 {offsets = [0, 8], sizes = [8, 8], strides = [1, 1]} : vector<8x32xf32> to vector<8x8xf32>
    %cst_28 = arith.constant dense<0.000000e+00> : vector<8x8xf32>
    %64 = tpu.matmul %62, %63, %cst_28 {dimension_numbers = #tpu.dot_dimension_numbers<[1], [0], [0], [1], [0, 0, 1, 1], [], []>} : vector<8x8xf32>, vector<8x8xf32>, vector<8x8xf32> -> vector<8x8xf32>
    %65 = vector.extract_strided_slice %30 {offsets = [0, 16], sizes = [8, 8], strides = [1, 1]} : vector<8x32xf32> to vector<8x8xf32>
    %66 = vector.extract_strided_slice %23 {offsets = [0, 16], sizes = [8, 8], strides = [1, 1]} : vector<8x32xf32> to vector<8x8xf32>
    %cst_29 = arith.constant dense<0.000000e+00> : vector<8x8xf32>
    %67 = tpu.matmul %65, %66, %cst_29 {dimension_numbers = #tpu.dot_dimension_numbers<[1], [1], [0], [0], [0, 0, 1, 0], [], []>} : vector<8x8xf32>, vector<8x8xf32>, vector<8x8xf32> -> vector<8x8xf32>
    %68 = vector.broadcast %11 : vector<1x8xf32> to vector<8x8xf32>
    %69 = arith.addf %67, %68 : vector<8x8xf32>
    %cst_30 = arith.constant dense<0xFF800000> : vector<8xf32>
    %70 = vector.multi_reduction <maximumf>, %69, %cst_30 [1] : vector<8x8xf32> to vector<8xf32>
    %71 = vector.shape_cast %70 : vector<8xf32> to vector<8x1xf32>
    %72 = vector.broadcast %71 : vector<8x1xf32> to vector<8x8xf32>
    %73 = arith.subf %69, %72 : vector<8x8xf32>
    %74 = math.exp %73 : vector<8x8xf32>
    %cst_31 = arith.constant dense<0.000000e+00> : vector<8xf32>
    %75 = vector.multi_reduction <add>, %74, %cst_31 [1] : vector<8x8xf32> to vector<8xf32>
    %76 = vector.shape_cast %75 : vector<8xf32> to vector<8x1xf32>
    %77 = tpu.reciprocal %76 {approx = true} : vector<8x1xf32> -> vector<8x1xf32>
    %78 = vector.broadcast %77 : vector<8x1xf32> to vector<8x8xf32>
    %79 = arith.mulf %74, %78 : vector<8x8xf32>
    %80 = vector.extract_strided_slice %28 {offsets = [0, 16], sizes = [8, 8], strides = [1, 1]} : vector<8x32xf32> to vector<8x8xf32>
    %cst_32 = arith.constant dense<0.000000e+00> : vector<8x8xf32>
    %81 = tpu.matmul %79, %80, %cst_32 {dimension_numbers = #tpu.dot_dimension_numbers<[1], [0], [0], [1], [0, 0, 1, 1], [], []>} : vector<8x8xf32>, vector<8x8xf32>, vector<8x8xf32> -> vector<8x8xf32>
    %82 = vector.extract_strided_slice %30 {offsets = [0, 24], sizes = [8, 8], strides = [1, 1]} : vector<8x32xf32> to vector<8x8xf32>
    %83 = vector.extract_strided_slice %23 {offsets = [0, 24], sizes = [8, 8], strides = [1, 1]} : vector<8x32xf32> to vector<8x8xf32>
    %cst_33 = arith.constant dense<0.000000e+00> : vector<8x8xf32>
    %84 = tpu.matmul %82, %83, %cst_33 {dimension_numbers = #tpu.dot_dimension_numbers<[1], [1], [0], [0], [0, 0, 1, 0], [], []>} : vector<8x8xf32>, vector<8x8xf32>, vector<8x8xf32> -> vector<8x8xf32>
    %85 = vector.broadcast %11 : vector<1x8xf32> to vector<8x8xf32>
    %86 = arith.addf %84, %85 : vector<8x8xf32>
    %cst_34 = arith.constant dense<0xFF800000> : vector<8xf32>
    %87 = vector.multi_reduction <maximumf>, %86, %cst_34 [1] : vector<8x8xf32> to vector<8xf32>
    %88 = vector.shape_cast %87 : vector<8xf32> to vector<8x1xf32>
    %89 = vector.broadcast %88 : vector<8x1xf32> to vector<8x8xf32>
    %90 = arith.subf %86, %89 : vector<8x8xf32>
    %91 = math.exp %90 : vector<8x8xf32>
    %cst_35 = arith.constant dense<0.000000e+00> : vector<8xf32>
    %92 = vector.multi_reduction <add>, %91, %cst_35 [1] : vector<8x8xf32> to vector<8xf32>
    %93 = vector.shape_cast %92 : vector<8xf32> to vector<8x1xf32>
    %94 = tpu.reciprocal %93 {approx = true} : vector<8x1xf32> -> vector<8x1xf32>
    %95 = vector.broadcast %94 : vector<8x1xf32> to vector<8x8xf32>
    %96 = arith.mulf %91, %95 : vector<8x8xf32>
    %97 = vector.extract_strided_slice %28 {offsets = [0, 24], sizes = [8, 8], strides = [1, 1]} : vector<8x32xf32> to vector<8x8xf32>
    %cst_36 = arith.constant dense<0.000000e+00> : vector<8x8xf32>
    %98 = tpu.matmul %96, %97, %cst_36 {dimension_numbers = #tpu.dot_dimension_numbers<[1], [0], [0], [1], [0, 0, 1, 1], [], []>} : vector<8x8xf32>, vector<8x8xf32>, vector<8x8xf32> -> vector<8x8xf32>
    %99 = tpu.concatenate %47, %64, %81, %98 in 1 : vector<8x8xf32>, vector<8x8xf32>, vector<8x8xf32>, vector<8x8xf32> -> vector<8x32xf32>
    %c0_37 = arith.constant 0 : index
    %c0_38 = arith.constant 0 : index
    %100 = vector.load %arg8[%c0_37, %c0_38] : memref<32x32xf32, #tpu.memory_space<vmem>>, vector<32x32xf32>
    %cst_39 = arith.constant dense<0.000000e+00> : vector<8x32xf32>
    %101 = tpu.matmul %99, %100, %cst_39 {dimension_numbers = #tpu.dot_dimension_numbers<[1], [0], [0], [1], [0, 0, 1, 1], [], []>} : vector<8x32xf32>, vector<32x32xf32>, vector<8x32xf32> -> vector<8x32xf32>
    %c0_40 = arith.constant 0 : index
    %c0_41 = arith.constant 0 : index
    %102 = vector.load %arg9[%c0_40, %c0_41] : memref<1x32xf32, #tpu.memory_space<vmem>>, vector<1x32xf32>
    %103 = vector.broadcast %102 : vector<1x32xf32> to vector<8x32xf32>
    %104 = arith.addf %101, %103 : vector<8x32xf32>
    %105 = arith.addf %1, %104 : vector<8x32xf32>
    %c0_42 = arith.constant 0 : index
    %c0_43 = arith.constant 0 : index
    %106 = vector.load %arg10[%c0_42, %c0_43] : memref<1x32xf32, #tpu.memory_space<vmem>>, vector<1x32xf32>
    %c0_44 = arith.constant 0 : index
    %c0_45 = arith.constant 0 : index
    %107 = vector.load %arg11[%c0_44, %c0_45] : memref<1x32xf32, #tpu.memory_space<vmem>>, vector<1x32xf32>
    %cst_46 = arith.constant dense<0.000000e+00> : vector<8xf32>
    %108 = vector.multi_reduction <add>, %105, %cst_46 [1] : vector<8x32xf32> to vector<8xf32>
    %109 = vector.shape_cast %108 : vector<8xf32> to vector<8x1xf32>
    %cst_47 = arith.constant 3.200000e+01 : f32
    %110 = vector.broadcast %cst_47 : f32 to vector<8x1xf32>
    %111 = arith.divf %109, %110 : vector<8x1xf32>
    %112 = vector.broadcast %111 : vector<8x1xf32> to vector<8x32xf32>
    %113 = arith.subf %105, %112 : vector<8x32xf32>
    %114 = arith.mulf %113, %113 : vector<8x32xf32>
    %cst_48 = arith.constant dense<0.000000e+00> : vector<8xf32>
    %115 = vector.multi_reduction <add>, %114, %cst_48 [1] : vector<8x32xf32> to vector<8xf32>
    %116 = vector.shape_cast %115 : vector<8xf32> to vector<8x1xf32>
    %cst_49 = arith.constant 3.200000e+01 : f32
    %117 = vector.broadcast %cst_49 : f32 to vector<8x1xf32>
    %118 = arith.divf %116, %117 : vector<8x1xf32>
    %119 = vector.broadcast %111 : vector<8x1xf32> to vector<8x32xf32>
    %120 = arith.subf %105, %119 : vector<8x32xf32>
    %cst_50 = arith.constant 9.99999974E-6 : f32
    %121 = vector.broadcast %cst_50 : f32 to vector<8x1xf32>
    %122 = arith.addf %118, %121 : vector<8x1xf32>
    %123 = math.rsqrt %122 : vector<8x1xf32>
    %124 = vector.broadcast %123 : vector<8x1xf32> to vector<8x32xf32>
    %125 = arith.mulf %120, %124 : vector<8x32xf32>
    %126 = vector.broadcast %106 : vector<1x32xf32> to vector<8x32xf32>
    %127 = arith.mulf %125, %126 : vector<8x32xf32>
    %128 = vector.broadcast %107 : vector<1x32xf32> to vector<8x32xf32>
    %129 = arith.addf %127, %128 : vector<8x32xf32>
    %c0_51 = arith.constant 0 : index
    %c0_52 = arith.constant 0 : index
    %c0_53 = arith.constant 0 : index
    %130 = vector.load %arg14[%c0_51, %c0_52, %c0_53] : memref<1x8x32xf32, #tpu.memory_space<vmem>>, vector<1x8x32xf32>
    %131 = vector.shape_cast %130 : vector<1x8x32xf32> to vector<8x32xf32>
    %132 = vector.shape_cast %129 : vector<8x32xf32> to vector<1x8x32xf32>
    tpu.vector_store %arg14[%c0_51, %c0_52, %c0_53], %132 {strides = array<i32>} : memref<1x8x32xf32, #tpu.memory_space<vmem>>, vector<1x8x32xf32>,
    return
  }
  func.func @transform_0(%arg0: i32) -> (i32, i32, i32) {
    %c0_i32 = arith.constant 0 : i32
    %c0_i32_0 = arith.constant 0 : i32
    %c0_i32_1 = arith.constant 0 : i32
    return %arg0, %c0_i32, %c0_i32_0 : i32, i32, i32
  }
  func.func @transform_1(%arg0: i32) -> (i32, i32, i32) {
    %c0_i32 = arith.constant 0 : i32
    %c0_i32_0 = arith.constant 0 : i32
    %c0_i32_1 = arith.constant 0 : i32
    return %arg0, %c0_i32, %c0_i32_0 : i32, i32, i32
  }
  func.func @transform_2(%arg0: i32) -> (i32, i32, i32) {
    %c0_i32 = arith.constant 0 : i32
    %c0_i32_0 = arith.constant 0 : i32
    %c0_i32_1 = arith.constant 0 : i32
    return %arg0, %c0_i32, %c0_i32_0 : i32, i32, i32
  }
  func.func @transform_3(%arg0: i32) -> (i32, i32, i32) {
    %c0_i32 = arith.constant 0 : i32
    %c0_i32_0 = arith.constant 0 : i32
    %c0_i32_1 = arith.constant 0 : i32
    return %arg0, %c0_i32, %c0_i32_0 : i32, i32, i32
  }
  func.func @transform_4(%arg0: i32) -> (i32, i32, i32) {
    %c0_i32 = arith.constant 0 : i32
    %c0_i32_0 = arith.constant 0 : i32
    %c0_i32_1 = arith.constant 0 : i32
    return %arg0, %c0_i32, %c0_i32_0 : i32, i32, i32
  }
  func.func @transform_5(%arg0: i32) -> (i32, i32) {
    %c0_i32 = arith.constant 0 : i32
    %c0_i32_0 = arith.constant 0 : i32
    %c0_i32_1 = arith.constant 0 : i32
    return %c0_i32, %c0_i32_0 : i32, i32
  }
  func.func @transform_6(%arg0: i32) -> (i32, i32) {
    %c0_i32 = arith.constant 0 : i32
    %c0_i32_0 = arith.constant 0 : i32
    %c0_i32_1 = arith.constant 0 : i32
    return %c0_i32, %c0_i32_0 : i32, i32
  }
  func.func @transform_7(%arg0: i32) -> (i32, i32) {
    %c0_i32 = arith.constant 0 : i32
    %c0_i32_0 = arith.constant 0 : i32
    %c0_i32_1 = arith.constant 0 : i32
    return %c0_i32, %c0_i32_0 : i32, i32
  }
  func.func @transform_8(%arg0: i32) -> (i32, i32) {
    %c0_i32 = arith.constant 0 : i32
    %c0_i32_0 = arith.constant 0 : i32
    %c0_i32_1 = arith.constant 0 : i32
    return %c0_i32, %c0_i32_0 : i32, i32
  }
  func.func @transform_9(%arg0: i32) -> (i32, i32) {
    %c0_i32 = arith.constant 0 : i32
    %c0_i32_0 = arith.constant 0 : i32
    %c0_i32_1 = arith.constant 0 : i32
    return %c0_i32, %c0_i32_0 : i32, i32
  }
  func.func @transform_10(%arg0: i32) -> (i32, i32) {
    %c0_i32 = arith.constant 0 : i32
    %c0_i32_0 = arith.constant 0 : i32
    %c0_i32_1 = arith.constant 0 : i32
    return %c0_i32, %c0_i32_0 : i32, i32
  }
  func.func @transform_11(%arg0: i32) -> (i32, i32) {
    %c0_i32 = arith.constant 0 : i32
    %c0_i32_0 = arith.constant 0 : i32
    %c0_i32_1 = arith.constant 0 : i32
    return %c0_i32, %c0_i32_0 : i32, i32
  }
  func.func @transform_12(%arg0: i32) -> (i32, i32) {
    %c0_i32 = arith.constant 0 : i32
    %c0_i32_0 = arith.constant 0 : i32
    %c0_i32_1 = arith.constant 0 : i32
    return %c0_i32, %c0_i32_0 : i32, i32
  }
  func.func @transform_13(%arg0: i32) -> (i32, i32, i32) {
    %c0_i32 = arith.constant 0 : i32
    %c0_i32_0 = arith.constant 0 : i32
    %c0_i32_1 = arith.constant 0 : i32
    return %arg0, %c0_i32, %c0_i32_0 : i32, i32, i32
  }
}

module attributes {stable_mosaic.version = 11 : i64} {
  func.func @_attn_block_kernel(%arg0: i32, %arg1: memref<1x8x32xf32, #tpu.memory_space<vmem>>, %arg2: memref<1x8x32xf32, #tpu.memory_space<vmem>>, %arg3: memref<1x16x32xf32, #tpu.memory_space<vmem>>, %arg4: memref<1x16x32xf32, #tpu.memory_space<vmem>>, %arg5: memref<1x1x16xf32, #tpu.memory_space<vmem>>, %arg6: memref<32x96xf32, #tpu.memory_space<vmem>>, %arg7: memref<1x96xf32, #tpu.memory_space<vmem>>, %arg8: memref<32x32xf32, #tpu.memory_space<vmem>>, %arg9: memref<1x32xf32, #tpu.memory_space<vmem>>, %arg10: memref<1x32xf32, #tpu.memory_space<vmem>>, %arg11: memref<1x32xf32, #tpu.memory_space<vmem>>, %arg12: memref<1x32xf32, #tpu.memory_space<vmem>>, %arg13: memref<1x32xf32, #tpu.memory_space<vmem>>, %arg14: memref<1x8x32xf32, #tpu.memory_space<vmem>>) attributes {dimension_semantics = [#tpu.dimension_semantics<parallel>], iteration_bounds = array<i64: 2>, scalar_prefetch = 0 : i64, scratch_operands = 0 : i64, tpu.core_type = #tpu.core_type<tc>, window_params = [{transform_indices = @transform_0, window_bounds = array<i64: 1, 8, 32>}, {transform_indices = @transform_1, window_bounds = array<i64: 1, 8, 32>}, {transform_indices = @transform_2, window_bounds = array<i64: 1, 16, 32>}, {transform_indices = @transform_3, window_bounds = array<i64: 1, 16, 32>}, {transform_indices = @transform_4, window_bounds = array<i64: 1, 1, 16>}, {pipeline_mode = #tpu.pipeline_mode<synchronous>, transform_indices = @transform_5, window_bounds = array<i64: 32, 96>}, {pipeline_mode = #tpu.pipeline_mode<synchronous>, transform_indices = @transform_6, window_bounds = array<i64: 1, 96>}, {pipeline_mode = #tpu.pipeline_mode<synchronous>, transform_indices = @transform_7, window_bounds = array<i64: 32, 32>}, {pipeline_mode = #tpu.pipeline_mode<synchronous>, transform_indices = @transform_8, window_bounds = array<i64: 1, 32>}, {pipeline_mode = #tpu.pipeline_mode<synchronous>, transform_indices = @transform_9, window_bounds = array<i64: 1, 32>}, {pipeline_mode = #tpu.pipeline_mode<synchronous>, transform_indices = @transform_10, window_bounds = array<i64: 1, 32>}, {pipeline_mode = #tpu.pipeline_mode<synchronous>, transform_indices = @transform_11, window_bounds = array<i64: 1, 32>}, {pipeline_mode = #tpu.pipeline_mode<synchronous>, transform_indices = @transform_12, window_bounds = array<i64: 1, 32>}, {transform_indices = @transform_13, window_bounds = array<i64: 1, 8, 32>}]} {
    %c0 = arith.constant 0 : index
    %c0_0 = arith.constant 0 : index
    %c0_1 = arith.constant 0 : index
    %0 = vector.load %arg1[%c0, %c0_0, %c0_1] : memref<1x8x32xf32, #tpu.memory_space<vmem>>, vector<1x8x32xf32>
    %1 = vector.shape_cast %0 : vector<1x8x32xf32> to vector<8x32xf32>
    %c0_2 = arith.constant 0 : index
    %c0_3 = arith.constant 0 : index
    %c0_4 = arith.constant 0 : index
    %2 = vector.load %arg2[%c0_2, %c0_3, %c0_4] : memref<1x8x32xf32, #tpu.memory_space<vmem>>, vector<1x8x32xf32>
    %3 = vector.shape_cast %2 : vector<1x8x32xf32> to vector<8x32xf32>
    %4 = arith.addf %1, %3 : vector<8x32xf32>
    %c0_5 = arith.constant 0 : index
    %c0_6 = arith.constant 0 : index
    %c0_7 = arith.constant 0 : index
    %5 = vector.load %arg3[%c0_5, %c0_6, %c0_7] : memref<1x16x32xf32, #tpu.memory_space<vmem>>, vector<1x16x32xf32>
    %6 = vector.shape_cast %5 : vector<1x16x32xf32> to vector<16x32xf32>
    %c0_8 = arith.constant 0 : index
    %c0_9 = arith.constant 0 : index
    %c0_10 = arith.constant 0 : index
    %7 = vector.load %arg4[%c0_8, %c0_9, %c0_10] : memref<1x16x32xf32, #tpu.memory_space<vmem>>, vector<1x16x32xf32>
    %8 = vector.shape_cast %7 : vector<1x16x32xf32> to vector<16x32xf32>
    %9 = arith.addf %6, %8 : vector<16x32xf32>
    %c0_11 = arith.constant 0 : index
    %c0_12 = arith.constant 0 : index
    %c0_13 = arith.constant 0 : index
    %10 = vector.load %arg5[%c0_11, %c0_12, %c0_13] : memref<1x1x16xf32, #tpu.memory_space<vmem>>, vector<1x1x16xf32>
    %11 = vector.shape_cast %10 : vector<1x1x16xf32> to vector<1x16xf32>
    %c0_14 = arith.constant 0 : index
    %c0_15 = arith.constant 0 : index
    %12 = vector.load %arg6[%c0_14, %c0_15] : memref<32x96xf32, #tpu.memory_space<vmem>>, vector<32x96xf32>
    %c0_16 = arith.constant 0 : index
    %c0_17 = arith.constant 0 : index
    %13 = vector.load %arg7[%c0_16, %c0_17] : memref<1x96xf32, #tpu.memory_space<vmem>>, vector<1x96xf32>
    %14 = vector.extract_strided_slice %12 {offsets = [0, 0], sizes = [32, 32], strides = [1, 1]} : vector<32x96xf32> to vector<32x32xf32>
    %cst = arith.constant dense<0.000000e+00> : vector<8x32xf32>
    %15 = tpu.matmul %4, %14, %cst {dimension_numbers = #tpu.dot_dimension_numbers<[1], [0], [0], [1], [0, 0, 1, 1], [], []>} : vector<8x32xf32>, vector<32x32xf32>, vector<8x32xf32> -> vector<8x32xf32>
    %16 = vector.extract_strided_slice %13 {offsets = [0, 0], sizes = [1, 32], strides = [1, 1]} : vector<1x96xf32> to vector<1x32xf32>
    %17 = vector.broadcast %16 : vector<1x32xf32> to vector<8x32xf32>
    %18 = arith.addf %15, %17 : vector<8x32xf32>
    %19 = vector.extract_strided_slice %12 {offsets = [0, 32], sizes = [32, 32], strides = [1, 1]} : vector<32x96xf32> to vector<32x32xf32>
    %cst_18 = arith.constant dense<0.000000e+00> : vector<16x32xf32>
    %20 = tpu.matmul %9, %19, %cst_18 {dimension_numbers = #tpu.dot_dimension_numbers<[1], [0], [0], [1], [0, 0, 1, 1], [], []>} : vector<16x32xf32>, vector<32x32xf32>, vector<16x32xf32> -> vector<16x32xf32>
    %21 = vector.extract_strided_slice %13 {offsets = [0, 32], sizes = [1, 32], strides = [1, 1]} : vector<1x96xf32> to vector<1x32xf32>
    %22 = vector.broadcast %21 : vector<1x32xf32> to vector<16x32xf32>
    %23 = arith.addf %20, %22 : vector<16x32xf32>
    %24 = vector.extract_strided_slice %12 {offsets = [0, 64], sizes = [32, 32], strides = [1, 1]} : vector<32x96xf32> to vector<32x32xf32>
    %cst_19 = arith.constant dense<0.000000e+00> : vector<16x32xf32>
    %25 = tpu.matmul %6, %24, %cst_19 {dimension_numbers = #tpu.dot_dimension_numbers<[1], [0], [0], [1], [0, 0, 1, 1], [], []>} : vector<16x32xf32>, vector<32x32xf32>, vector<16x32xf32> -> vector<16x32xf32>
    %26 = vector.extract_strided_slice %13 {offsets = [0, 64], sizes = [1, 32], strides = [1, 1]} : vector<1x96xf32> to vector<1x32xf32>
    %27 = vector.broadcast %26 : vector<1x32xf32> to vector<16x32xf32>
    %28 = arith.addf %25, %27 : vector<16x32xf32>
    %cst_20 = arith.constant 0.353553385 : f32
    %29 = vector.broadcast %cst_20 : f32 to vector<8x32xf32>
    %30 = arith.mulf %18, %29 : vector<8x32xf32>
    %31 = vector.extract_strided_slice %30 {offsets = [0, 0], sizes = [8, 8], strides = [1, 1]} : vector<8x32xf32> to vector<8x8xf32>
    %32 = vector.extract_strided_slice %23 {offsets = [0, 0], sizes = [16, 8], strides = [1, 1]} : vector<16x32xf32> to vector<16x8xf32>
    %cst_21 = arith.constant dense<0.000000e+00> : vector<8x16xf32>
    %33 = tpu.matmul %31, %32, %cst_21 {dimension_numbers = #tpu.dot_dimension_numbers<[1], [1], [0], [0], [0, 0, 1, 0], [], []>} : vector<8x8xf32>, vector<16x8xf32>, vector<8x16xf32> -> vector<8x16xf32>
    %34 = vector.broadcast %11 : vector<1x16xf32> to vector<8x16xf32>
    %35 = arith.addf %33, %34 : vector<8x16xf32>
    %cst_22 = arith.constant dense<0xFF800000> : vector<8xf32>
    %36 = vector.multi_reduction <maximumf>, %35, %cst_22 [1] : vector<8x16xf32> to vector<8xf32>
    %37 = vector.shape_cast %36 : vector<8xf32> to vector<8x1xf32>
    %38 = vector.broadcast %37 : vector<8x1xf32> to vector<8x16xf32>
    %39 = arith.subf %35, %38 : vector<8x16xf32>
    %40 = math.exp %39 : vector<8x16xf32>
    %cst_23 = arith.constant dense<0.000000e+00> : vector<8xf32>
    %41 = vector.multi_reduction <add>, %40, %cst_23 [1] : vector<8x16xf32> to vector<8xf32>
    %42 = vector.shape_cast %41 : vector<8xf32> to vector<8x1xf32>
    %43 = tpu.reciprocal %42 {approx = true} : vector<8x1xf32> -> vector<8x1xf32>
    %44 = vector.broadcast %43 : vector<8x1xf32> to vector<8x16xf32>
    %45 = arith.mulf %40, %44 : vector<8x16xf32>
    %46 = vector.extract_strided_slice %28 {offsets = [0, 0], sizes = [16, 8], strides = [1, 1]} : vector<16x32xf32> to vector<16x8xf32>
    %cst_24 = arith.constant dense<0.000000e+00> : vector<8x8xf32>
    %47 = tpu.matmul %45, %46, %cst_24 {dimension_numbers = #tpu.dot_dimension_numbers<[1], [0], [0], [1], [0, 0, 1, 1], [], []>} : vector<8x16xf32>, vector<16x8xf32>, vector<8x8xf32> -> vector<8x8xf32>
    %48 = vector.extract_strided_slice %30 {offsets = [0, 8], sizes = [8, 8], strides = [1, 1]} : vector<8x32xf32> to vector<8x8xf32>
    %49 = vector.extract_strided_slice %23 {offsets = [0, 8], sizes = [16, 8], strides = [1, 1]} : vector<16x32xf32> to vector<16x8xf32>
    %cst_25 = arith.constant dense<0.000000e+00> : vector<8x16xf32>
    %50 = tpu.matmul %48, %49, %cst_25 {dimension_numbers = #tpu.dot_dimension_numbers<[1], [1], [0], [0], [0, 0, 1, 0], [], []>} : vector<8x8xf32>, vector<16x8xf32>, vector<8x16xf32> -> vector<8x16xf32>
    %51 = vector.broadcast %11 : vector<1x16xf32> to vector<8x16xf32>
    %52 = arith.addf %50, %51 : vector<8x16xf32>
    %cst_26 = arith.constant dense<0xFF800000> : vector<8xf32>
    %53 = vector.multi_reduction <maximumf>, %52, %cst_26 [1] : vector<8x16xf32> to vector<8xf32>
    %54 = vector.shape_cast %53 : vector<8xf32> to vector<8x1xf32>
    %55 = vector.broadcast %54 : vector<8x1xf32> to vector<8x16xf32>
    %56 = arith.subf %52, %55 : vector<8x16xf32>
    %57 = math.exp %56 : vector<8x16xf32>
    %cst_27 = arith.constant dense<0.000000e+00> : vector<8xf32>
    %58 = vector.multi_reduction <add>, %57, %cst_27 [1] : vector<8x16xf32> to vector<8xf32>
    %59 = vector.shape_cast %58 : vector<8xf32> to vector<8x1xf32>
    %60 = tpu.reciprocal %59 {approx = true} : vector<8x1xf32> -> vector<8x1xf32>
    %61 = vector.broadcast %60 : vector<8x1xf32> to vector<8x16xf32>
    %62 = arith.mulf %57, %61 : vector<8x16xf32>
    %63 = vector.extract_strided_slice %28 {offsets = [0, 8], sizes = [16, 8], strides = [1, 1]} : vector<16x32xf32> to vector<16x8xf32>
    %cst_28 = arith.constant dense<0.000000e+00> : vector<8x8xf32>
    %64 = tpu.matmul %62, %63, %cst_28 {dimension_numbers = #tpu.dot_dimension_numbers<[1], [0], [0], [1], [0, 0, 1, 1], [], []>} : vector<8x16xf32>, vector<16x8xf32>, vector<8x8xf32> -> vector<8x8xf32>
    %65 = vector.extract_strided_slice %30 {offsets = [0, 16], sizes = [8, 8], strides = [1, 1]} : vector<8x32xf32> to vector<8x8xf32>
    %66 = vector.extract_strided_slice %23 {offsets = [0, 16], sizes = [16, 8], strides = [1, 1]} : vector<16x32xf32> to vector<16x8xf32>
    %cst_29 = arith.constant dense<0.000000e+00> : vector<8x16xf32>
    %67 = tpu.matmul %65, %66, %cst_29 {dimension_numbers = #tpu.dot_dimension_numbers<[1], [1], [0], [0], [0, 0, 1, 0], [], []>} : vector<8x8xf32>, vector<16x8xf32>, vector<8x16xf32> -> vector<8x16xf32>
    %68 = vector.broadcast %11 : vector<1x16xf32> to vector<8x16xf32>
    %69 = arith.addf %67, %68 : vector<8x16xf32>
    %cst_30 = arith.constant dense<0xFF800000> : vector<8xf32>
    %70 = vector.multi_reduction <maximumf>, %69, %cst_30 [1] : vector<8x16xf32> to vector<8xf32>
    %71 = vector.shape_cast %70 : vector<8xf32> to vector<8x1xf32>
    %72 = vector.broadcast %71 : vector<8x1xf32> to vector<8x16xf32>
    %73 = arith.subf %69, %72 : vector<8x16xf32>
    %74 = math.exp %73 : vector<8x16xf32>
    %cst_31 = arith.constant dense<0.000000e+00> : vector<8xf32>
    %75 = vector.multi_reduction <add>, %74, %cst_31 [1] : vector<8x16xf32> to vector<8xf32>
    %76 = vector.shape_cast %75 : vector<8xf32> to vector<8x1xf32>
    %77 = tpu.reciprocal %76 {approx = true} : vector<8x1xf32> -> vector<8x1xf32>
    %78 = vector.broadcast %77 : vector<8x1xf32> to vector<8x16xf32>
    %79 = arith.mulf %74, %78 : vector<8x16xf32>
    %80 = vector.extract_strided_slice %28 {offsets = [0, 16], sizes = [16, 8], strides = [1, 1]} : vector<16x32xf32> to vector<16x8xf32>
    %cst_32 = arith.constant dense<0.000000e+00> : vector<8x8xf32>
    %81 = tpu.matmul %79, %80, %cst_32 {dimension_numbers = #tpu.dot_dimension_numbers<[1], [0], [0], [1], [0, 0, 1, 1], [], []>} : vector<8x16xf32>, vector<16x8xf32>, vector<8x8xf32> -> vector<8x8xf32>
    %82 = vector.extract_strided_slice %30 {offsets = [0, 24], sizes = [8, 8], strides = [1, 1]} : vector<8x32xf32> to vector<8x8xf32>
    %83 = vector.extract_strided_slice %23 {offsets = [0, 24], sizes = [16, 8], strides = [1, 1]} : vector<16x32xf32> to vector<16x8xf32>
    %cst_33 = arith.constant dense<0.000000e+00> : vector<8x16xf32>
    %84 = tpu.matmul %82, %83, %cst_33 {dimension_numbers = #tpu.dot_dimension_numbers<[1], [1], [0], [0], [0, 0, 1, 0], [], []>} : vector<8x8xf32>, vector<16x8xf32>, vector<8x16xf32> -> vector<8x16xf32>
    %85 = vector.broadcast %11 : vector<1x16xf32> to vector<8x16xf32>
    %86 = arith.addf %84, %85 : vector<8x16xf32>
    %cst_34 = arith.constant dense<0xFF800000> : vector<8xf32>
    %87 = vector.multi_reduction <maximumf>, %86, %cst_34 [1] : vector<8x16xf32> to vector<8xf32>
    %88 = vector.shape_cast %87 : vector<8xf32> to vector<8x1xf32>
    %89 = vector.broadcast %88 : vector<8x1xf32> to vector<8x16xf32>
    %90 = arith.subf %86, %89 : vector<8x16xf32>
    %91 = math.exp %90 : vector<8x16xf32>
    %cst_35 = arith.constant dense<0.000000e+00> : vector<8xf32>
    %92 = vector.multi_reduction <add>, %91, %cst_35 [1] : vector<8x16xf32> to vector<8xf32>
    %93 = vector.shape_cast %92 : vector<8xf32> to vector<8x1xf32>
    %94 = tpu.reciprocal %93 {approx = true} : vector<8x1xf32> -> vector<8x1xf32>
    %95 = vector.broadcast %94 : vector<8x1xf32> to vector<8x16xf32>
    %96 = arith.mulf %91, %95 : vector<8x16xf32>
    %97 = vector.extract_strided_slice %28 {offsets = [0, 24], sizes = [16, 8], strides = [1, 1]} : vector<16x32xf32> to vector<16x8xf32>
    %cst_36 = arith.constant dense<0.000000e+00> : vector<8x8xf32>
    %98 = tpu.matmul %96, %97, %cst_36 {dimension_numbers = #tpu.dot_dimension_numbers<[1], [0], [0], [1], [0, 0, 1, 1], [], []>} : vector<8x16xf32>, vector<16x8xf32>, vector<8x8xf32> -> vector<8x8xf32>
    %99 = tpu.concatenate %47, %64, %81, %98 in 1 : vector<8x8xf32>, vector<8x8xf32>, vector<8x8xf32>, vector<8x8xf32> -> vector<8x32xf32>
    %c0_37 = arith.constant 0 : index
    %c0_38 = arith.constant 0 : index
    %100 = vector.load %arg8[%c0_37, %c0_38] : memref<32x32xf32, #tpu.memory_space<vmem>>, vector<32x32xf32>
    %cst_39 = arith.constant dense<0.000000e+00> : vector<8x32xf32>
    %101 = tpu.matmul %99, %100, %cst_39 {dimension_numbers = #tpu.dot_dimension_numbers<[1], [0], [0], [1], [0, 0, 1, 1], [], []>} : vector<8x32xf32>, vector<32x32xf32>, vector<8x32xf32> -> vector<8x32xf32>
    %c0_40 = arith.constant 0 : index
    %c0_41 = arith.constant 0 : index
    %102 = vector.load %arg9[%c0_40, %c0_41] : memref<1x32xf32, #tpu.memory_space<vmem>>, vector<1x32xf32>
    %103 = vector.broadcast %102 : vector<1x32xf32> to vector<8x32xf32>
    %104 = arith.addf %101, %103 : vector<8x32xf32>
    %105 = arith.addf %1, %104 : vector<8x32xf32>
    %c0_42 = arith.constant 0 : index
    %c0_43 = arith.constant 0 : index
    %106 = vector.load %arg10[%c0_42, %c0_43] : memref<1x32xf32, #tpu.memory_space<vmem>>, vector<1x32xf32>
    %c0_44 = arith.constant 0 : index
    %c0_45 = arith.constant 0 : index
    %107 = vector.load %arg11[%c0_44, %c0_45] : memref<1x32xf32, #tpu.memory_space<vmem>>, vector<1x32xf32>
    %cst_46 = arith.constant dense<0.000000e+00> : vector<8xf32>
    %108 = vector.multi_reduction <add>, %105, %cst_46 [1] : vector<8x32xf32> to vector<8xf32>
    %109 = vector.shape_cast %108 : vector<8xf32> to vector<8x1xf32>
    %cst_47 = arith.constant 3.200000e+01 : f32
    %110 = vector.broadcast %cst_47 : f32 to vector<8x1xf32>
    %111 = arith.divf %109, %110 : vector<8x1xf32>
    %112 = vector.broadcast %111 : vector<8x1xf32> to vector<8x32xf32>
    %113 = arith.subf %105, %112 : vector<8x32xf32>
    %114 = arith.mulf %113, %113 : vector<8x32xf32>
    %cst_48 = arith.constant dense<0.000000e+00> : vector<8xf32>
    %115 = vector.multi_reduction <add>, %114, %cst_48 [1] : vector<8x32xf32> to vector<8xf32>
    %116 = vector.shape_cast %115 : vector<8xf32> to vector<8x1xf32>
    %cst_49 = arith.constant 3.200000e+01 : f32
    %117 = vector.broadcast %cst_49 : f32 to vector<8x1xf32>
    %118 = arith.divf %116, %117 : vector<8x1xf32>
    %119 = vector.broadcast %111 : vector<8x1xf32> to vector<8x32xf32>
    %120 = arith.subf %105, %119 : vector<8x32xf32>
    %cst_50 = arith.constant 9.99999974E-6 : f32
    %121 = vector.broadcast %cst_50 : f32 to vector<8x1xf32>
    %122 = arith.addf %118, %121 : vector<8x1xf32>
    %123 = math.rsqrt %122 : vector<8x1xf32>
    %124 = vector.broadcast %123 : vector<8x1xf32> to vector<8x32xf32>
    %125 = arith.mulf %120, %124 : vector<8x32xf32>
    %126 = vector.broadcast %106 : vector<1x32xf32> to vector<8x32xf32>
    %127 = arith.mulf %125, %126 : vector<8x32xf32>
    %128 = vector.broadcast %107 : vector<1x32xf32> to vector<8x32xf32>
    %129 = arith.addf %127, %128 : vector<8x32xf32>
    %cst_51 = arith.constant 2.000000e+00 : f32
    %130 = vector.broadcast %cst_51 : f32 to vector<8x32xf32>
    %131 = arith.mulf %130, %129 : vector<8x32xf32>
    %c0_52 = arith.constant 0 : index
    %c0_53 = arith.constant 0 : index
    %132 = vector.load %arg12[%c0_52, %c0_53] : memref<1x32xf32, #tpu.memory_space<vmem>>, vector<1x32xf32>
    %c0_54 = arith.constant 0 : index
    %c0_55 = arith.constant 0 : index
    %133 = vector.load %arg13[%c0_54, %c0_55] : memref<1x32xf32, #tpu.memory_space<vmem>>, vector<1x32xf32>
    %cst_56 = arith.constant dense<0.000000e+00> : vector<8xf32>
    %134 = vector.multi_reduction <add>, %131, %cst_56 [1] : vector<8x32xf32> to vector<8xf32>
    %135 = vector.shape_cast %134 : vector<8xf32> to vector<8x1xf32>
    %cst_57 = arith.constant 3.200000e+01 : f32
    %136 = vector.broadcast %cst_57 : f32 to vector<8x1xf32>
    %137 = arith.divf %135, %136 : vector<8x1xf32>
    %138 = vector.broadcast %137 : vector<8x1xf32> to vector<8x32xf32>
    %139 = arith.subf %131, %138 : vector<8x32xf32>
    %140 = arith.mulf %139, %139 : vector<8x32xf32>
    %cst_58 = arith.constant dense<0.000000e+00> : vector<8xf32>
    %141 = vector.multi_reduction <add>, %140, %cst_58 [1] : vector<8x32xf32> to vector<8xf32>
    %142 = vector.shape_cast %141 : vector<8xf32> to vector<8x1xf32>
    %cst_59 = arith.constant 3.200000e+01 : f32
    %143 = vector.broadcast %cst_59 : f32 to vector<8x1xf32>
    %144 = arith.divf %142, %143 : vector<8x1xf32>
    %145 = vector.broadcast %137 : vector<8x1xf32> to vector<8x32xf32>
    %146 = arith.subf %131, %145 : vector<8x32xf32>
    %cst_60 = arith.constant 9.99999974E-6 : f32
    %147 = vector.broadcast %cst_60 : f32 to vector<8x1xf32>
    %148 = arith.addf %144, %147 : vector<8x1xf32>
    %149 = math.rsqrt %148 : vector<8x1xf32>
    %150 = vector.broadcast %149 : vector<8x1xf32> to vector<8x32xf32>
    %151 = arith.mulf %146, %150 : vector<8x32xf32>
    %152 = vector.broadcast %132 : vector<1x32xf32> to vector<8x32xf32>
    %153 = arith.mulf %151, %152 : vector<8x32xf32>
    %154 = vector.broadcast %133 : vector<1x32xf32> to vector<8x32xf32>
    %155 = arith.addf %153, %154 : vector<8x32xf32>
    %c0_61 = arith.constant 0 : index
    %c0_62 = arith.constant 0 : index
    %c0_63 = arith.constant 0 : index
    %156 = vector.load %arg14[%c0_61, %c0_62, %c0_63] : memref<1x8x32xf32, #tpu.memory_space<vmem>>, vector<1x8x32xf32>
    %157 = vector.shape_cast %156 : vector<1x8x32xf32> to vector<8x32xf32>
    %158 = vector.shape_cast %155 : vector<8x32xf32> to vector<1x8x32xf32>
    tpu.vector_store %arg14[%c0_61, %c0_62, %c0_63], %158 {strides = array<i32>} : memref<1x8x32xf32, #tpu.memory_space<vmem>>, vector<1x8x32xf32>,
    return
  }
  func.func @transform_0(%arg0: i32) -> (i32, i32, i32) {
    %c0_i32 = arith.constant 0 : i32
    %c0_i32_0 = arith.constant 0 : i32
    %c0_i32_1 = arith.constant 0 : i32
    return %arg0, %c0_i32, %c0_i32_0 : i32, i32, i32
  }
  func.func @transform_1(%arg0: i32) -> (i32, i32, i32) {
    %c0_i32 = arith.constant 0 : i32
    %c0_i32_0 = arith.constant 0 : i32
    %c0_i32_1 = arith.constant 0 : i32
    return %arg0, %c0_i32, %c0_i32_0 : i32, i32, i32
  }
  func.func @transform_2(%arg0: i32) -> (i32, i32, i32) {
    %c0_i32 = arith.constant 0 : i32
    %c0_i32_0 = arith.constant 0 : i32
    %c0_i32_1 = arith.constant 0 : i32
    return %arg0, %c0_i32, %c0_i32_0 : i32, i32, i32
  }
  func.func @transform_3(%arg0: i32) -> (i32, i32, i32) {
    %c0_i32 = arith.constant 0 : i32
    %c0_i32_0 = arith.constant 0 : i32
    %c0_i32_1 = arith.constant 0 : i32
    return %arg0, %c0_i32, %c0_i32_0 : i32, i32, i32
  }
  func.func @transform_4(%arg0: i32) -> (i32, i32, i32) {
    %c0_i32 = arith.constant 0 : i32
    %c0_i32_0 = arith.constant 0 : i32
    %c0_i32_1 = arith.constant 0 : i32
    return %arg0, %c0_i32, %c0_i32_0 : i32, i32, i32
  }
  func.func @transform_5(%arg0: i32) -> (i32, i32) {
    %c0_i32 = arith.constant 0 : i32
    %c0_i32_0 = arith.constant 0 : i32
    %c0_i32_1 = arith.constant 0 : i32
    return %c0_i32, %c0_i32_0 : i32, i32
  }
  func.func @transform_6(%arg0: i32) -> (i32, i32) {
    %c0_i32 = arith.constant 0 : i32
    %c0_i32_0 = arith.constant 0 : i32
    %c0_i32_1 = arith.constant 0 : i32
    return %c0_i32, %c0_i32_0 : i32, i32
  }
  func.func @transform_7(%arg0: i32) -> (i32, i32) {
    %c0_i32 = arith.constant 0 : i32
    %c0_i32_0 = arith.constant 0 : i32
    %c0_i32_1 = arith.constant 0 : i32
    return %c0_i32, %c0_i32_0 : i32, i32
  }
  func.func @transform_8(%arg0: i32) -> (i32, i32) {
    %c0_i32 = arith.constant 0 : i32
    %c0_i32_0 = arith.constant 0 : i32
    %c0_i32_1 = arith.constant 0 : i32
    return %c0_i32, %c0_i32_0 : i32, i32
  }
  func.func @transform_9(%arg0: i32) -> (i32, i32) {
    %c0_i32 = arith.constant 0 : i32
    %c0_i32_0 = arith.constant 0 : i32
    %c0_i32_1 = arith.constant 0 : i32
    return %c0_i32, %c0_i32_0 : i32, i32
  }
  func.func @transform_10(%arg0: i32) -> (i32, i32) {
    %c0_i32 = arith.constant 0 : i32
    %c0_i32_0 = arith.constant 0 : i32
    %c0_i32_1 = arith.constant 0 : i32
    return %c0_i32, %c0_i32_0 : i32, i32
  }
  func.func @transform_11(%arg0: i32) -> (i32, i32) {
    %c0_i32 = arith.constant 0 : i32
    %c0_i32_0 = arith.constant 0 : i32
    %c0_i32_1 = arith.constant 0 : i32
    return %c0_i32, %c0_i32_0 : i32, i32
  }
  func.func @transform_12(%arg0: i32) -> (i32, i32) {
    %c0_i32 = arith.constant 0 : i32
    %c0_i32_0 = arith.constant 0 : i32
    %c0_i32_1 = arith.constant 0 : i32
    return %c0_i32, %c0_i32_0 : i32, i32
  }
  func.func @transform_13(%arg0: i32) -> (i32, i32, i32) {
    %c0_i32 = arith.constant 0 : i32
    %c0_i32_0 = arith.constant 0 : i32
    %c0_i32_1 = arith.constant 0 : i32
    return %arg0, %c0_i32, %c0_i32_0 : i32, i32, i32
  }
}

module attributes {stable_mosaic.version = 11 : i64} {
  func.func @_layernorm_kernel(%arg0: memref<32x32xf32, #tpu.memory_space<vmem>>, %arg1: memref<1x32xf32, #tpu.memory_space<vmem>>, %arg2: memref<1x32xf32, #tpu.memory_space<vmem>>, %arg3: memref<32x32xf32, #tpu.memory_space<vmem>>) attributes {dimension_semantics = [], scalar_prefetch = 0 : i64, scratch_operands = 0 : i64, tpu.core_type = #tpu.core_type<tc>} {
    %c0 = arith.constant 0 : index
    %c0_0 = arith.constant 0 : index
    %0 = vector.load %arg0[%c0, %c0_0] : memref<32x32xf32, #tpu.memory_space<vmem>>, vector<32x32xf32>
    %c0_1 = arith.constant 0 : index
    %c0_2 = arith.constant 0 : index
    %1 = vector.load %arg1[%c0_1, %c0_2] : memref<1x32xf32, #tpu.memory_space<vmem>>, vector<1x32xf32>
    %c0_3 = arith.constant 0 : index
    %c0_4 = arith.constant 0 : index
    %2 = vector.load %arg2[%c0_3, %c0_4] : memref<1x32xf32, #tpu.memory_space<vmem>>, vector<1x32xf32>
    %cst = arith.constant dense<0.000000e+00> : vector<32xf32>
    %3 = vector.multi_reduction <add>, %0, %cst [1] : vector<32x32xf32> to vector<32xf32>
    %4 = vector.shape_cast %3 : vector<32xf32> to vector<32x1xf32>
    %cst_5 = arith.constant 3.200000e+01 : f32
    %5 = vector.broadcast %cst_5 : f32 to vector<32x1xf32>
    %6 = arith.divf %4, %5 : vector<32x1xf32>
    %7 = vector.broadcast %6 : vector<32x1xf32> to vector<32x32xf32>
    %8 = arith.subf %0, %7 : vector<32x32xf32>
    %9 = arith.mulf %8, %8 : vector<32x32xf32>
    %cst_6 = arith.constant dense<0.000000e+00> : vector<32xf32>
    %10 = vector.multi_reduction <add>, %9, %cst_6 [1] : vector<32x32xf32> to vector<32xf32>
    %11 = vector.shape_cast %10 : vector<32xf32> to vector<32x1xf32>
    %cst_7 = arith.constant 3.200000e+01 : f32
    %12 = vector.broadcast %cst_7 : f32 to vector<32x1xf32>
    %13 = arith.divf %11, %12 : vector<32x1xf32>
    %14 = vector.broadcast %6 : vector<32x1xf32> to vector<32x32xf32>
    %15 = arith.subf %0, %14 : vector<32x32xf32>
    %cst_8 = arith.constant 9.99999974E-6 : f32
    %16 = vector.broadcast %cst_8 : f32 to vector<32x1xf32>
    %17 = arith.addf %13, %16 : vector<32x1xf32>
    %18 = math.rsqrt %17 : vector<32x1xf32>
    %19 = vector.broadcast %18 : vector<32x1xf32> to vector<32x32xf32>
    %20 = arith.mulf %15, %19 : vector<32x32xf32>
    %21 = vector.broadcast %1 : vector<1x32xf32> to vector<32x32xf32>
    %22 = arith.mulf %20, %21 : vector<32x32xf32>
    %23 = vector.broadcast %2 : vector<1x32xf32> to vector<32x32xf32>
    %24 = arith.addf %22, %23 : vector<32x32xf32>
    %c0_9 = arith.constant 0 : index
    %c0_10 = arith.constant 0 : index
    %25 = vector.load %arg3[%c0_9, %c0_10] : memref<32x32xf32, #tpu.memory_space<vmem>>, vector<32x32xf32>
    tpu.vector_store %arg3[%c0_9, %c0_10], %24 {strides = array<i32>} : memref<32x32xf32, #tpu.memory_space<vmem>>, vector<32x32xf32>,
    return
  }
}

</mosaic_0001>

<bundles_post_ra>
// kernel: transformer_forward.10
= control target key start
LH: loop header
LB: loop body
LE: loop exit
PB: predicated region body
PF: predicated region fallthrough
CT: control target
= control target key end

     0   :  { %vm41_vm0 = vcmask 261120   ;;  %vm158_vm1 = vcmask 523264   ;;  %s571_s1 = inlined_call_operand.vmem [shape: f32[32,64], index: 1, kind: input, shape index: {}]   ;;  %s572_s0 = inlined_call_operand.vmem [shape: f32[32,32], index: 0, kind: input, shape index: {}]   ;;  %s573_s3 = inlined_call_operand.vmem [shape: f32[64,32], index: 3, kind: input, shape index: {}]   ;;  %s574_s2 = inlined_call_operand.vmem [shape: f32[1,64], index: 2, kind: input, shape index: {}]   ;;  %s575_s4 = inlined_call_operand.vmem [shape: f32[1,32], index: 4, kind: input, shape index: {}]   ;;  %s576_s5 = inlined_call_operand.vmem [shape: f32[1,32], index: 5, kind: input, shape index: {}]   ;;  %s577_s6 = inlined_call_operand.vmem [shape: f32[1,32], index: 6, kind: input, shape index: {}]   ;;  %s578_s7 = inlined_call_operand.vmem [shape: f32[32,32], index: 7, kind: output, shape index: {}]  }
   0x1   :  { %v30_v0 = vld [vmem:[%s571_s1] sm:$0xff]  ;;  %v31_v1 = vld [vmem:[%s571_s1 + $0x8] sm:$0xff]  ;;  %v32_v2 = vld [vmem:[%s571_s1 + $0x10] sm:$0xff] }
   0x2   :  { %v411_v3 = vpack.c.bf16 %v31_v1, %v30_v0  ;;  %v33_v4 = vld [vmem:[%s571_s1 + $0x18] sm:$0xff]  ;;  %v26_v5 = vld [vmem:[%s572_s0] sm:$0xff]  ;;  %v144_v8 = vld [vmem:[%s573_s3 + $0x8] sm:$0xff] }
   0x3   :  { %v415_v6 = vpack.c.bf16 %v33_v4, %v32_v2  ;;  %383 = vmatprep.mubr.msk.f32.mxu0 %vm41_vm0, %v26_v5  ;;  %v143_v7 = vld [vmem:[%s573_s3] sm:$0xff]  ;;  %v145_v9 = vld [vmem:[%s573_s3 + $0x10] sm:$0xff]  ;;  %v146_v10 = vld [vmem:[%s573_s3 + $0x18] sm:$0xff] }
   0x4   :  { %412 = vmatprep.subr.bf16.mxu0 %v411_v3  ;;  %v419_v11 = vpack.c.bf16 %v144_v8, %v143_v7  ;;  %v423_v12 = vpack.c.bf16 %v146_v10, %v145_v9  ;;  %v147_v13 = vld [vmem:[%s573_s3 + $0x20] sm:$0xff]  ;;  %v148_v14 = vld [vmem:[%s573_s3 + $0x28] sm:$0xff]  ;;  %v28_v17 = vld [vmem:[%s572_s0 + $0x10] sm:$0xff] }
   0x5   :  { %414 = vmatpush3.bf16.msra.mxu0 %v411_v3  ;;  %v27_v15 = vld [vmem:[%s572_s0 + $0x8] sm:$0xff]  ;;  %v427_v16 = vpack.c.bf16 %v148_v14, %v147_v13  ;;  %v29_v18 = vld [vmem:[%s572_s0 + $0x18] sm:$0xff]  ;;  %v149_v19 = vld [vmem:[%s573_s3 + $0x30] sm:$0xff] }
   0x6   :  { %416 = vmatprep.subr.bf16.mxu0 %v415_v6  ;;  %420 = vmatprep.subr.bf16.mxu1 %v419_v11  ;;  %v150_v20 = vld [vmem:[%s573_s3 + $0x38] sm:$0xff]  ;;  %v343_v22 = vld [vmem:[%s574_s2] ss:$0 sm:$0xff] }
   0x7   :  { %422 = vmatpush3.bf16.msra.mxu1 %v419_v11  ;;  %v431_v21 = vpack.c.bf16 %v150_v20, %v149_v19  ;;  %v348_v35 = vld [vmem:[%s575_s4] ss:$0 sm:$0xff] }
   0x8   :  { %424 = vmatprep.subr.bf16.mxu1 %v423_v12 }
   0x9   :  { %418 = vmatpush3.bf16.msra.mxu0 %v415_v6 }
   0xb   :  { %426 = vmatpush3.bf16.msra.mxu1 %v423_v12 }
   0xc   :  { %384 = vmatmul.mubr.msk.f32.vlgmr.msra.gmra.mrb[0].mxu0 %vm41_vm0, %v27_v15  ;;  %428 = vmatprep.subr.bf16.mxu1 %v427_v16 }
   0xd   :  { %386 = vmatprep.mubr.msk.f32.mxu0 %vm41_vm0, %v28_v17 }
   0xf   :  { %430 = vmatpush3.bf16.msra.mxu1 %v427_v16 }
  0x10   :  { %387 = vmatmul.mubr.msk.f32.gmra.mrb[2].mxu0 %vm41_vm0, %v29_v18  ;;  %432 = vmatprep.subr.bf16.mxu1 %v431_v21 }
  0x13   :  { %434 = vmatpush3.bf16.msra.mxu1 %v431_v21  ;;  %v353_v21 = vld [vmem:[%s576_s5] ss:$0 sm:$0xff] }
  0xdf   :  { %v385_v23 = vpop.f32.mrb[0].mxu0 }
  0xe0   :  { %v126_v24 = vadd.f32 %v385_v23, %v343_v22  ;;  %v120_v25 = vpop.f32.mrb[1].mxu0  ;;  %v354_v23 = vld [vmem:[%s577_s6] ss:$0 sm:$0xff] }
  0xe1   :  { %v121_v26 = vadd.f32 %v343_v22, %v120_v25 }
  0xe2   :  { %v140_v29 = vmax.f32 %v126_v24, 0.0 }
  0xe3   :  { %v139_v27 = vmax.f32 %v121_v26, 0.0  ;;  %v388_v28 = vpop.f32.mrb[2].mxu0 }
  0xe4   :  { %v136_v30 = vadd.f32 %v388_v28, %v343_v22  ;;  %v130_v31 = vpop.f32.mrb[3].mxu0 }
  0xe5   :  { %v131_v32 = vadd.f32 %v343_v22, %v130_v31  ;;  %405 = vmatprep.mubr.msk.f32.mxu1 %vm158_vm1, %v139_v27 }
  0xe6   :  { %406 = vmatmul.mubr.msk.f32.vlgmr.msra.gmra.mrb[0].mxu1 %vm158_vm1, %v140_v29  ;;  %v142_v34 = vmax.f32 %v136_v30, 0.0 }
  0xe7   :  { %v141_v33 = vmax.f32 %v131_v32, 0.0 }
  0xe9   :  { %408 = vmatprep.mubr.msk.f32.mxu1 %vm158_vm1, %v141_v33 }
  0xea   :  { %409 = vmatmul.mubr.msk.f32.gmra.mrb[2].mxu1 %vm158_vm1, %v142_v34 }
 0x1b9   :  { %v407_v36 = vpop.f32.mrb[0].mxu1 }
 0x1ba   :  { %v237_v37 = vpop.f32.mrb[1].mxu1  ;;  %v243_v38 = vadd.f32 %v407_v36, %v348_v35 }
 0x1bb   :  { %v238_v39 = vadd.f32 %v348_v35, %v237_v37 }
 0x1bc   :  { %v257_v46 = vadd.f32 %v243_v38, %v27_v15 }
 0x1bd   :  { %v410_v40 = vpop.f32.mrb[2].mxu1  ;;  %v256_v41 = vadd.f32 %v238_v39, %v26_v5 }
 0x1be   :  { %v247_v42 = vpop.f32.mrb[3].mxu1  ;;  %v253_v43 = vadd.f32 %v410_v40, %v348_v35  ;;  %v265_v49 = vsel %vm41_vm0, %v257_v46, 0.0 }
 0x1bf   :  { %v248_v44 = vadd.f32 %v348_v35, %v247_v42  ;;  %v262_v45 = vsel %vm41_vm0, %v256_v41, 0.0 }
 0x1c0   :  { %263 = vadd.xlane.f32.xlu0 %v262_v45  ;;  %v259_v50 = vadd.f32 %v253_v43, %v29_v18 }
 0x1c1   :  { %v258_v47 = vadd.f32 %v248_v44, %v28_v17 }
 0x1c2   :  { %v271_v51 = vsel %vm41_vm0, %v259_v50, 0.0 }
 0x1c3   :  { %v268_v48 = vsel %vm41_vm0, %v258_v47, 0.0 }
 0x1c4   :  { %269 = vadd.xlane.f32.xlu1 %v268_v48  ;;  %266 = vadd.xlane.f32.xlu0 %v265_v49 }
 0x1c8   :  { %272 = vadd.xlane.f32.xlu1 %v271_v51 }
 0x24d   :  { %v264_v52 = vpop.xlane.xlu0 %263 }
 0x24e   :  { %v275_v53 = vmul.f32 0.03125, %v264_v52 }
 0x250   :  { %v279_v54 = vsub.f32 %v256_v41, %v275_v53 }
 0x251   :  { %v270_v55 = vpop.xlane.xlu1 %269  ;;  %v267_v56 = vpop.xlane.xlu0 %266 }
 0x252   :  { %v277_v57 = vmul.f32 0.03125, %v270_v55  ;;  %v276_v58 = vmul.f32 0.03125, %v267_v56  ;;  %v283_v59 = vmul.f32 %v279_v54, %v279_v54 }
 0x254   :  { %v281_v60 = vsub.f32 %v258_v47, %v277_v57  ;;  %v280_v61 = vsub.f32 %v257_v46, %v276_v58  ;;  %v287_v62 = vsel %vm41_vm0, %v283_v59, 0.0 }
 0x255   :  { %v273_v63 = vpop.xlane.xlu1 %272  ;;  %288 = vadd.xlane.f32.xlu0 %v287_v62 }
 0x256   :  { %v278_v0 = vmul.f32 0.03125, %v273_v63  ;;  %v285_v1 = vmul.f32 %v281_v60, %v281_v60  ;;  %v284_v2 = vmul.f32 %v280_v61, %v280_v61 }
 0x258   :  { %v282_v3 = vsub.f32 %v259_v50, %v278_v0  ;;  %v293_v4 = vsel %vm41_vm0, %v285_v1, 0.0  ;;  %v290_v5 = vsel %vm41_vm0, %v284_v2, 0.0 }
 0x259   :  { %294 = vadd.xlane.f32.xlu0 %v293_v4  ;;  %291 = vadd.xlane.f32.xlu1 %v290_v5 }
 0x25a   :  { %v286_v6 = vmul.f32 %v282_v3, %v282_v3 }
 0x25c   :  { %v296_v7 = vsel %vm41_vm0, %v286_v6, 0.0 }
 0x25d   :  { %297 = vadd.xlane.f32.xlu1 %v296_v7 }
 0x2e2   :  { %v289_v8 = vpop.xlane.xlu0 %288 }
 0x2e3   :  { %v299_v9 = vmul.f32 0.03125, %v289_v8 }
 0x2e5   :  { %v303_v10 = vadd.f32 1e-05, %v299_v9 }
 0x2e6   :  { %v292_v11 = vpop.xlane.xlu1 %291  ;;  %v295_v12 = vpop.xlane.xlu0 %294 }
 0x2e7   :  { %435 = vrsqrt.f32 %v303_v10  ;;  %v300_v13 = vmul.f32 0.03125, %v292_v11  ;;  %v301_v14 = vmul.f32 0.03125, %v295_v12 }
 0x2e9   :  { %v304_v15 = vadd.f32 1e-05, %v300_v13  ;;  %v305_v16 = vadd.f32 1e-05, %v301_v14 }
 0x2ea   :  { %v298_v17 = vpop.xlane.xlu1 %297 }
 0x2eb   :  { %437 = vrsqrt.f32 %v304_v15  ;;  %v302_v18 = vmul.f32 0.03125, %v298_v17 }
 0x2ec   :  { %439 = vrsqrt.f32 %v305_v16 }
 0x2ed   :  { %v306_v19 = vadd.f32 1e-05, %v302_v18 }
 0x2ef   :  { %441 = vrsqrt.f32 %v306_v19 }
 0x2f1   :  { %v436_v20 = vpop.eup %435 }
 0x2f2   :  { %v311_v22 = vmul.f32 %v436_v20, %v279_v54 }
 0x2f4   :  { %v321_v24 = vmul.f32 %v353_v21, %v311_v22 }
 0x2f5   :  { %v438_v25 = vpop.eup %437 }
 0x2f6   :  { %v440_v26 = vpop.eup %439  ;;  %v331_v27 = vadd.f32 %v354_v23, %v321_v24  ;;  %v312_v28 = vmul.f32 %v438_v25, %v280_v61 }
 0x2f7   :  { %v313_v29 = vmul.f32 %v440_v26, %v281_v60 }
 0x2f8   :  { %335 = vst.msk [vmem:[%s578_s7] sm:$0xff] %vm41_vm0, %v331_v27  ;;  %v322_v30 = vmul.f32 %v353_v21, %v312_v28 }
 0x2f9   :  { %v442_v31 = vpop.eup %441  ;;  %v323_v32 = vmul.f32 %v353_v21, %v313_v29 }
 0x2fa   :  { %v332_v33 = vadd.f32 %v354_v23, %v322_v30  ;;  %v314_v34 = vmul.f32 %v442_v31, %v282_v3 }
 0x2fb   :  { %v333_v35 = vadd.f32 %v354_v23, %v323_v32 }
 0x2fc   :  { %336 = vst.msk [vmem:[%s578_s7 + $0x8] sm:$0xff] %vm41_vm0, %v332_v33  ;;  %v324_v36 = vmul.f32 %v353_v21, %v314_v34 }
 0x2fd   :  { %337 = vst.msk [vmem:[%s578_s7 + $0x10] sm:$0xff] %vm41_vm0, %v333_v35 }
 0x2fe   :  { %v334_v37 = vadd.f32 %v354_v23, %v324_v36 }
 0x300   :  { %338 = vst.msk [vmem:[%s578_s7 + $0x18] sm:$0xff] %vm41_vm0, %v334_v37 }

// kernel: transformer_forward.13
= control target key start
LH: loop header
LB: loop body
LE: loop exit
PB: predicated region body
PF: predicated region fallthrough
CT: control target
= control target key end

     0   :  { %s1991_s25 = smov 0   ;;  %s2165_s0 = inlined_call_operand.vmem [shape: f32[2,8,32], index: 0, kind: input, shape index: {}, may-alias: {0,2}]   ;;  %s2166_s1 = inlined_call_operand.vmem [shape: f32[2,8,32], index: 1, kind: input, shape index: {}, may-alias: {1,3}]   ;;  %s2167_s2 = inlined_call_operand.vmem [shape: f32[2,8,32], index: 2, kind: input, shape index: {}, may-alias: {0,2}]   ;;  %s2168_s3 = inlined_call_operand.vmem [shape: f32[2,8,32], index: 3, kind: input, shape index: {}, may-alias: {1,3}]   ;;  %s2169_s4 = inlined_call_operand.vmem [shape: f32[2,1,8], index: 4, kind: input, shape index: {}]   ;;  %s2170_s5 = inlined_call_operand.vmem [shape: f32[32,96], index: 5, kind: input, shape index: {}]   ;;  %s2171_s6 = inlined_call_operand.vmem [shape: f32[1,96], index: 6, kind: input, shape index: {}]   ;;  %s2172_s7 = inlined_call_operand.vmem [shape: f32[32,32], index: 7, kind: input, shape index: {}]   ;;  %s2173_s8 = inlined_call_operand.vmem [shape: f32[1,32], index: 8, kind: input, shape index: {}]   ;;  %s2174_s9 = inlined_call_operand.vmem [shape: f32[1,32], index: 9, kind: input, shape index: {}, may-alias: {9,11}]   ;;  %s2175_s10 = inlined_call_operand.vmem [shape: f32[1,32], index: 10, kind: input, shape index: {}, may-alias: {10,12}]   ;;  %s2176_s11 = inlined_call_operand.vmem [shape: f32[1,32], index: 11, kind: input, shape index: {}, may-alias: {9,11}]   ;;  %s2177_s12 = inlined_call_operand.vmem [shape: f32[1,32], index: 12, kind: input, shape index: {}, may-alias: {10,12}]   ;;  %s2178_s13 = inlined_call_operand.vmem [shape: f32[2,8,32], index: 13, kind: output, shape index: {}]  }
   0x1 LB: > { %s1668_s26 = sadd.s32 4294967295, %s1908_s25   ;;  %p1672_p0 = scmp.ge.s32.totalorder %s1908_s25, 1  ;;  %s1908_s25 = sphi %s1991_s25, %s23_s25  }
   0x2   : > { %p421_p1 = scmp.lt.s32.totalorder %s1908_s25, 3 }
   0x4   : > { %p422_p2 = pnand %p1672_p0, %p421_p1 }
   0x5   : > { %v508_v0 = vld [vmem:[%s2170_s5] sm:$0xff] (!%p422_p2)  ;;  %v509_v1 = vld [vmem:[%s2170_s5 + $0x8] sm:$0xff] (!%p422_p2)  ;;  %v510_v2 = vld [vmem:[%s2170_s5 + $0x10] sm:$0xff] (!%p422_p2)  ;;  %v1910_v5 = vmov (!%p422_p2), 0.0|0.0   ;;  %p478_p3 = scmp.lt.s32.totalorder (!%p422_p2), %s1668_s26, 1  ;;  %vm1911_vm0 = vmmov (!%p422_p2), 0  }
   0x6   : > { %425 = sbr.rel (%p422_p2) target bundleno = 2285 (0x8ed), region = 72  ;;  %v1864_v3 = vpack.i.bf16 (!%p422_p2), %v509_v1, %v508_v0  ;;  %v511_v4 = vld [vmem:[%s2170_s5 + $0x18] sm:$0xff] (!%p422_p2)  ;;  %1827 = vmatprep.subr.bf16.mxu1 (!%p422_p2), %v1910_v5  ;;  %1821 = vmatprep.subr.bf16.mxu0 (!%p422_p2), %v1910_v5  ;;  %v1822_v6 = vpack.c.bf16 (!%p422_p2), %v509_v1, %v508_v0  ;;  %v2016_v7 = vld [vmem:[%s2171_s6] ss:$0 sm:$0xff] (!%p422_p2)  ;;  %v1912_v8 = vmov (!%p422_p2), 0.0   ;;  %s1913_s18 = smov (!%p422_p2), 96  }
   0x7   : > { %1756 = vmatprep.mubr.msk.f32.mxu1 (!%p422_p2), %vm1911_vm0, %v1912_v8  ;;  %1745 = vmatprep.mubr.msk.f32.mxu0 (!%p422_p2), %vm1911_vm0, %v1912_v8  ;;  %v1869_v9 = vpack.i.bf16 (!%p422_p2), %v511_v4, %v510_v2  ;;  %v1825_v10 = vpack.c.bf16 (!%p422_p2), %v511_v4, %v510_v2  ;;  %vm519_vm1 = vcmask (!%p422_p2), 261120   ;;  %s1914_s15 = smov (!%p422_p2), 64   ;;  %vm780_vm2 = vcmask (!%p422_p2), 64512   ;;  %s1915_s20 = smov (!%p422_p2), 120  }
   0x8   : > { %1865 = vrot.lane.b32.xlu0 (!%p422_p2), %v1864_v3, %s1913_s18  ;;  %1823 = vmatpush3.bf16.msra.mxu0 (!%p422_p2), %v1822_v6  ;;  %s1916_s21 = smov (!%p422_p2), 112   ;;  %s1918_s30 = smov (!%p422_p2), 8   ;;  %vm1450_vm3 = vcmask (!%p422_p2), 130048   ;;  %vm1452_vm4 = vcmask (!%p422_p2), 195584  }
   0x9   : > { %1824 = vmatprep.subr.bf16.mxu0 (!%p422_p2), %v1910_v5  ;;  %609 = vrot.lane.b32.xlu1 (!%p422_p2), %v2016_v7, %s1913_s18 }
   0xc   : > { %1870 = vrot.lane.b32.xlu0 (!%p422_p2), %v1869_v9, %s1913_s18  ;;  %1826 = vmatpush3.bf16.msra.mxu0 (!%p422_p2), %v1825_v10 }
   0xd   : > { %s2180_s26 = smov (!%p478_p3, %s1668_s26), 1  ;;  %1833 = vmatprep.subr.bf16.mxu0 %v1910_v5  ;;  %1875 = vrot.lane.b32.xlu1 %v1864_v3, %s1914_s15 }
   0xe   : > { %s2027_s19 = sshll.u32 %s2180_s26, 3  ;;  %s496_s18 = scalar_lea.vmem %s2169_s4, %s2180_s26 }
   0xf   : > { %s481_s22 = scalar_lea.vmem %s2165_s0, %s2027_s19  ;;  %s485_s11 = scalar_lea.vmem %s2166_s1, %s2027_s19  ;;  %v2074_v41 = vld [vmem:[%s496_s18] ss:$0 sm:$0xff] }
  0x10   : > { %v2037_v11 = vld [vmem:[%s481_s22] sm:$0xff]  ;;  %s489_s28 = scalar_lea.vmem %s2167_s2, %s2027_s19  ;;  %s493_s14 = scalar_lea.vmem %s2168_s3, %s2027_s19  ;;  %1880 = vrot.lane.b32.xlu0 %v1869_v9, %s1914_s15 }
  0x11   : > { %v502_v12 = vld [vmem:[%s485_s11] sm:$0xff]  ;;  %s1917_s22 = smov 104   ;;  %s500_s24 = scalar_lea.vmem %s2178_s13, %s2027_s19 }
  0x12   : > { %v503_v13 = vadd.f32 %v502_v12, %v2037_v11  ;;  %v504_v21 = vld [vmem:[%s489_s28] sm:$0xff] }
  0x13   : > { %v505_v22 = vld [vmem:[%s493_s14] sm:$0xff]  ;;  %s1919_s14 = smov 16  }
  0x14   : > { %1746 = vmatmul.mubr.msk.f32.vlgmr.msra.gmra.mrb[0].mxu0 %vm519_vm1, %v503_v13  ;;  %v506_v24 = vadd.f32 %v505_v22, %v504_v21 }
  0x15   : > { %1767 = vmatprep.mubr.msk.f32.mxu0 %vm1911_vm0, %v1912_v8 }
  0x7a   : > { %v1866_v14 = vpop.permute.xlu0 %1865 }
  0x7b   : > { %v1868_v15 = vunpack.i.h.bf16 %v1866_v14  ;;  %v1867_v16 = vunpack.i.l.bf16 %v1866_v14  ;;  %v610_v27 = vpop.permute.xlu1 %609 }
  0x7d   : > { %v1828_v17 = vpack.c.bf16 %v1868_v15, %v1867_v16 }
  0x7e   : > { %v1871_v18 = vpop.permute.xlu0 %1870 }
  0x7f   : > { %v1873_v19 = vunpack.i.h.bf16 %v1871_v18  ;;  %v1872_v20 = vunpack.i.l.bf16 %v1871_v18  ;;  %1829 = vmatpush3.bf16.msra.mxu1 %v1828_v17  ;;  %v1876_v33 = vpop.permute.xlu1 %1875 }
  0x80   : > { %1830 = vmatprep.subr.bf16.mxu1 %v1910_v5  ;;  %v1878_v35 = vunpack.i.h.bf16 %v1876_v33  ;;  %v1877_v36 = vunpack.i.l.bf16 %v1876_v33 }
  0x81   : > { %v1831_v23 = vpack.c.bf16 %v1873_v19, %v1872_v20 }
  0x82   : > { %v1881_v34 = vpop.permute.xlu0 %1880  ;;  %v1834_v39 = vpack.c.bf16 %v1878_v35, %v1877_v36 }
  0x83   : > { %1832 = vmatpush3.bf16.msra.mxu1 %v1831_v23  ;;  %v1883_v37 = vunpack.i.h.bf16 %v1881_v34  ;;  %v1882_v38 = vunpack.i.l.bf16 %v1881_v34 }
  0x84   : > { %1770 = vmatprep.subr.mxu1 %v1912_v8  ;;  %1835 = vmatpush3.bf16.msra.mxu0 %v1834_v39 }
  0x85   : > { %v1837_v40 = vpack.c.bf16 %v1883_v37, %v1882_v38  ;;  %1836 = vmatprep.subr.bf16.mxu0 %v1910_v5 }
  0x86   : > { %1757 = vmatmul.mubr.msk.f32.vlgmr.msra.gmra.mrb[0].mxu1 %vm519_vm1, %v506_v24 }
  0x87   : > { %1772 = vmatprep.mubr.msk.f32.mxu1 %vm1911_vm0, %v1912_v8 }
  0x88   : > { %1838 = vmatpush3.bf16.msra.mxu0 %v1837_v40 }
  0x89   : > { %1790 = vmatprep.subr.mxu0 %v1912_v8 }
  0x8b   : > { %1768 = vmatmul.mubr.msk.f32.vlgmr.msra.gmra.mrb[2].mxu0 %vm519_vm1, %v504_v21 }
  0x8c   : > { %1792 = vmatprep.mubr.msk.f32.mxu0 %vm1911_vm0, %v1912_v8 }
  0xe7   : > { %v589_v25 = vpop.f32.mrb[0].mxu0 }
  0xe8   : > { %v1747_v26 = vpop.f32.mrb[1].mxu0  ;;  %v590_v28 = vadd.f32 %v2016_v7, %v589_v25 }
  0xea   : > { %v773_v32 = vmul.f32 0.35355338, %v590_v28 }
 0x159   : > { %v681_v29 = vpop.f32.mrb[0].mxu1 }
 0x15a   : > { %v682_v30 = vadd.f32 %v681_v29, %v610_v27  ;;  %v1758_v31 = vpop.f32.mrb[1].mxu1 }
 0x15c   : > { %1771 = vmatpush3.xpose.msk.msra.mxu1 %vm780_vm2, %v682_v30 }
 0x15d   : > { %1775 = vmatprep.subr.mxu1 %v1912_v8 }
 0x15e   : > { %v769_v51 = vpop.f32.mrb[2].mxu0 }
 0x15f   : > { %1773 = vmatmul.mubr.msk.f32.vlgmr.msra.gmra.mrb[2].mxu1 %vm780_vm2, %v773_v32  ;;  %v1769_v52 = vpop.f32.mrb[3].mxu0 }
 0x160   : > { %1777 = vmatprep.mubr.msk.f32.mxu1 %vm1911_vm0, %v1912_v8 }
 0x232   : > { %v853_v42 = vpop.f32.mrb[2].mxu1 }
 0x233   : > { %v854_v43 = vadd.f32 %v2074_v41, %v853_v42  ;;  %v1774_v44 = vpop.f32.mrb[3].mxu1 }
 0x234   : > { %v1454_v44 = vld [vmem:[%s2172_s7] sm:$0xff] }
 0x235   : > { %v857_v45 = vsel %vm780_vm2, %v854_v43, -inf }
 0x236   : > { %858 = vmax.xlane.f32.xlu1 %v857_v45  ;;  %v1455_v45 = vld [vmem:[%s2172_s7 + $0x8] sm:$0xff] }
 0x247   : > { %943 = vrot.lane.b32.xlu1 %v682_v30, %s1915_s20 }
 0x24b   : > { %941 = vrot.lane.b32.xlu1 %v773_v32, %s1915_s20 }
 0x24f   : > { %1107 = vrot.lane.b32.xlu1 %v773_v32, %s1916_s21 }
 0x253   : > { %1272 = vrot.lane.b32.xlu1 %v773_v32, %s1917_s22 }
 0x2c3   : > { %v859_v46 = vpop.xlane.xlu1 %858 }
 0x2c4   : > { %v860_v47 = vsub.f32 %v854_v43, %v859_v46  ;;  %v1840_v46 = vpack.c.bf16 %v1455_v45, %v1454_v44 }
 0x2c6   : > { %v861_v48 = vmul.f32 1.442695, %v860_v47  ;;  %v1456_v47 = vld [vmem:[%s2172_s7 + $0x10] sm:$0xff] }
 0x2c7   : > { %v944_v53 = vpop.permute.xlu1 %943 }
 0x2c8   : > { %1884 = vpow2.f32 %v861_v48 }
 0x2cb   : > { %v942_v55 = vpop.permute.xlu1 %941 }
 0x2cf   : > { %v1108_v59 = vpop.permute.xlu1 %1107 }
 0x2d2   : > { %v1885_v49 = vpop.eup %1884 }
 0x2d3   : > { %v863_v50 = vsel %vm780_vm2, %v1885_v49, 0.0  ;;  %v1273_v63 = vpop.permute.xlu1 %1272 }
 0x2d4   : > { %864 = vadd.xlane.f32.xlu0 %v863_v50 }
 0x2ea   : > { %697 = vrot.lane.b32.xlu0 %v2016_v7, %s1914_s15  ;;  %s1920_s15 = smov 24  }
 0x2ee   : > { %1109 = vrot.lane.b32.xlu0 %v682_v30, %s1916_s21 }
 0x2f2   : > { %1274 = vrot.lane.b32.xlu0 %v682_v30, %s1917_s22 }
 0x361   : > { %v865_v54 = vpop.xlane.xlu0 %864 }
 0x362   : > { %1886 = vrcp.f32 %v865_v54 }
 0x365   : > { %v698_v56 = vpop.permute.xlu0 %697 }
 0x366   : > { %v770_v57 = vadd.f32 %v769_v51, %v698_v56 }
 0x368   : > { %1776 = vmatpush3.msra.mxu1 %v770_v57 }
 0x369   : > { %v1110_v58 = vpop.permute.xlu0 %1109  ;;  %1780 = vmatprep.subr.mxu1 %v1912_v8 }
 0x36a   : > { %1791 = vmatpush3.xpose.msk.msra.mxu0 %vm780_vm2, %v1110_v58 }
 0x36b   : > { %1800 = vmatprep.subr.mxu0 %v1912_v8 }
 0x36c   : > { %v1887_v60 = vpop.eup %1886 }
 0x36d   : > { %v867_v61 = vmul.f32 %v1887_v60, %v1885_v49  ;;  %v1275_v62 = vpop.permute.xlu0 %1274  ;;  %1793 = vmatmul.mubr.msk.f32.vlgmr.msra.gmra.mrb[4].mxu0 %vm780_vm2, %v1108_v59  ;;  %v1695_v60 = vld [vmem:[%s2173_s8] ss:$0 sm:$0xff] }
 0x36e   : > { %1801 = vmatpush3.xpose.msk.msra.mxu0 %vm780_vm2, %v1275_v62  ;;  %1802 = vmatprep.mubr.msk.f32.mxu0 %vm1911_vm0, %v1912_v8 }
 0x36f   : > { %1778 = vmatmul.mubr.msk.f32.vlgmr.msra.gmra.mrb[4].mxu1 %vm780_vm2, %v867_v61  ;;  %1839 = vmatprep.subr.bf16.mxu0 %v1910_v5 }
 0x370   : > { %1781 = vmatpush3.xpose.msk.msra.mxu1 %vm780_vm2, %v944_v53  ;;  %1782 = vmatprep.mubr.msk.f32.mxu1 %vm1911_vm0, %v1912_v8 }
 0x371   : > { %1803 = vmatmul.mubr.msk.f32.vlgmr.msra.gmra.mrb[6].mxu0 %vm780_vm2, %v1273_v63  ;;  %1785 = vmatprep.subr.mxu1 %v1912_v8 }
 0x372   : > { %1818 = vmatprep.mubr.msk.f32.mxu0 %vm1911_vm0, %v1912_v8  ;;  %1841 = vmatpush3.bf16.msra.mxu0 %v1840_v46 }
 0x373   : > { %1783 = vmatmul.mubr.msk.f32.vlgmr.msra.gmra.mrb[6].mxu1 %vm780_vm2, %v942_v55  ;;  %1842 = vmatprep.subr.bf16.mxu0 %v1910_v5 }
 0x374   : > { %1787 = vmatprep.mubr.msk.f32.mxu1 %vm1911_vm0, %v1912_v8 }
 0x440   : > { %v1181_v0 = vpop.f32.mrb[4].mxu0 }
 0x441   : > { %v1182_v1 = vadd.f32 %v2074_v41, %v1181_v0  ;;  %v1794_v2 = vpop.f32.mrb[5].mxu0 }
 0x442   : > { %v2107_v3 = vpop.f32.mrb[4].mxu1 }
 0x443   : > { %v1779_v4 = vpop.f32.mrb[5].mxu1  ;;  %v1185_v6 = vsel %vm780_vm2, %v1182_v1, -inf }
 0x444   : > { %1186 = vmax.xlane.f32.xlu1 %v1185_v6  ;;  %v1346_v7 = vpop.f32.mrb[6].mxu0 }
 0x445   : > { %v1804_v9 = vpop.f32.mrb[7].mxu0  ;;  %v1347_v14 = vadd.f32 %v2074_v41, %v1346_v7 }
 0x446   : > { %v1015_v10 = vpop.f32.mrb[6].mxu1 }
 0x447   : > { %v1016_v12 = vadd.f32 %v2074_v41, %v1015_v10  ;;  %v1784_v13 = vpop.f32.mrb[7].mxu1  ;;  %v1350_v16 = vsel %vm780_vm2, %v1347_v14, -inf }
 0x449   : > { %v1019_v15 = vsel %vm780_vm2, %v1016_v12, -inf }
 0x44a   : > { %1020 = vmax.xlane.f32.xlu0 %v1019_v15  ;;  %v1698_v15 = vld [vmem:[%s2175_s10] ss:$0 sm:$0xff] }
 0x44e   : > { %1351 = vmax.xlane.f32.xlu0 %v1350_v16 }
 0x4d1   : > { %v1187_v17 = vpop.xlane.xlu1 %1186 }
 0x4d2   : > { %v1188_v18 = vsub.f32 %v1182_v1, %v1187_v17 }
 0x4d4   : > { %v1189_v19 = vmul.f32 1.442695, %v1188_v18 }
 0x4d6   : > { %1888 = vpow2.f32 %v1189_v19 }
 0x4d7   : > { %v1021_v20 = vpop.xlane.xlu0 %1020 }
 0x4d8   : > { %v1022_v21 = vsub.f32 %v1016_v12, %v1021_v20 }
 0x4da   : > { %v1023_v24 = vmul.f32 1.442695, %v1022_v21 }
 0x4db   : > { %v1352_v22 = vpop.xlane.xlu0 %1351 }
 0x4dc   : > { %v1353_v23 = vsub.f32 %v1347_v14, %v1352_v22 }
 0x4de   : > { %v1354_v25 = vmul.f32 1.442695, %v1353_v23 }
 0x4e0   : > { %v1889_v26 = vpop.eup %1888  ;;  %1890 = vpow2.f32 %v1354_v25 }
 0x4e1   : > { %v1191_v27 = vsel %vm780_vm2, %v1889_v26, 0.0  ;;  %1892 = vpow2.f32 %v1023_v24 }
 0x4e2   : > { %1192 = vadd.xlane.f32.xlu1 %v1191_v27 }
 0x4ea   : > { %v1891_v28 = vpop.eup %1890 }
 0x4eb   : > { %v1356_v29 = vsel %vm780_vm2, %v1891_v28, 0.0  ;;  %v1893_v30 = vpop.eup %1892 }
 0x4ec   : > { %1357 = vadd.xlane.f32.xlu0 %v1356_v29  ;;  %v1025_v31 = vsel %vm780_vm2, %v1893_v30, 0.0 }
 0x4f0   : > { %1026 = vadd.xlane.f32.xlu0 %v1025_v31 }
 0x4f3   : > { %1031 = vrot.lane.b32.xlu1 %v770_v57, %s1915_s20 }
 0x4f7   : > { %1361 = vrot.lane.b32.xlu1 %v770_v57, %s1917_s22 }
 0x506   : > { %1196 = vrot.lane.b32.xlu0 %v770_v57, %s1916_s21 }
 0x56f   : > { %v1193_v32 = vpop.xlane.xlu1 %1192 }
 0x573   : > { %v1032_v33 = vpop.permute.xlu1 %1031 }
 0x574   : > { %1786 = vmatpush3.msra.mxu1 %v1032_v33 }
 0x575   : > { %1795 = vmatprep.subr.mxu1 %v1912_v8 }
 0x577   : > { %v1362_v42 = vpop.permute.xlu1 %1361 }
 0x579   : > { %v1358_v34 = vpop.xlane.xlu0 %1357 }
 0x57d   : > { %v1027_v35 = vpop.xlane.xlu0 %1026 }
 0x57e   : > { %1894 = vrcp.f32 %v1027_v35 }
 0x57f   : > { %1896 = vrcp.f32 %v1193_v32 }
 0x580   : > { %1898 = vrcp.f32 %v1358_v34 }
 0x581   : > { %v1197_v39 = vpop.permute.xlu0 %1196 }
 0x588   : > { %v1895_v36 = vpop.eup %1894 }
 0x589   : > { %v1029_v37 = vmul.f32 %v1895_v36, %v1893_v30  ;;  %v1897_v38 = vpop.eup %1896 }
 0x58a   : > { %v1195_v40 = vmul.f32 %v1897_v38, %v1889_v26  ;;  %v1899_v41 = vpop.eup %1898 }
 0x58b   : > { %1788 = vmatmul.mubr.msk.f32.vlgmr.msra.gmra.mrb[8].mxu1 %vm780_vm2, %v1029_v37  ;;  %v1360_v43 = vmul.f32 %v1899_v41, %v1891_v28 }
 0x58c   : > { %1796 = vmatpush3.msra.mxu1 %v1197_v39  ;;  %1797 = vmatprep.mubr.msk.f32.mxu1 %vm1911_vm0, %v1912_v8 }
 0x58d   : > { %1805 = vmatprep.subr.mxu1 %v1912_v8 }
 0x58f   : > { %1798 = vmatmul.mubr.msk.f32.vlgmr.msra.gmra.mrb[10].mxu1 %vm780_vm2, %v1195_v40 }
 0x590   : > { %1806 = vmatpush3.msra.mxu1 %v1362_v42  ;;  %1807 = vmatprep.mubr.msk.f32.mxu1 %vm1911_vm0, %v1912_v8  ;;  %v1457_v8 = vld [vmem:[%s2172_s7 + $0x18] sm:$0xff] }
 0x591   : > { %v1843_v48 = vpack.c.bf16 %v1457_v8, %v1456_v47 }
 0x593   : > { %1808 = vmatmul.mubr.msk.f32.vlgmr.msra.gmra.mrb[12].mxu1 %vm780_vm2, %v1360_v43  ;;  %1844 = vmatpush3.bf16.msra.mxu0 %v1843_v48 }
 0x65e   : > { %v1103_v49 = vpop.f32.mrb[8].mxu1 }
 0x65f   : > { %1438 = vrot.lane.b32.xlu1 %v1103_v49, %s1918_s30  ;;  %v1789_v50 = vpop.f32.mrb[9].mxu1 }
 0x662   : > { %v1268_v51 = vpop.f32.mrb[10].mxu1 }
 0x663   : > { %1442 = vrot.lane.b32.xlu0 %v1268_v51, %s1919_s14  ;;  %v1799_v52 = vpop.f32.mrb[11].mxu1 }
 0x666   : > { %v1433_v53 = vpop.f32.mrb[12].mxu1 }
 0x667   : > { %1446 = vrot.lane.b32.xlu1 %v1433_v53, %s1920_s15  ;;  %v1809_v5 = vpop.f32.mrb[13].mxu1 }
 0x6d1   : > { %v1439_v54 = vpop.permute.xlu1 %1438 }
 0x6d2   : > { %v1449_v56 = vsel %vm780_vm2, %v2107_v3, %v1439_v54 }
 0x6d5   : > { %v1443_v55 = vpop.permute.xlu0 %1442 }
 0x6d6   : > { %v1451_v57 = vsel %vm1450_vm3, %v1449_v56, %v1443_v55 }
 0x6d9   : > { %v1447_v58 = vpop.permute.xlu1 %1446 }
 0x6da   : > { %v1453_v59 = vsel %vm1452_vm4, %v1451_v57, %v1447_v58 }
 0x6db   : > { %1819 = vmatmul.mubr.msk.f32.vlgmr.msra.gmra.mrb[8].mxu0 %vm519_vm1, %v1453_v59 }
 0x7ae   : > { %v1534_v61 = vpop.f32.mrb[8].mxu0 }
 0x7af   : > { %v1535_v62 = vadd.f32 %v1695_v60, %v1534_v61  ;;  %v1820_v63 = vpop.f32.mrb[9].mxu0 }
 0x7b1   : > { %v1538_v0 = vadd.f32 %v1535_v62, %v2037_v11  ;;  %v1697_v11 = vld [vmem:[%s2174_s9] ss:$0 sm:$0xff] }
 0x7b3   : > { %v1541_v1 = vsel %vm519_vm1, %v1538_v0, 0.0 }
 0x7b4   : > { %1542 = vadd.xlane.f32.xlu0 %v1541_v1 }
 0x841   : > { %v1543_v2 = vpop.xlane.xlu0 %1542 }
 0x842   : > { %v1545_v3 = vmul.f32 0.03125, %v1543_v2 }
 0x844   : > { %v1546_v4 = vsub.f32 %v1538_v0, %v1545_v3 }
 0x846   : > { %v1547_v6 = vmul.f32 %v1546_v4, %v1546_v4 }
 0x848   : > { %v1548_v7 = vsel %vm519_vm1, %v1547_v6, 0.0 }
 0x849   : > { %1549 = vadd.xlane.f32.xlu1 %v1548_v7 }
 0x8d6   : > { %v1550_v9 = vpop.xlane.xlu1 %1549 }
 0x8d7   : > { %v1551_v10 = vmul.f32 0.03125, %v1550_v9 }
 0x8d9   : > { %v1552_v12 = vadd.f32 1e-05, %v1551_v10 }
 0x8db   : > { %1900 = vrsqrt.f32 %v1552_v12 }
 0x8e5   : > { %v1901_v13 = vpop.eup %1900 }
 0x8e6   : > { %v1554_v14 = vmul.f32 %v1901_v13, %v1546_v4 }
 0x8e8   : > { %v1561_v16 = vmul.f32 %v1697_v11, %v1554_v14 }
 0x8ea   : > { %v1568_v17 = vadd.f32 %v1698_v15, %v1561_v16 }
 0x8ec   : > { %1569 = vst.msk [vmem:[%s500_s24] sm:$0xff] %vm519_vm1, %v1568_v17 }
 0x8ed PF: > { %s23_s25 = sadd.s32 1, %s1908_s25  }
 0x8ee   : > { %p20_p4 = scmp.ge.s32.totalorder %s23_s25, 4  }
 0x8f0   :  { %22 = sbr.rel (!%p20_p4) target bundleno = 1 (0x1), region = 114 }

// kernel: transformer_forward.9
= control target key start
LH: loop header
LB: loop body
LE: loop exit
PB: predicated region body
PF: predicated region fallthrough
CT: control target
= control target key end

     0   :  { %s2364_s25 = smov 0   ;;  %s2577_s0 = inlined_call_operand.vmem [shape: f32[2,16,32], index: 0, kind: input, shape index: {}, may-alias: {0,2}]   ;;  %s2578_s1 = inlined_call_operand.vmem [shape: f32[2,16,32], index: 1, kind: input, shape index: {}, may-alias: {1,3}]   ;;  %s2579_s2 = inlined_call_operand.vmem [shape: f32[2,16,32], index: 2, kind: input, shape index: {}, may-alias: {0,2}]   ;;  %s2580_s3 = inlined_call_operand.vmem [shape: f32[2,16,32], index: 3, kind: input, shape index: {}, may-alias: {1,3}]   ;;  %s2581_s4 = inlined_call_operand.vmem [shape: f32[2,1,16], index: 4, kind: input, shape index: {}]   ;;  %s2582_s5 = inlined_call_operand.vmem [shape: f32[32,96], index: 5, kind: input, shape index: {}]   ;;  %s2583_s6 = inlined_call_operand.vmem [shape: f32[1,96], index: 6, kind: input, shape index: {}]   ;;  %s2584_s7 = inlined_call_operand.vmem [shape: f32[32,32], index: 7, kind: input, shape index: {}]   ;;  %s2585_s8 = inlined_call_operand.vmem [shape: f32[1,32], index: 8, kind: input, shape index: {}]   ;;  %s2586_s9 = inlined_call_operand.vmem [shape: f32[1,32], index: 9, kind: input, shape index: {}, may-alias: {9,11}]   ;;  %s2587_s10 = inlined_call_operand.vmem [shape: f32[1,32], index: 10, kind: input, shape index: {}, may-alias: {10,12}]   ;;  %s2588_s11 = inlined_call_operand.vmem [shape: f32[1,32], index: 11, kind: input, shape index: {}, may-alias: {9,11}]   ;;  %s2589_s12 = inlined_call_operand.vmem [shape: f32[1,32], index: 12, kind: input, shape index: {}, may-alias: {10,12}]   ;;  %s2590_s13 = inlined_call_operand.vmem [shape: f32[2,16,32], index: 13, kind: output, shape index: {}]  }
   0x1 LB: > { %s1889_s26 = sadd.s32 4294967295, %s2284_s25   ;;  %p1893_p0 = scmp.ge.s32.totalorder %s2284_s25, 1  ;;  %s2284_s25 = sphi %s2364_s25, %s23_s25  }
   0x2   : > { %p425_p1 = scmp.lt.s32.totalorder %s2284_s25, 3 }
   0x4   : > { %p426_p2 = pnand %p1893_p0, %p425_p1 }
   0x5   : > { %v528_v0 = vld [vmem:[%s2582_s5] sm:$0xff] (!%p426_p2)  ;;  %v529_v1 = vld [vmem:[%s2582_s5 + $0x8] sm:$0xff] (!%p426_p2)  ;;  %v530_v2 = vld [vmem:[%s2582_s5 + $0x10] sm:$0xff] (!%p426_p2)  ;;  %p487_p3 = scmp.lt.s32.totalorder (!%p426_p2), %s1889_s26, 1  ;;  %s2286_s18 = smov (!%p426_p2), 96   ;;  %vm539_vm0 = vcmask (!%p426_p2), 261120  }
   0x6   : > { %429 = sbr.rel (%p426_p2) target bundleno = 3376 (0xd30), region = 72  ;;  %v2192_v3 = vpack.i.bf16 (!%p426_p2), %v529_v1, %v528_v0  ;;  %v531_v4 = vld [vmem:[%s2582_s5 + $0x18] sm:$0xff] (!%p426_p2)  ;;  %v2104_v5 = vpack.c.bf16 (!%p426_p2), %v529_v1, %v528_v0  ;;  %v2389_v7 = vld [vmem:[%s2583_s6] ss:$0 sm:$0xff] (!%p426_p2)  ;;  %vm825_vm1 = vcmask (!%p426_p2), 64512   ;;  %s2287_s15 = smov (!%p426_p2), 64  }
   0x7   : > { %v2108_v6 = vpack.c.bf16 (!%p426_p2), %v531_v4, %v530_v2  ;;  %v2197_v8 = vpack.i.bf16 (!%p426_p2), %v531_v4, %v530_v2  ;;  %637 = vrot.lane.b32.xlu1 (!%p426_p2), %v2389_v7, %s2286_s18  ;;  %vm2425_vm2 = vmpackc.low (!%p426_p2), %vm825_vm1, %vm825_vm1  ;;  %vm913_vm3 = vcmask (!%p426_p2), 130048   ;;  %s2289_s20 = smov (!%p426_p2), 112   ;;  %s2290_s21 = smov (!%p426_p2), 104   ;;  %vm1647_vm4 = vcmask (!%p426_p2), 195584  }
   0x8   : > { %2193 = vrot.lane.b32.xlu0 (!%p426_p2), %v2192_v3, %s2286_s18  ;;  %2105 = vmatprep.subr.bf16.mxu0 (!%p426_p2), %v2104_v5  ;;  %s2292_s23 = smov (!%p426_p2), 16  }
   0x9   : > { %2107 = vmatpush3.bf16.msra.mxu0 (!%p426_p2), %v2104_v5 }
   0xa   : > { %2109 = vmatprep.subr.bf16.mxu0 (!%p426_p2), %v2108_v6 }
   0xb   : > { %2203 = vrot.lane.b32.xlu1 (!%p426_p2), %v2192_v3, %s2287_s15 }
   0xc   : > { %2198 = vrot.lane.b32.xlu0 (!%p426_p2), %v2197_v8, %s2286_s18 }
   0xd   : > { %s2594_s26 = smov (!%p487_p3, %s1889_s26), 1  ;;  %2111 = vmatpush3.bf16.msra.mxu0 %v2108_v6 }
   0xe   : > { %s2392_s19 = sshll.u32 %s2594_s26, 4  ;;  %s509_s18 = scalar_lea.vmem %s2581_s4, %s2594_s26 }
   0xf   : > { %s501_s22 = scalar_lea.vmem %s2579_s2, %s2392_s19  ;;  %s506_s11 = scalar_lea.vmem %s2580_s3, %s2392_s19  ;;  %v2445_v51 = vld [vmem:[%s509_s18] ss:$0 sm:$0xff] }
  0x10   : > { %v521_v9 = vld [vmem:[%s501_s22] sm:$0xff]  ;;  %s491_s28 = scalar_lea.vmem %s2577_s0, %s2392_s19  ;;  %s496_s14 = scalar_lea.vmem %s2578_s1, %s2392_s19  ;;  %v522_v25 = vld [vmem:[%s501_s22 + $0x8] sm:$0xff]  ;;  %2208 = vrot.lane.b32.xlu0 %v2197_v8, %s2287_s15 }
  0x11   : > { %v523_v10 = vld [vmem:[%s506_s11] sm:$0xff]  ;;  %v516_v13 = vld [vmem:[%s491_s28 + $0x8] sm:$0xff]  ;;  %s2288_s26 = smov 120   ;;  %s2291_s22 = smov 8  }
  0x12   : > { %v525_v11 = vadd.f32 %v523_v10, %v521_v9  ;;  %v515_v12 = vld [vmem:[%s491_s28] sm:$0xff]  ;;  %v518_v15 = vld [vmem:[%s496_s14 + $0x8] sm:$0xff]  ;;  %s514_s24 = scalar_lea.vmem %s2590_s13, %s2392_s19 }
  0x13   : > { %v517_v14 = vld [vmem:[%s496_s14] sm:$0xff]  ;;  %v520_v17 = vadd.f32 %v518_v15, %v516_v13  ;;  %v524_v26 = vld [vmem:[%s506_s11 + $0x8] sm:$0xff] }
  0x14   : > { %2023 = vmatprep.mubr.msk.f32.mxu1 %vm539_vm0, %v525_v11  ;;  %v519_v16 = vadd.f32 %v517_v14, %v515_v12  ;;  %v526_v28 = vadd.f32 %v524_v26, %v522_v25 }
  0x16   : > { %2012 = vmatprep.mubr.msk.f32.mxu0 %vm539_vm0, %v519_v16 }
  0x17   : > { %2013 = vmatmul.mubr.msk.f32.vlgmr.msra.gmra.mrb[0].mxu0 %vm539_vm0, %v520_v17 }
  0x18   : > { %2034 = vmatprep.mubr.msk.f32.mxu0 %vm539_vm0, %v521_v9 }
  0x79   : > { %v638_v33 = vpop.permute.xlu1 %637 }
  0x7a   : > { %v2194_v18 = vpop.permute.xlu0 %2193 }
  0x7b   : > { %v2196_v19 = vunpack.i.h.bf16 %v2194_v18  ;;  %v2195_v20 = vunpack.i.l.bf16 %v2194_v18 }
  0x7d   : > { %v2112_v21 = vpack.c.bf16 %v2196_v19, %v2195_v20  ;;  %v2204_v43 = vpop.permute.xlu1 %2203 }
  0x7e   : > { %v2199_v22 = vpop.permute.xlu0 %2198  ;;  %v2206_v45 = vunpack.i.h.bf16 %v2204_v43  ;;  %v2205_v46 = vunpack.i.l.bf16 %v2204_v43 }
  0x7f   : > { %v2201_v23 = vunpack.i.h.bf16 %v2199_v22  ;;  %v2200_v24 = vunpack.i.l.bf16 %v2199_v22  ;;  %2113 = vmatprep.subr.bf16.mxu1 %v2112_v21 }
  0x80   : > { %2115 = vmatpush3.bf16.msra.mxu1 %v2112_v21  ;;  %v2120_v49 = vpack.c.bf16 %v2206_v45, %v2205_v46 }
  0x81   : > { %v2116_v27 = vpack.c.bf16 %v2201_v23, %v2200_v24 }
  0x82   : > { %v2209_v44 = vpop.permute.xlu0 %2208  ;;  %2121 = vmatprep.subr.bf16.mxu0 %v2120_v49 }
  0x83   : > { %2117 = vmatprep.subr.bf16.mxu1 %v2116_v27  ;;  %v2211_v47 = vunpack.i.h.bf16 %v2209_v44  ;;  %v2210_v48 = vunpack.i.l.bf16 %v2209_v44  ;;  %2123 = vmatpush3.bf16.msra.mxu0 %v2120_v49 }
  0x84   : > { %2119 = vmatpush3.bf16.msra.mxu1 %v2116_v27 }
  0x85   : > { %v2124_v50 = vpack.c.bf16 %v2211_v47, %v2210_v48 }
  0x87   : > { %2024 = vmatmul.mubr.msk.f32.vlgmr.msra.gmra.mrb[0].mxu1 %vm539_vm0, %v526_v28  ;;  %2125 = vmatprep.subr.bf16.mxu0 %v2124_v50 }
  0x88   : > { %2127 = vmatpush3.bf16.msra.mxu0 %v2124_v50 }
  0x8b   : > { %2035 = vmatmul.mubr.msk.f32.vlgmr.msra.gmra.mrb[2].mxu0 %vm539_vm0, %v522_v25 }
  0xea   : > { %v2014_v29 = vpop.f32.mrb[0].mxu0 }
  0xeb   : > { %v612_v30 = vpop.f32.mrb[1].mxu0  ;;  %v618_v41 = vadd.f32 %v2014_v29, %v2389_v7 }
  0xec   : > { %v613_v31 = vadd.f32 %v2389_v7, %v612_v30 }
  0xed   : > { %v2436_v42 = vmul.f32 0.35355338, %v618_v41 }
  0xee   : > { %v2417_v32 = vmul.f32 0.35355338, %v613_v31 }
  0xf0   : > { %2041 = vmatprep.mubr.msk.f32.mxu1 %vm825_vm1, %v2417_v32 }
 0x15a   : > { %v2025_v34 = vpop.f32.mrb[0].mxu1 }
 0x15b   : > { %v718_v35 = vadd.f32 %v2025_v34, %v638_v33  ;;  %v712_v36 = vpop.f32.mrb[1].mxu1 }
 0x15c   : > { %v713_v37 = vadd.f32 %v712_v36, %v638_v33 }
 0x15e   : > { %v2128_v39 = vpack.c.bf16 %v718_v35, %v713_v37  ;;  %v2429_v40 = vpack.i.bf16 %v718_v35, %v713_v37  ;;  %v2036_v4 = vpop.f32.mrb[2].mxu0 }
 0x15f   : > { %v808_v5 = vpop.f32.mrb[3].mxu0 }
 0x160   : > { %2130 = vmatprep.subr.msk.bf16.mxu1 %vm2425_vm2, %v2128_v39 }
 0x161   : > { %2133 = vmatpush3.bf16.xpose.msk.msra.mxu1 %vm2425_vm2, %v2128_v39 }
 0x168   : > { %2042 = vmatmul.mubr.msk.f32.vlgmr.msra.gmra.mrb[2].mxu1 %vm825_vm1, %v2436_v42 }
 0x23b   : > { %v2043_v52 = vpop.f32.mrb[2].mxu1 }
 0x23c   : > { %v910_v53 = vadd.f32 %v2043_v52, %v2445_v51  ;;  %v904_v54 = vpop.f32.mrb[3].mxu1 }
 0x23d   : > { %v905_v55 = vadd.f32 %v2445_v51, %v904_v54 }
 0x23e   : > { %v917_v56 = vsel %vm913_vm3, %v910_v53, -inf }
 0x23f   : > { %918 = vmax.xlane.f32.xlu0 %v917_v56  ;;  %v914_v57 = vsel %vm913_vm3, %v905_v55, -inf }
 0x240   : > { %915 = vmax.xlane.f32.xlu1 %v914_v57 }
 0x2cc   : > { %v919_v58 = vpop.xlane.xlu0 %918 }
 0x2cd   : > { %v921_v59 = vsub.f32 %v910_v53, %v919_v58  ;;  %v916_v60 = vpop.xlane.xlu1 %915 }
 0x2ce   : > { %v920_v61 = vsub.f32 %v905_v55, %v916_v60 }
 0x2cf   : > { %v924_v62 = vmul.f32 1.442695, %v921_v59 }
 0x2d0   : > { %v922_v63 = vmul.f32 1.442695, %v920_v61 }
 0x2d1   : > { %2242 = vpow2.f32 %v924_v62 }
 0x2d2   : > { %2244 = vpow2.f32 %v922_v63 }
 0x2db   : > { %v2243_v0 = vpop.eup %2242 }
 0x2dc   : > { %v2245_v1 = vpop.eup %2244  ;;  %v929_v2 = vsel %vm913_vm3, %v2243_v0, 0.0 }
 0x2dd   : > { %930 = vadd.xlane.f32.xlu1 %v929_v2  ;;  %v926_v3 = vsel %vm913_vm3, %v2245_v1, 0.0 }
 0x2de   : > { %927 = vadd.xlane.f32.xlu0 %v926_v3 }
 0x2ee   : > { %2213 = vrot.lane.b32.xlu1 %v2429_v40, %s2288_s26 }
 0x2f2   : > { %1017 = vrot.lane.b32.xlu1 %v2417_v32, %s2288_s26 }
 0x2f4   : > { %733 = vrot.lane.b32.xlu0 %v2389_v7, %s2287_s15  ;;  %s2293_s15 = smov 24  }
 0x2f8   : > { %1019 = vrot.lane.b32.xlu0 %v2436_v42, %s2288_s26 }
 0x36a   : > { %v931_v6 = vpop.xlane.xlu1 %930 }
 0x36b   : > { %2246 = vrcp.f32 %v931_v6  ;;  %v928_v8 = vpop.xlane.xlu0 %927 }
 0x36c   : > { %2248 = vrcp.f32 %v928_v8 }
 0x36e   : > { %v2214_v9 = vpop.permute.xlu1 %2213 }
 0x36f   : > { %v734_v10 = vpop.permute.xlu0 %733  ;;  %v2216_v11 = vunpack.i.h.bf16 %v2214_v9  ;;  %v2215_v12 = vunpack.i.l.bf16 %v2214_v9 }
 0x370   : > { %v809_v13 = vadd.f32 %v808_v5, %v734_v10  ;;  %v814_v14 = vadd.f32 %v2036_v4, %v734_v10 }
 0x371   : > { %v2138_v17 = vpack.c.bf16 %v2216_v11, %v2215_v12 }
 0x372   : > { %v2134_v15 = vpack.c.bf16 %v814_v14, %v809_v13  ;;  %v2461_v16 = vpack.i.bf16 %v814_v14, %v809_v13  ;;  %v1018_v21 = vpop.permute.xlu1 %1017 }
 0x373   : > { %v1020_v22 = vpop.permute.xlu0 %1019 }
 0x374   : > { %2135 = vmatprep.subr.bf16.mxu1 %v2134_v15 }
 0x375   : > { %v2247_v18 = vpop.eup %2246  ;;  %2137 = vmatpush3.bf16.msra.mxu1 %v2134_v15 }
 0x376   : > { %v2249_v7 = vpop.eup %2248  ;;  %2140 = vmatprep.subr.msk.bf16.mxu1 %vm2425_vm2, %v2138_v17  ;;  %v935_v20 = vmul.f32 %v2247_v18, %v2243_v0 }
 0x377   : > { %v934_v19 = vmul.f32 %v2249_v7, %v2245_v1 }
 0x379   : > { %2048 = vmatprep.mubr.msk.f32.mxu1 %vm913_vm3, %v934_v19 }
 0x37a   : > { %2049 = vmatmul.mubr.msk.f32.vlgmr.msra.gmra.mrb[4].mxu1 %vm913_vm3, %v935_v20 }
 0x37b   : > { %2055 = vmatprep.mubr.msk.f32.mxu1 %vm825_vm1, %v1018_v21 }
 0x37e   : > { %2143 = vmatpush3.bf16.xpose.msk.msra.mxu1 %vm2425_vm2, %v2138_v17 }
 0x385   : > { %2056 = vmatmul.mubr.msk.f32.vlgmr.msra.gmra.mrb[6].mxu1 %vm825_vm1, %v1020_v22 }
 0x44d   : > { %v2471_v23 = vpop.f32.mrb[4].mxu1 }
 0x44e   : > { %v2473_v24 = vpop.f32.mrb[5].mxu1 }
 0x458   : > { %v2057_v25 = vpop.f32.mrb[6].mxu1 }
 0x459   : > { %v1105_v26 = vadd.f32 %v2057_v25, %v2445_v51  ;;  %v1099_v27 = vpop.f32.mrb[7].mxu1 }
 0x45a   : > { %v1100_v28 = vadd.f32 %v2445_v51, %v1099_v27 }
 0x45b   : > { %v1111_v29 = vsel %vm913_vm3, %v1105_v26, -inf }
 0x45c   : > { %1112 = vmax.xlane.f32.xlu0 %v1111_v29  ;;  %v1108_v30 = vsel %vm913_vm3, %v1100_v28, -inf }
 0x45d   : > { %1109 = vmax.xlane.f32.xlu1 %v1108_v30 }
 0x4e9   : > { %v1113_v31 = vpop.xlane.xlu0 %1112 }
 0x4ea   : > { %v1115_v33 = vsub.f32 %v1105_v26, %v1113_v31  ;;  %v1110_v34 = vpop.xlane.xlu1 %1109 }
 0x4eb   : > { %v1114_v35 = vsub.f32 %v1100_v28, %v1110_v34 }
 0x4ec   : > { %v1118_v36 = vmul.f32 1.442695, %v1115_v33 }
 0x4ed   : > { %v1116_v37 = vmul.f32 1.442695, %v1114_v35 }
 0x4ee   : > { %2250 = vpow2.f32 %v1118_v36 }
 0x4ef   : > { %2252 = vpow2.f32 %v1116_v37 }
 0x4f8   : > { %v2251_v39 = vpop.eup %2250 }
 0x4f9   : > { %v2253_v41 = vpop.eup %2252  ;;  %v1123_v43 = vsel %vm913_vm3, %v2251_v39, 0.0 }
 0x4fa   : > { %1124 = vadd.xlane.f32.xlu1 %v1123_v43  ;;  %v1120_v44 = vsel %vm913_vm3, %v2253_v41, 0.0 }
 0x4fb   : > { %1121 = vadd.xlane.f32.xlu0 %v1120_v44 }
 0x50b   : > { %2223 = vrot.lane.b32.xlu1 %v2429_v40, %s2289_s20 }
 0x50f   : > { %1219 = vrot.lane.b32.xlu1 %v2417_v32, %s2289_s20 }
 0x511   : > { %2218 = vrot.lane.b32.xlu0 %v2461_v16, %s2288_s26 }
 0x515   : > { %1221 = vrot.lane.b32.xlu0 %v2436_v42, %s2289_s20 }
 0x587   : > { %v1125_v45 = vpop.xlane.xlu1 %1124 }
 0x588   : > { %2254 = vrcp.f32 %v1125_v45  ;;  %v1122_v46 = vpop.xlane.xlu0 %1121 }
 0x589   : > { %2256 = vrcp.f32 %v1122_v46 }
 0x58b   : > { %v2224_v47 = vpop.permute.xlu1 %2223 }
 0x58c   : > { %v2219_v48 = vpop.permute.xlu0 %2218  ;;  %v2226_v49 = vunpack.i.h.bf16 %v2224_v47  ;;  %v2225_v50 = vunpack.i.l.bf16 %v2224_v47 }
 0x58d   : > { %v2221_v52 = vunpack.i.h.bf16 %v2219_v48  ;;  %v2220_v53 = vunpack.i.l.bf16 %v2219_v48 }
 0x58e   : > { %v2148_v55 = vpack.c.bf16 %v2226_v49, %v2225_v50 }
 0x58f   : > { %v2144_v54 = vpack.c.bf16 %v2221_v52, %v2220_v53  ;;  %v1220_v60 = vpop.permute.xlu1 %1219 }
 0x590   : > { %v1222_v61 = vpop.permute.xlu0 %1221 }
 0x591   : > { %2145 = vmatprep.subr.bf16.mxu0 %v2144_v54 }
 0x592   : > { %v2255_v56 = vpop.eup %2254  ;;  %2147 = vmatpush3.bf16.msra.mxu0 %v2144_v54 }
 0x593   : > { %v2257_v57 = vpop.eup %2256  ;;  %2150 = vmatprep.subr.msk.bf16.mxu0 %vm2425_vm2, %v2148_v55  ;;  %v1129_v59 = vmul.f32 %v2255_v56, %v2251_v39 }
 0x594   : > { %v1128_v58 = vmul.f32 %v2257_v57, %v2253_v41 }
 0x596   : > { %2062 = vmatprep.mubr.msk.f32.mxu0 %vm913_vm3, %v1128_v58 }
 0x597   : > { %2063 = vmatmul.mubr.msk.f32.vlgmr.msra.gmra.mrb[4].mxu0 %vm913_vm3, %v1129_v59 }
 0x598   : > { %2069 = vmatprep.mubr.msk.f32.mxu0 %vm825_vm1, %v1220_v60 }
 0x59b   : > { %2153 = vmatpush3.bf16.xpose.msk.msra.mxu0 %vm2425_vm2, %v2148_v55 }
 0x5a2   : > { %2070 = vmatmul.mubr.msk.f32.vlgmr.msra.gmra.mrb[6].mxu0 %vm825_vm1, %v1222_v61 }
 0x66a   : > { %v2497_v62 = vpop.f32.mrb[4].mxu0 }
 0x66b   : > { %v2499_v63 = vpop.f32.mrb[5].mxu0 }
 0x675   : > { %v2071_v0 = vpop.f32.mrb[6].mxu0 }
 0x676   : > { %v1307_v1 = vadd.f32 %v2071_v0, %v2445_v51  ;;  %v1301_v2 = vpop.f32.mrb[7].mxu0  ;;  %v1652_v0 = vld [vmem:[%s2584_s7 + $0x10] sm:$0xff] }
 0x677   : > { %v1302_v3 = vadd.f32 %v2445_v51, %v1301_v2  ;;  %v1653_v2 = vld [vmem:[%s2584_s7 + $0x18] sm:$0xff] }
 0x678   : > { %v1313_v4 = vsel %vm913_vm3, %v1307_v1, -inf }
 0x679   : > { %1314 = vmax.xlane.f32.xlu0 %v1313_v4  ;;  %v1310_v5 = vsel %vm913_vm3, %v1302_v3, -inf }
 0x67a   : > { %1311 = vmax.xlane.f32.xlu1 %v1310_v5 }
 0x706   : > { %v1315_v6 = vpop.xlane.xlu0 %1314 }
 0x707   : > { %v1317_v8 = vsub.f32 %v1307_v1, %v1315_v6  ;;  %v1312_v9 = vpop.xlane.xlu1 %1311 }
 0x708   : > { %v1316_v10 = vsub.f32 %v1302_v3, %v1312_v9  ;;  %v2172_v3 = vpack.c.bf16 %v1653_v2, %v1652_v0 }
 0x709   : > { %v1320_v11 = vmul.f32 1.442695, %v1317_v8 }
 0x70a   : > { %v1318_v12 = vmul.f32 1.442695, %v1316_v10 }
 0x70b   : > { %2258 = vpow2.f32 %v1320_v11 }
 0x70c   : > { %2260 = vpow2.f32 %v1318_v12 }
 0x715   : > { %v2259_v13 = vpop.eup %2258 }
 0x716   : > { %v2261_v14 = vpop.eup %2260  ;;  %v1325_v15 = vsel %vm913_vm3, %v2259_v13, 0.0 }
 0x717   : > { %1326 = vadd.xlane.f32.xlu1 %v1325_v15  ;;  %v1322_v17 = vsel %vm913_vm3, %v2261_v14, 0.0 }
 0x718   : > { %1323 = vadd.xlane.f32.xlu0 %v1322_v17 }
 0x728   : > { %2233 = vrot.lane.b32.xlu1 %v2429_v40, %s2290_s21 }
 0x72c   : > { %1419 = vrot.lane.b32.xlu1 %v2417_v32, %s2290_s21 }
 0x72e   : > { %2228 = vrot.lane.b32.xlu0 %v2461_v16, %s2289_s20 }
 0x732   : > { %1421 = vrot.lane.b32.xlu0 %v2436_v42, %s2290_s21 }
 0x7a4   : > { %v1327_v18 = vpop.xlane.xlu1 %1326 }
 0x7a5   : > { %2262 = vrcp.f32 %v1327_v18  ;;  %v1324_v7 = vpop.xlane.xlu0 %1323 }
 0x7a6   : > { %2264 = vrcp.f32 %v1324_v7 }
 0x7a8   : > { %v2234_v19 = vpop.permute.xlu1 %2233 }
 0x7a9   : > { %v2229_v20 = vpop.permute.xlu0 %2228  ;;  %v2236_v21 = vunpack.i.h.bf16 %v2234_v19  ;;  %v2235_v22 = vunpack.i.l.bf16 %v2234_v19  ;;  %v1936_v19 = vld [vmem:[%s2585_s8] ss:$0 sm:$0xff] }
 0x7aa   : > { %v2231_v25 = vunpack.i.h.bf16 %v2229_v20  ;;  %v2230_v26 = vunpack.i.l.bf16 %v2229_v20 }
 0x7ab   : > { %v2158_v27 = vpack.c.bf16 %v2236_v21, %v2235_v22 }
 0x7ac   : > { %v2154_v40 = vpack.c.bf16 %v2231_v25, %v2230_v26  ;;  %v1420_v30 = vpop.permute.xlu1 %1419 }
 0x7ad   : > { %v1422_v31 = vpop.permute.xlu0 %1421 }
 0x7ae   : > { %2155 = vmatprep.subr.bf16.mxu1 %v2154_v40 }
 0x7af   : > { %v2263_v32 = vpop.eup %2262  ;;  %2157 = vmatpush3.bf16.msra.mxu1 %v2154_v40 }
 0x7b0   : > { %v2265_v28 = vpop.eup %2264  ;;  %2160 = vmatprep.subr.msk.bf16.mxu1 %vm2425_vm2, %v2158_v27  ;;  %v1331_v29 = vmul.f32 %v2263_v32, %v2259_v13 }
 0x7b1   : > { %v1330_v42 = vmul.f32 %v2265_v28, %v2261_v14 }
 0x7b3   : > { %2076 = vmatprep.mubr.msk.f32.mxu1 %vm913_vm3, %v1330_v42 }
 0x7b4   : > { %2077 = vmatmul.mubr.msk.f32.vlgmr.msra.gmra.mrb[8].mxu1 %vm913_vm3, %v1331_v29 }
 0x7b5   : > { %2083 = vmatprep.mubr.msk.f32.mxu1 %vm825_vm1, %v1420_v30 }
 0x7b8   : > { %2163 = vmatpush3.bf16.xpose.msk.msra.mxu1 %vm2425_vm2, %v2158_v27 }
 0x7bf   : > { %2084 = vmatmul.mubr.msk.f32.vlgmr.msra.gmra.mrb[10].mxu1 %vm825_vm1, %v1422_v31 }
 0x887   : > { %v2078_v33 = vpop.f32.mrb[8].mxu1 }
 0x888   : > { %v1410_v34 = vpop.f32.mrb[9].mxu1 }
 0x892   : > { %v2085_v35 = vpop.f32.mrb[10].mxu1 }
 0x893   : > { %v1507_v36 = vadd.f32 %v2085_v35, %v2445_v51  ;;  %v1501_v37 = vpop.f32.mrb[11].mxu1 }
 0x894   : > { %v1502_v39 = vadd.f32 %v2445_v51, %v1501_v37 }
 0x895   : > { %v1513_v41 = vsel %vm913_vm3, %v1507_v36, -inf }
 0x896   : > { %1514 = vmax.xlane.f32.xlu0 %v1513_v41  ;;  %v1510_v43 = vsel %vm913_vm3, %v1502_v39, -inf }
 0x897   : > { %1511 = vmax.xlane.f32.xlu1 %v1510_v43 }
 0x923   : > { %v1515_v44 = vpop.xlane.xlu0 %1514 }
 0x924   : > { %v1517_v38 = vsub.f32 %v1507_v36, %v1515_v44  ;;  %v1512_v45 = vpop.xlane.xlu1 %1511  ;;  %v1939_v44 = vld [vmem:[%s2586_s9] ss:$0 sm:$0xff] }
 0x925   : > { %v1516_v46 = vsub.f32 %v1502_v39, %v1512_v45  ;;  %v1940_v45 = vld [vmem:[%s2587_s10] ss:$0 sm:$0xff] }
 0x926   : > { %v1520_v47 = vmul.f32 1.442695, %v1517_v38 }
 0x927   : > { %v1518_v48 = vmul.f32 1.442695, %v1516_v46 }
 0x928   : > { %2266 = vpow2.f32 %v1520_v47 }
 0x929   : > { %2268 = vpow2.f32 %v1518_v48 }
 0x932   : > { %v2267_v49 = vpop.eup %2266 }
 0x933   : > { %v2269_v50 = vpop.eup %2268  ;;  %v1525_v52 = vsel %vm913_vm3, %v2267_v49, 0.0 }
 0x934   : > { %1526 = vadd.xlane.f32.xlu1 %v1525_v52  ;;  %v1522_v51 = vsel %vm913_vm3, %v2269_v50, 0.0 }
 0x935   : > { %1523 = vadd.xlane.f32.xlu0 %v1522_v51 }
 0x945   : > { %1621 = vrot.lane.b32.xlu1 %v2499_v63, %s2291_s22  ;;  %v1651_v63 = vld [vmem:[%s2584_s7 + $0x8] sm:$0xff] }
 0x949   : > { %1623 = vrot.lane.b32.xlu1 %v2497_v62, %s2291_s22 }
 0x94b   : > { %2238 = vrot.lane.b32.xlu0 %v2461_v16, %s2290_s21  ;;  %v1650_v16 = vld [vmem:[%s2584_s7] sm:$0xff] }
 0x94c   : > { %v2168_v1 = vpack.c.bf16 %v1651_v63, %v1650_v16 }
 0x94d   : > { %1631 = vrot.lane.b32.xlu1 %v2078_v33, %s2292_s23 }
 0x94f   : > { %1629 = vrot.lane.b32.xlu0 %v1410_v34, %s2292_s23 }
 0x9c1   : > { %v1527_v53 = vpop.xlane.xlu1 %1526 }
 0x9c2   : > { %2270 = vrcp.f32 %v1527_v53  ;;  %v1524_v54 = vpop.xlane.xlu0 %1523 }
 0x9c3   : > { %2272 = vrcp.f32 %v1524_v54 }
 0x9c5   : > { %v1622_v6 = vpop.permute.xlu1 %1621 }
 0x9c6   : > { %v2239_v55 = vpop.permute.xlu0 %2238  ;;  %v1643_v11 = vsel %vm825_vm1, %v2473_v24, %v1622_v6 }
 0x9c7   : > { %v2241_v56 = vunpack.i.h.bf16 %v2239_v55  ;;  %v2240_v57 = vunpack.i.l.bf16 %v2239_v55 }
 0x9c9   : > { %v2164_v58 = vpack.c.bf16 %v2241_v56, %v2240_v57  ;;  %v1624_v8 = vpop.permute.xlu1 %1623 }
 0x9ca   : > { %v1630_v10 = vpop.permute.xlu0 %1629  ;;  %v1644_v13 = vsel %vm825_vm1, %v2471_v23, %v1624_v8 }
 0x9cb   : > { %2165 = vmatprep.subr.bf16.mxu0 %v2164_v58  ;;  %v1645_v14 = vsel %vm913_vm3, %v1643_v11, %v1630_v10 }
 0x9cc   : > { %v2271_v59 = vpop.eup %2270  ;;  %2167 = vmatpush3.bf16.msra.mxu0 %v2164_v58 }
 0x9cd   : > { %v2273_v60 = vpop.eup %2272  ;;  %v1531_v62 = vmul.f32 %v2271_v59, %v2267_v49  ;;  %2169 = vmatprep.subr.bf16.mxu0 %v2168_v1  ;;  %v1632_v9 = vpop.permute.xlu1 %1631 }
 0x9ce   : > { %v1530_v61 = vmul.f32 %v2273_v60, %v2269_v50  ;;  %v1646_v17 = vsel %vm913_vm3, %v1644_v13, %v1632_v9 }
 0x9d0   : > { %2090 = vmatprep.mubr.msk.f32.mxu0 %vm913_vm3, %v1530_v61 }
 0x9d1   : > { %2091 = vmatmul.mubr.msk.f32.vlgmr.msra.gmra.mrb[8].mxu0 %vm913_vm3, %v1531_v62 }
 0x9d2   : > { %2171 = vmatpush3.bf16.msra.mxu0 %v2168_v1 }
 0x9d3   : > { %2173 = vmatprep.subr.bf16.mxu0 %v2172_v3 }
 0x9d6   : > { %2175 = vmatpush3.bf16.msra.mxu0 %v2172_v3 }
 0xaa4   : > { %v2092_v4 = vpop.f32.mrb[8].mxu0 }
 0xaa5   : > { %1639 = vrot.lane.b32.xlu1 %v2092_v4, %s2293_s15  ;;  %v1610_v5 = vpop.f32.mrb[9].mxu0 }
 0xaa6   : > { %1637 = vrot.lane.b32.xlu0 %v1610_v5, %s2293_s15 }
 0xb17   : > { %v1640_v12 = vpop.permute.xlu1 %1639 }
 0xb18   : > { %v1638_v15 = vpop.permute.xlu0 %1637  ;;  %v1649_v7 = vsel %vm1647_vm4, %v1646_v17, %v1640_v12 }
 0xb19   : > { %v1648_v18 = vsel %vm1647_vm4, %v1645_v14, %v1638_v15 }
 0xb1a   : > { %2101 = vmatprep.mubr.msk.f32.mxu0 %vm539_vm0, %v1648_v18 }
 0xb1b   : > { %2102 = vmatmul.mubr.msk.f32.vlgmr.msra.gmra.mrb[10].mxu0 %vm539_vm0, %v1649_v7 }
 0xbee   : > { %v2103_v24 = vpop.f32.mrb[10].mxu0 }
 0xbef   : > { %v1739_v20 = vadd.f32 %v2103_v24, %v1936_v19  ;;  %v1733_v21 = vpop.f32.mrb[11].mxu0 }
 0xbf0   : > { %v1734_v22 = vadd.f32 %v1936_v19, %v1733_v21 }
 0xbf1   : > { %v1747_v23 = vsel %vm539_vm0, %v1739_v20, 0.0 }
 0xbf2   : > { %1748 = vadd.xlane.f32.xlu1 %v1747_v23  ;;  %v1744_v25 = vsel %vm539_vm0, %v1734_v22, 0.0 }
 0xbf3   : > { %1745 = vadd.xlane.f32.xlu0 %v1744_v25 }
 0xc7f   : > { %v1749_v26 = vpop.xlane.xlu1 %1748 }
 0xc80   : > { %v1752_v40 = vmul.f32 0.03125, %v1749_v26  ;;  %v1746_v27 = vpop.xlane.xlu0 %1745 }
 0xc81   : > { %v1751_v32 = vmul.f32 0.03125, %v1746_v27 }
 0xc82   : > { %v1754_v28 = vsub.f32 %v1739_v20, %v1752_v40 }
 0xc83   : > { %v1753_v42 = vsub.f32 %v1734_v22, %v1751_v32 }
 0xc84   : > { %v1756_v31 = vmul.f32 %v1754_v28, %v1754_v28 }
 0xc85   : > { %v1755_v29 = vmul.f32 %v1753_v42, %v1753_v42 }
 0xc86   : > { %v1760_v33 = vsel %vm539_vm0, %v1756_v31, 0.0 }
 0xc87   : > { %v1757_v30 = vsel %vm539_vm0, %v1755_v29, 0.0 }
 0xc88   : > { %1758 = vadd.xlane.f32.xlu0 %v1757_v30 }
 0xc8c   : > { %1761 = vadd.xlane.f32.xlu0 %v1760_v33 }
 0xd15   : > { %v1759_v34 = vpop.xlane.xlu0 %1758 }
 0xd16   : > { %v1763_v35 = vmul.f32 0.03125, %v1759_v34 }
 0xd18   : > { %v1765_v36 = vadd.f32 1e-05, %v1763_v35 }
 0xd19   : > { %v1762_v37 = vpop.xlane.xlu0 %1761 }
 0xd1a   : > { %2274 = vrsqrt.f32 %v1765_v36  ;;  %v1764_v39 = vmul.f32 0.03125, %v1762_v37 }
 0xd1c   : > { %v1766_v41 = vadd.f32 1e-05, %v1764_v39 }
 0xd1e   : > { %2276 = vrsqrt.f32 %v1766_v41 }
 0xd24   : > { %v2275_v43 = vpop.eup %2274 }
 0xd25   : > { %v1769_v38 = vmul.f32 %v2275_v43, %v1753_v42 }
 0xd27   : > { %v1777_v46 = vmul.f32 %v1939_v44, %v1769_v38 }
 0xd28   : > { %v2277_v47 = vpop.eup %2276 }
 0xd29   : > { %v1785_v48 = vadd.f32 %v1940_v45, %v1777_v46  ;;  %v1770_v49 = vmul.f32 %v2277_v47, %v1754_v28 }
 0xd2b   : > { %1787 = vst.msk [vmem:[%s514_s24] sm:$0xff] %vm539_vm0, %v1785_v48  ;;  %v1778_v50 = vmul.f32 %v1939_v44, %v1770_v49 }
 0xd2d   : > { %v1786_v52 = vadd.f32 %v1940_v45, %v1778_v50 }
 0xd2f   : > { %1788 = vst.msk [vmem:[%s514_s24 + $0x8] sm:$0xff] %vm539_vm0, %v1786_v52 }
 0xd30 PF: > { %s23_s25 = sadd.s32 1, %s2284_s25  }
 0xd31   : > { %p20_p4 = scmp.ge.s32.totalorder %s23_s25, 4  }
 0xd33   :  { %22 = sbr.rel (!%p20_p4) target bundleno = 1 (0x1), region = 114 }

// kernel: transformer_forward.14
= control target key start
LH: loop header
LB: loop body
LE: loop exit
PB: predicated region body
PF: predicated region fallthrough
CT: control target
= control target key end

     0   :  { %s2173_s25 = smov 0   ;;  %s2375_s0 = inlined_call_operand.vmem [shape: f32[2,8,32], index: 0, kind: input, shape index: {}]   ;;  %s2376_s1 = inlined_call_operand.vmem [shape: f32[2,8,32], index: 1, kind: input, shape index: {}]   ;;  %s2377_s2 = inlined_call_operand.vmem [shape: f32[2,16,32], index: 2, kind: input, shape index: {}]   ;;  %s2378_s3 = inlined_call_operand.vmem [shape: f32[2,16,32], index: 3, kind: input, shape index: {}]   ;;  %s2379_s4 = inlined_call_operand.vmem [shape: f32[2,1,16], index: 4, kind: input, shape index: {}]   ;;  %s2380_s5 = inlined_call_operand.vmem [shape: f32[32,96], index: 5, kind: input, shape index: {}]   ;;  %s2381_s6 = inlined_call_operand.vmem [shape: f32[1,96], index: 6, kind: input, shape index: {}]   ;;  %s2382_s7 = inlined_call_operand.vmem [shape: f32[32,32], index: 7, kind: input, shape index: {}]   ;;  %s2383_s8 = inlined_call_operand.vmem [shape: f32[1,32], index: 8, kind: input, shape index: {}]   ;;  %s2384_s9 = inlined_call_operand.vmem [shape: f32[1,32], index: 9, kind: input, shape index: {}]   ;;  %s2385_s10 = inlined_call_operand.vmem [shape: f32[1,32], index: 10, kind: input, shape index: {}]   ;;  %s2386_s11 = inlined_call_operand.vmem [shape: f32[1,32], index: 11, kind: input, shape index: {}]   ;;  %s2387_s12 = inlined_call_operand.vmem [shape: f32[1,32], index: 12, kind: input, shape index: {}]   ;;  %s2388_s13 = inlined_call_operand.vmem [shape: f32[2,8,32], index: 13, kind: output, shape index: {}]  }
   0x1 LB: > { %s1748_s26 = sadd.s32 4294967295, %s2090_s25   ;;  %p1752_p0 = scmp.ge.s32.totalorder %s2090_s25, 1  ;;  %s2090_s25 = sphi %s2173_s25, %s23_s25  }
   0x2   : > { %p423_p1 = scmp.lt.s32.totalorder %s2090_s25, 3 }
   0x4   : > { %p424_p2 = pnand %p1752_p0, %p423_p1 }
   0x5   : > { %v517_v0 = vld [vmem:[%s2380_s5] sm:$0xff] (!%p424_p2)  ;;  %v518_v1 = vld [vmem:[%s2380_s5 + $0x8] sm:$0xff] (!%p424_p2)  ;;  %v519_v2 = vld [vmem:[%s2380_s5 + $0x10] sm:$0xff] (!%p424_p2)  ;;  %p482_p3 = scmp.lt.s32.totalorder (!%p424_p2), %s1748_s26, 1  ;;  %v2092_v5 = vmov (!%p424_p2), 0.0|0.0   ;;  %s2093_s20 = smov (!%p424_p2), 96  }
   0x6   : > { %427 = sbr.rel (%p424_p2) target bundleno = 3674 (0xe5a), region = 72  ;;  %v2014_v3 = vpack.i.bf16 (!%p424_p2), %v518_v1, %v517_v0  ;;  %v520_v4 = vld [vmem:[%s2380_s5 + $0x18] sm:$0xff] (!%p424_p2)  ;;  %1939 = vmatprep.subr.bf16.mxu0 (!%p424_p2), %v2092_v5  ;;  %v1940_v6 = vpack.c.bf16 (!%p424_p2), %v518_v1, %v517_v0  ;;  %v2199_v7 = vld [vmem:[%s2381_s6] ss:$0 sm:$0xff] (!%p424_p2)  ;;  %vm2094_vm0 = vmmov (!%p424_p2), 0   ;;  %v2095_v10 = vmov (!%p424_p2), 0.0  }
   0x7   : > { %v2019_v8 = vpack.i.bf16 (!%p424_p2), %v520_v4, %v519_v2  ;;  %v1943_v9 = vpack.c.bf16 (!%p424_p2), %v520_v4, %v519_v2  ;;  %1847 = vmatprep.mubr.msk.f32.mxu0 (!%p424_p2), %vm2094_vm0, %v2095_v10  ;;  %618 = vrot.lane.b32.xlu1 (!%p424_p2), %v2199_v7, %s2093_s20  ;;  %vm528_vm1 = vcmask (!%p424_p2), 261120   ;;  %vm805_vm2 = vcmask (!%p424_p2), 64512   ;;  %s2099_s28 = smov (!%p424_p2), 104   ;;  %s2100_s29 = smov (!%p424_p2), 16  }
   0x8   : > { %2015 = vrot.lane.b32.xlu0 (!%p424_p2), %v2014_v3, %s2093_s20  ;;  %1941 = vmatpush3.bf16.msra.mxu0 (!%p424_p2), %v1940_v6  ;;  %vm2237_vm3 = vmpackc.low (!%p424_p2), %vm805_vm2, %vm805_vm2  ;;  %vm885_vm4 = vcmask (!%p424_p2), 130048   ;;  %s2102_s23 = smov (!%p424_p2), 24   ;;  %vm1502_vm5 = vcmask (!%p424_p2), 195584  }
   0x9   : > { %1942 = vmatprep.subr.bf16.mxu0 (!%p424_p2), %v2092_v5 }
   0xc   : > { %2020 = vrot.lane.b32.xlu0 (!%p424_p2), %v2019_v8, %s2093_s20  ;;  %1944 = vmatpush3.bf16.msra.mxu0 (!%p424_p2), %v1943_v9  ;;  %s2096_s20 = smov (!%p424_p2), 64  }
   0xd   : > { %s2392_s26 = smov (!%p482_p3, %s1748_s26), 1  ;;  %2025 = vrot.lane.b32.xlu1 %v2014_v3, %s2096_s20 }
   0xe   : > { %s1791_s21 = sshll.u32 %s2392_s26, 4  ;;  %s2206_s22 = sshll.u32 %s2392_s26, 3 }
   0xf   : > { %s494_s27 = scalar_lea.vmem %s2377_s2, %s1791_s21  ;;  %s499_s30 = scalar_lea.vmem %s2378_s3, %s1791_s21 }
  0x10   : > { %v510_v11 = vld [vmem:[%s494_s27] sm:$0xff]  ;;  %s485_s16 = scalar_lea.vmem %s2375_s0, %s2206_s22  ;;  %s489_s19 = scalar_lea.vmem %s2376_s1, %s2206_s22  ;;  %v511_v24 = vld [vmem:[%s494_s27 + $0x8] sm:$0xff]  ;;  %2030 = vrot.lane.b32.xlu0 %v2019_v8, %s2096_s20 }
  0x11   : > { %v512_v12 = vld [vmem:[%s499_s30] sm:$0xff]  ;;  %v513_v25 = vld [vmem:[%s499_s30 + $0x8] sm:$0xff]  ;;  %s502_s24 = scalar_lea.vmem %s2379_s4, %s2392_s26  ;;  %s2097_s27 = smov 120  }
  0x12   : > { %v514_v13 = vadd.f32 %v512_v12, %v510_v11  ;;  %v2223_v14 = vld [vmem:[%s485_s16] sm:$0xff]  ;;  %v515_v27 = vadd.f32 %v513_v25, %v511_v24  ;;  %s2098_s26 = smov 112   ;;  %s2101_s30 = smov 8  }
  0x13   : > { %v508_v15 = vld [vmem:[%s489_s19] sm:$0xff] }
  0x14   : > { %v509_v16 = vadd.f32 %v508_v15, %v2223_v14  ;;  %1858 = vmatprep.mubr.msk.f32.mxu1 %vm528_vm1, %v514_v13  ;;  %v2261_v48 = vld [vmem:[%s502_s24] ss:$0 sm:$0xff] }
  0x16   : > { %1848 = vmatmul.mubr.msk.f32.vlgmr.msra.gmra.mrb[0].mxu0 %vm528_vm1, %v509_v16 }
  0x17   : > { %1869 = vmatprep.mubr.msk.f32.mxu0 %vm528_vm1, %v510_v11 }
  0x79   : > { %v619_v30 = vpop.permute.xlu1 %618 }
  0x7a   : > { %v2016_v17 = vpop.permute.xlu0 %2015 }
  0x7b   : > { %v2018_v18 = vunpack.i.h.bf16 %v2016_v17  ;;  %v2017_v19 = vunpack.i.l.bf16 %v2016_v17 }
  0x7d   : > { %v1945_v20 = vpack.c.bf16 %v2018_v18, %v2017_v19 }
  0x7e   : > { %v2021_v21 = vpop.permute.xlu0 %2020 }
  0x7f   : > { %v2023_v22 = vunpack.i.h.bf16 %v2021_v21  ;;  %v2022_v23 = vunpack.i.l.bf16 %v2021_v21  ;;  %1946 = vmatprep.subr.bf16.mxu1 %v1945_v20  ;;  %v2026_v40 = vpop.permute.xlu1 %2025 }
  0x80   : > { %1948 = vmatpush3.bf16.msra.mxu1 %v1945_v20  ;;  %v2028_v42 = vunpack.i.h.bf16 %v2026_v40  ;;  %v2027_v43 = vunpack.i.l.bf16 %v2026_v40 }
  0x81   : > { %v1949_v26 = vpack.c.bf16 %v2023_v22, %v2022_v23 }
  0x82   : > { %v2031_v41 = vpop.permute.xlu0 %2030  ;;  %v1953_v46 = vpack.c.bf16 %v2028_v42, %v2027_v43 }
  0x83   : > { %1950 = vmatprep.subr.bf16.mxu1 %v1949_v26  ;;  %v2033_v44 = vunpack.i.h.bf16 %v2031_v41  ;;  %v2032_v45 = vunpack.i.l.bf16 %v2031_v41 }
  0x84   : > { %1952 = vmatpush3.bf16.msra.mxu1 %v1949_v26  ;;  %1954 = vmatprep.subr.bf16.mxu0 %v1953_v46 }
  0x85   : > { %1961 = vmatprep.subr.bf16.mxu1 %v2092_v5  ;;  %v1957_v47 = vpack.c.bf16 %v2033_v44, %v2032_v45  ;;  %1956 = vmatpush3.bf16.msra.mxu0 %v1953_v46 }
  0x87   : > { %1859 = vmatmul.mubr.msk.f32.vlgmr.msra.gmra.mrb[0].mxu1 %vm528_vm1, %v515_v27  ;;  %1958 = vmatprep.subr.bf16.mxu0 %v1957_v47 }
  0x88   : > { %1876 = vmatprep.mubr.msk.f32.mxu1 %vm2094_vm0, %v2095_v10 }
  0x89   : > { %1960 = vmatpush3.bf16.msra.mxu0 %v1957_v47 }
  0x8a   : > { %1972 = vmatprep.subr.bf16.mxu0 %v2092_v5 }
  0x8c   : > { %1870 = vmatmul.mubr.msk.f32.vlgmr.msra.gmra.mrb[2].mxu0 %vm528_vm1, %v511_v24 }
  0x8d   : > { %1897 = vmatprep.mubr.msk.f32.mxu0 %vm2094_vm0, %v2095_v10 }
  0xe9   : > { %v598_v28 = vpop.f32.mrb[0].mxu0 }
  0xea   : > { %v1849_v29 = vpop.f32.mrb[1].mxu0  ;;  %v599_v38 = vadd.f32 %v2199_v7, %v598_v28 }
  0xec   : > { %v2247_v39 = vmul.f32 0.35355338, %v599_v38 }
 0x15a   : > { %v1860_v31 = vpop.f32.mrb[0].mxu1 }
 0x15b   : > { %v699_v32 = vadd.f32 %v1860_v31, %v619_v30  ;;  %v693_v33 = vpop.f32.mrb[1].mxu1 }
 0x15c   : > { %v694_v34 = vadd.f32 %v693_v33, %v619_v30 }
 0x15e   : > { %v1962_v36 = vpack.c.bf16 %v699_v32, %v694_v34  ;;  %v2241_v37 = vpack.i.bf16 %v699_v32, %v694_v34 }
 0x15f   : > { %v1871_v58 = vpop.f32.mrb[2].mxu0 }
 0x160   : > { %1964 = vmatpush3.bf16.xpose.msk.msra.mxu1 %vm2237_vm3, %v1962_v36  ;;  %v789_v59 = vpop.f32.mrb[3].mxu0 }
 0x161   : > { %1965 = vmatprep.subr.bf16.mxu1 %v2092_v5 }
 0x167   : > { %1877 = vmatmul.mubr.msk.f32.vlgmr.msra.gmra.mrb[2].mxu1 %vm805_vm2, %v2247_v39 }
 0x168   : > { %1883 = vmatprep.mubr.msk.f32.mxu1 %vm2094_vm0, %v2095_v10 }
 0x23a   : > { %v881_v49 = vpop.f32.mrb[2].mxu1 }
 0x23b   : > { %v882_v50 = vadd.f32 %v2261_v48, %v881_v49  ;;  %v1878_v51 = vpop.f32.mrb[3].mxu1 }
 0x23d   : > { %v886_v52 = vsel %vm885_vm4, %v882_v50, -inf }
 0x23e   : > { %887 = vmax.xlane.f32.xlu1 %v886_v52 }
 0x24f   : > { %2035 = vrot.lane.b32.xlu1 %v2241_v37, %s2097_s27 }
 0x253   : > { %970 = vrot.lane.b32.xlu1 %v2247_v39, %s2097_s27 }
 0x2cb   : > { %v888_v53 = vpop.xlane.xlu1 %887 }
 0x2cc   : > { %v889_v54 = vsub.f32 %v882_v50, %v888_v53 }
 0x2ce   : > { %v890_v55 = vmul.f32 1.442695, %v889_v54 }
 0x2cf   : > { %v2036_v2 = vpop.permute.xlu1 %2035 }
 0x2d0   : > { %2064 = vpow2.f32 %v890_v55  ;;  %v2038_v4 = vunpack.i.h.bf16 %v2036_v2  ;;  %v2037_v6 = vunpack.i.l.bf16 %v2036_v2 }
 0x2d3   : > { %v971_v9 = vpop.permute.xlu1 %970 }
 0x2da   : > { %v2065_v56 = vpop.eup %2064 }
 0x2db   : > { %v892_v57 = vsel %vm885_vm4, %v2065_v56, 0.0 }
 0x2dc   : > { %893 = vadd.xlane.f32.xlu0 %v892_v57 }
 0x2f2   : > { %714 = vrot.lane.b32.xlu0 %v2199_v7, %s2096_s20  ;;  %v1969_v7 = vpack.c.bf16 %v2038_v4, %v2037_v6  ;;  %s506_s20 = scalar_lea.vmem %s2388_s13, %s2206_s22 }
 0x369   : > { %v894_v60 = vpop.xlane.xlu0 %893 }
 0x36a   : > { %2066 = vrcp.f32 %v894_v60 }
 0x36d   : > { %v715_v61 = vpop.permute.xlu0 %714 }
 0x36e   : > { %v790_v62 = vadd.f32 %v789_v59, %v715_v61  ;;  %v795_v63 = vadd.f32 %v1871_v58, %v715_v61 }
 0x370   : > { %v1966_v0 = vpack.c.bf16 %v795_v63, %v790_v62  ;;  %v2272_v1 = vpack.i.bf16 %v795_v63, %v790_v62 }
 0x372   : > { %1967 = vmatpush3.bf16.msra.mxu1 %v1966_v0 }
 0x373   : > { %1968 = vmatprep.subr.bf16.mxu1 %v2092_v5 }
 0x374   : > { %v2067_v3 = vpop.eup %2066 }
 0x375   : > { %v896_v8 = vmul.f32 %v2067_v3, %v2065_v56 }
 0x377   : > { %1884 = vmatmul.mubr.msk.f32.vlgmr.msra.gmra.mrb[4].mxu1 %vm885_vm4, %v896_v8 }
 0x378   : > { %1890 = vmatprep.mubr.msk.f32.mxu1 %vm2094_vm0, %v2095_v10 }
 0x37b   : > { %1971 = vmatpush3.bf16.xpose.msk.msra.mxu1 %vm2237_vm3, %v1969_v7 }
 0x37c   : > { %1979 = vmatprep.subr.bf16.mxu1 %v2092_v5 }
 0x382   : > { %1891 = vmatmul.mubr.msk.f32.vlgmr.msra.gmra.mrb[6].mxu1 %vm805_vm2, %v971_v9 }
 0x383   : > { %1911 = vmatprep.mubr.msk.f32.mxu1 %vm2094_vm0, %v2095_v10 }
 0x44a   : > { %v2284_v11 = vpop.f32.mrb[4].mxu1 }
 0x44b   : > { %v1885_v12 = vpop.f32.mrb[5].mxu1 }
 0x455   : > { %v1048_v13 = vpop.f32.mrb[6].mxu1 }
 0x456   : > { %v1049_v15 = vadd.f32 %v2261_v48, %v1048_v13  ;;  %v1892_v16 = vpop.f32.mrb[7].mxu1 }
 0x457   : > { %v1504_v16 = vld [vmem:[%s2382_s7] sm:$0xff] }
 0x458   : > { %v1052_v17 = vsel %vm885_vm4, %v1049_v15, -inf }
 0x459   : > { %1053 = vmax.xlane.f32.xlu0 %v1052_v17  ;;  %v1505_v17 = vld [vmem:[%s2382_s7 + $0x8] sm:$0xff] }
 0x46f   : > { %2040 = vrot.lane.b32.xlu0 %v2272_v1, %s2097_s27 }
 0x473   : > { %1144 = vrot.lane.b32.xlu0 %v2247_v39, %s2098_s26 }
 0x4e6   : > { %v1054_v18 = vpop.xlane.xlu0 %1053 }
 0x4e7   : > { %v1055_v19 = vsub.f32 %v1049_v15, %v1054_v18  ;;  %v1506_v18 = vld [vmem:[%s2382_s7 + $0x10] sm:$0xff] }
 0x4e9   : > { %v1056_v20 = vmul.f32 1.442695, %v1055_v19  ;;  %v1990_v19 = vpack.c.bf16 %v1505_v17, %v1504_v16 }
 0x4ea   : > { %v2041_v21 = vpop.permute.xlu0 %2040 }
 0x4eb   : > { %2068 = vpow2.f32 %v1056_v20  ;;  %v2043_v22 = vunpack.i.h.bf16 %v2041_v21  ;;  %v2042_v23 = vunpack.i.l.bf16 %v2041_v21  ;;  %v1507_v20 = vld [vmem:[%s2382_s7 + $0x18] sm:$0xff] }
 0x4ec   : > { %v1993_v21 = vpack.c.bf16 %v1507_v20, %v1506_v18 }
 0x4ed   : > { %v1973_v24 = vpack.c.bf16 %v2043_v22, %v2042_v23 }
 0x4ee   : > { %v1145_v34 = vpop.permute.xlu0 %1144 }
 0x4ef   : > { %1974 = vmatpush3.bf16.msra.mxu0 %v1973_v24 }
 0x4f0   : > { %1975 = vmatprep.subr.bf16.mxu0 %v2092_v5 }
 0x4f5   : > { %v2069_v25 = vpop.eup %2068 }
 0x4f6   : > { %v1058_v26 = vsel %vm885_vm4, %v2069_v25, 0.0 }
 0x4f7   : > { %1059 = vadd.xlane.f32.xlu1 %v1058_v26 }
 0x508   : > { %2045 = vrot.lane.b32.xlu1 %v2241_v37, %s2098_s26 }
 0x584   : > { %v1060_v27 = vpop.xlane.xlu1 %1059 }
 0x585   : > { %2070 = vrcp.f32 %v1060_v27 }
 0x588   : > { %v2046_v28 = vpop.permute.xlu1 %2045 }
 0x589   : > { %v2048_v29 = vunpack.i.h.bf16 %v2046_v28  ;;  %v2047_v30 = vunpack.i.l.bf16 %v2046_v28 }
 0x58b   : > { %v1976_v33 = vpack.c.bf16 %v2048_v29, %v2047_v30 }
 0x58f   : > { %v2071_v31 = vpop.eup %2070 }
 0x590   : > { %v1062_v32 = vmul.f32 %v2071_v31, %v2069_v25 }
 0x592   : > { %1898 = vmatmul.mubr.msk.f32.vlgmr.msra.gmra.mrb[4].mxu0 %vm885_vm4, %v1062_v32 }
 0x593   : > { %1978 = vmatpush3.bf16.xpose.msk.msra.mxu0 %vm2237_vm3, %v1976_v33  ;;  %1904 = vmatprep.mubr.msk.f32.mxu0 %vm2094_vm0, %v2095_v10 }
 0x594   : > { %1986 = vmatprep.subr.bf16.mxu0 %v2092_v5 }
 0x59a   : > { %1905 = vmatmul.mubr.msk.f32.vlgmr.msra.gmra.mrb[6].mxu0 %vm805_vm2, %v1145_v34 }
 0x59b   : > { %1925 = vmatprep.mubr.msk.f32.mxu0 %vm2094_vm0, %v2095_v10 }
 0x665   : > { %v1140_v36 = vpop.f32.mrb[4].mxu0 }
 0x666   : > { %v1899_v38 = vpop.f32.mrb[5].mxu0 }
 0x66d   : > { %v1222_v40 = vpop.f32.mrb[6].mxu0 }
 0x66e   : > { %v1223_v41 = vadd.f32 %v2261_v48, %v1222_v40  ;;  %v1906_v42 = vpop.f32.mrb[7].mxu0 }
 0x670   : > { %v1226_v43 = vsel %vm885_vm4, %v1223_v41, -inf }
 0x671   : > { %1227 = vmax.xlane.f32.xlu1 %v1226_v43 }
 0x682   : > { %2055 = vrot.lane.b32.xlu1 %v2241_v37, %s2099_s28 }
 0x686   : > { %1316 = vrot.lane.b32.xlu1 %v2247_v39, %s2099_s28 }
 0x6fe   : > { %v1228_v44 = vpop.xlane.xlu1 %1227 }
 0x6ff   : > { %v1229_v45 = vsub.f32 %v1223_v41, %v1228_v44 }
 0x701   : > { %v1230_v46 = vmul.f32 1.442695, %v1229_v45  ;;  %v1785_v45 = vld [vmem:[%s2384_s9] ss:$0 sm:$0xff] }
 0x702   : > { %v2056_v54 = vpop.permute.xlu1 %2055 }
 0x703   : > { %2072 = vpow2.f32 %v1230_v46  ;;  %v2058_v55 = vunpack.i.h.bf16 %v2056_v54  ;;  %v2057_v56 = vunpack.i.l.bf16 %v2056_v54  ;;  %v1786_v46 = vld [vmem:[%s2385_s10] ss:$0 sm:$0xff] }
 0x705   : > { %v1983_v58 = vpack.c.bf16 %v2058_v55, %v2057_v56 }
 0x706   : > { %v1317_v59 = vpop.permute.xlu1 %1316 }
 0x70d   : > { %v2073_v47 = vpop.eup %2072 }
 0x70e   : > { %v1232_v49 = vsel %vm885_vm4, %v2073_v47, 0.0 }
 0x70f   : > { %1233 = vadd.xlane.f32.xlu0 %v1232_v49 }
 0x725   : > { %2050 = vrot.lane.b32.xlu0 %v2272_v1, %s2098_s26 }
 0x79c   : > { %v1234_v50 = vpop.xlane.xlu0 %1233 }
 0x79d   : > { %2074 = vrcp.f32 %v1234_v50 }
 0x7a0   : > { %v2051_v51 = vpop.permute.xlu0 %2050 }
 0x7a1   : > { %v2053_v52 = vunpack.i.h.bf16 %v2051_v51  ;;  %v2052_v53 = vunpack.i.l.bf16 %v2051_v51 }
 0x7a3   : > { %v1980_v37 = vpack.c.bf16 %v2053_v52, %v2052_v53 }
 0x7a5   : > { %1981 = vmatpush3.bf16.msra.mxu1 %v1980_v37 }
 0x7a6   : > { %1982 = vmatprep.subr.bf16.mxu1 %v2092_v5 }
 0x7a7   : > { %v2075_v39 = vpop.eup %2074 }
 0x7a8   : > { %v1236_v57 = vmul.f32 %v2075_v39, %v2073_v47 }
 0x7aa   : > { %1912 = vmatmul.mubr.msk.f32.vlgmr.msra.gmra.mrb[8].mxu1 %vm885_vm4, %v1236_v57 }
 0x7ab   : > { %1918 = vmatprep.mubr.msk.f32.mxu1 %vm2094_vm0, %v2095_v10 }
 0x7ae   : > { %1985 = vmatpush3.bf16.xpose.msk.msra.mxu1 %vm2237_vm3, %v1983_v58 }
 0x7b5   : > { %1919 = vmatmul.mubr.msk.f32.vlgmr.msra.gmra.mrb[10].mxu1 %vm805_vm2, %v1317_v59  ;;  %v1787_v59 = vld [vmem:[%s2386_s11] ss:$0 sm:$0xff] }
 0x87d   : > { %v1312_v60 = vpop.f32.mrb[8].mxu1 }
 0x87e   : > { %v1913_v61 = vpop.f32.mrb[9].mxu1 }
 0x87f   : > { %v1788_v61 = vld [vmem:[%s2387_s12] ss:$0 sm:$0xff] }
 0x888   : > { %v1394_v62 = vpop.f32.mrb[10].mxu1 }
 0x889   : > { %v1395_v63 = vadd.f32 %v2261_v48, %v1394_v62  ;;  %v1920_v0 = vpop.f32.mrb[11].mxu1 }
 0x88b   : > { %v1398_v2 = vsel %vm885_vm4, %v1395_v63, -inf }
 0x88c   : > { %1399 = vmax.xlane.f32.xlu0 %v1398_v2 }
 0x8a2   : > { %2060 = vrot.lane.b32.xlu0 %v2272_v1, %s2099_s28 }
 0x8a6   : > { %1493 = vrot.lane.b32.xlu0 %v1312_v60, %s2100_s29 }
 0x919   : > { %v1400_v3 = vpop.xlane.xlu0 %1399 }
 0x91a   : > { %v1401_v35 = vsub.f32 %v1395_v63, %v1400_v3 }
 0x91c   : > { %v1402_v4 = vmul.f32 1.442695, %v1401_v35 }
 0x91d   : > { %v2061_v6 = vpop.permute.xlu0 %2060 }
 0x91e   : > { %2076 = vpow2.f32 %v1402_v4  ;;  %v2063_v8 = vunpack.i.h.bf16 %v2061_v6  ;;  %v2062_v7 = vunpack.i.l.bf16 %v2061_v6 }
 0x920   : > { %v1987_v9 = vpack.c.bf16 %v2063_v8, %v2062_v7 }
 0x921   : > { %v1494_v25 = vpop.permute.xlu0 %1493 }
 0x922   : > { %1988 = vmatpush3.bf16.msra.mxu0 %v1987_v9 }
 0x923   : > { %1989 = vmatprep.subr.bf16.mxu0 %v2092_v5 }
 0x928   : > { %v2077_v48 = vpop.eup %2076 }
 0x929   : > { %v1404_v12 = vsel %vm885_vm4, %v2077_v48, 0.0 }
 0x92a   : > { %1405 = vadd.xlane.f32.xlu1 %v1404_v12 }
 0x93b   : > { %1489 = vrot.lane.b32.xlu1 %v1140_v36, %s2101_s30 }
 0x9b7   : > { %v1406_v1 = vpop.xlane.xlu1 %1405 }
 0x9b8   : > { %2078 = vrcp.f32 %v1406_v1 }
 0x9bb   : > { %v1490_v23 = vpop.permute.xlu1 %1489 }
 0x9bc   : > { %v1500_v24 = vsel %vm805_vm2, %v2284_v11, %v1490_v23 }
 0x9bd   : > { %v1501_v26 = vsel %vm885_vm4, %v1500_v24, %v1494_v25 }
 0x9c2   : > { %v2079_v13 = vpop.eup %2078 }
 0x9c3   : > { %v1408_v15 = vmul.f32 %v2079_v13, %v2077_v48 }
 0x9c5   : > { %1926 = vmatmul.mubr.msk.f32.vlgmr.msra.gmra.mrb[8].mxu0 %vm885_vm4, %v1408_v15 }
 0x9c6   : > { %1936 = vmatprep.mubr.msk.f32.mxu0 %vm2094_vm0, %v2095_v10  ;;  %1991 = vmatpush3.bf16.msra.mxu0 %v1990_v19 }
 0x9c7   : > { %1992 = vmatprep.subr.bf16.mxu0 %v2092_v5  ;;  %v1783_v5 = vld [vmem:[%s2383_s8] ss:$0 sm:$0xff] }
 0x9ca   : > { %1994 = vmatpush3.bf16.msra.mxu0 %v1993_v21 }
 0xa98   : > { %v1484_v10 = vpop.f32.mrb[8].mxu0 }
 0xa99   : > { %1497 = vrot.lane.b32.xlu1 %v1484_v10, %s2102_s23  ;;  %v1927_v22 = vpop.f32.mrb[9].mxu0 }
 0xb0b   : > { %v1498_v27 = vpop.permute.xlu1 %1497 }
 0xb0c   : > { %v1503_v28 = vsel %vm1502_vm5, %v1501_v26, %v1498_v27 }
 0xb0d   : > { %1937 = vmatmul.mubr.msk.f32.vlgmr.msra.gmra.mrb[10].mxu0 %vm528_vm1, %v1503_v28 }
 0xbe0   : > { %v1584_v29 = vpop.f32.mrb[10].mxu0 }
 0xbe1   : > { %v1585_v30 = vadd.f32 %v1783_v5, %v1584_v29  ;;  %v1938_v31 = vpop.f32.mrb[11].mxu0 }
 0xbe3   : > { %v1588_v32 = vadd.f32 %v1585_v30, %v2223_v14 }
 0xbe5   : > { %v1591_v33 = vsel %vm528_vm1, %v1588_v32, 0.0 }
 0xbe6   : > { %1592 = vadd.xlane.f32.xlu0 %v1591_v33 }
 0xc73   : > { %v1593_v11 = vpop.xlane.xlu0 %1592 }
 0xc74   : > { %v1595_v34 = vmul.f32 0.03125, %v1593_v11 }
 0xc76   : > { %v1596_v36 = vsub.f32 %v1588_v32, %v1595_v34 }
 0xc78   : > { %v1597_v38 = vmul.f32 %v1596_v36, %v1596_v36 }
 0xc7a   : > { %v1598_v40 = vsel %vm528_vm1, %v1597_v38, 0.0 }
 0xc7b   : > { %1599 = vadd.xlane.f32.xlu1 %v1598_v40 }
 0xd08   : > { %v1600_v41 = vpop.xlane.xlu1 %1599 }
 0xd09   : > { %v1601_v42 = vmul.f32 0.03125, %v1600_v41 }
 0xd0b   : > { %v1602_v43 = vadd.f32 1e-05, %v1601_v42 }
 0xd0d   : > { %2080 = vrsqrt.f32 %v1602_v43 }
 0xd17   : > { %v2081_v44 = vpop.eup %2080 }
 0xd18   : > { %v1604_v14 = vmul.f32 %v2081_v44, %v1596_v36 }
 0xd1a   : > { %v1611_v47 = vmul.f32 %v1785_v45, %v1604_v14 }
 0xd1c   : > { %v1618_v49 = vadd.f32 %v1786_v46, %v1611_v47 }
 0xd1e   : > { %v1619_v50 = vmul.f32 2.0, %v1618_v49 }
 0xd20   : > { %v1622_v51 = vsel %vm528_vm1, %v1619_v50, 0.0 }
 0xd21   : > { %1623 = vadd.xlane.f32.xlu0 %v1622_v51 }
 0xdae   : > { %v1624_v52 = vpop.xlane.xlu0 %1623 }
 0xdaf   : > { %v1625_v53 = vmul.f32 0.03125, %v1624_v52 }
 0xdb1   : > { %v1626_v37 = vsub.f32 %v1619_v50, %v1625_v53 }
 0xdb3   : > { %v1627_v54 = vmul.f32 %v1626_v37, %v1626_v37 }
 0xdb5   : > { %v1628_v39 = vsel %vm528_vm1, %v1627_v54, 0.0 }
 0xdb6   : > { %1629 = vadd.xlane.f32.xlu0 %v1628_v39 }
 0xe43   : > { %v1630_v55 = vpop.xlane.xlu0 %1629 }
 0xe44   : > { %v1631_v56 = vmul.f32 0.03125, %v1630_v55 }
 0xe46   : > { %v1632_v57 = vadd.f32 1e-05, %v1631_v56 }
 0xe48   : > { %2082 = vrsqrt.f32 %v1632_v57 }
 0xe52   : > { %v2083_v58 = vpop.eup %2082 }
 0xe53   : > { %v1634_v60 = vmul.f32 %v2083_v58, %v1626_v37 }
 0xe55   : > { %v1641_v62 = vmul.f32 %v1787_v59, %v1634_v60 }
 0xe57   : > { %v1648_v63 = vadd.f32 %v1788_v61, %v1641_v62 }
 0xe59   : > { %1649 = vst.msk [vmem:[%s506_s20] sm:$0xff] %vm528_vm1, %v1648_v63 }
 0xe5a PF: > { %s23_s25 = sadd.s32 1, %s2090_s25  }
 0xe5b   : > { %p20_p4 = scmp.ge.s32.totalorder %s23_s25, 4  }
 0xe5d   :  { %22 = sbr.rel (!%p20_p4) target bundleno = 1 (0x1), region = 114 }

// kernel: transformer_forward.17
= control target key start
LH: loop header
LB: loop body
LE: loop exit
PB: predicated region body
PF: predicated region fallthrough
CT: control target
= control target key end

     0   :  { %vm21_vm0 = vcmask 261120   ;;  %s217_s0 = inlined_call_operand.vmem [shape: f32[32,32], index: 0, kind: input, shape index: {}]   ;;  %s218_s1 = inlined_call_operand.vmem [shape: f32[1,32], index: 1, kind: input, shape index: {}]   ;;  %s219_s2 = inlined_call_operand.vmem [shape: f32[1,32], index: 2, kind: input, shape index: {}]   ;;  %s220_s3 = inlined_call_operand.hbm [shape: f32[32,32], index: 3, kind: output, shape index: {}]  }
   0x1   :  { %v15_v0 = vld [vmem:[%s217_s0] sm:$0xff]  ;;  %v17_v1 = vld [vmem:[%s217_s0 + $0x10] sm:$0xff]  ;;  %v16_v2 = vld [vmem:[%s217_s0 + $0x8] sm:$0xff] }
   0x2   :  { %v22_v3 = vsel %vm21_vm0, %v15_v0, 0.0  ;;  %v28_v4 = vsel %vm21_vm0, %v17_v1, 0.0  ;;  %v18_v5 = vld [vmem:[%s217_s0 + $0x18] sm:$0xff] }
   0x3   :  { %8 = vsyncpa [#allocation3], 0  ;;  %23 = vadd.xlane.f32.xlu0 %v22_v3  ;;  %29 = vadd.xlane.f32.xlu1 %v28_v4  ;;  %v25_v6 = vsel %vm21_vm0, %v16_v2, 0.0  ;;  %v31_v7 = vsel %vm21_vm0, %v18_v5, 0.0  ;;  %v115_v41 = vld [vmem:[%s218_s1] ss:$0 sm:$0xff] }
   0x4   :  { %v116_v43 = vld [vmem:[%s219_s2] ss:$0 sm:$0xff]  ;;  %s152_s1 = smov [#allocation2]  }
   0x5   :  { %s104_s23 = sshll.u32 %s152_s1, 4  ;;  %s105_s23 = int_to_ptr.vmem [resolvable:$true] %s104_s23 }
   0x6   :  { %s128_s2 = scalar_lea.vmem %s105_s23, 512  ;;  %p133_p1 = scmp.lt.s32.totalorder %s105_s23, %s105_s23 }
   0x7   :  { %26 = vadd.xlane.f32.xlu0 %v25_v6  ;;  %32 = vadd.xlane.f32.xlu1 %v31_v7  ;;  %p129_p0 = scmp.ne.s32.totalorder %s105_s23, %s128_s2  ;;  %p134_p2 = scmp.lt.s32.totalorder %s128_s2, %s128_s2 }
   0x9   :  { %p135_p3 = por %p134_p2, %p133_p1 }
   0xb   :  { %p136_p4 = pnand %p135_p3, %p129_p0 }
  0x90   :  { %v24_v8 = vpop.xlane.xlu0 %23  ;;  %v30_v9 = vpop.xlane.xlu1 %29 }
  0x91   :  { %v35_v10 = vmul.f32 0.03125, %v24_v8  ;;  %v37_v11 = vmul.f32 0.03125, %v30_v9 }
  0x93   :  { %v39_v12 = vsub.f32 %v15_v0, %v35_v10  ;;  %v41_v13 = vsub.f32 %v17_v1, %v37_v11 }
  0x94   :  { %v27_v14 = vpop.xlane.xlu0 %26  ;;  %v33_v15 = vpop.xlane.xlu1 %32 }
  0x95   :  { %v36_v16 = vmul.f32 0.03125, %v27_v14  ;;  %v38_v17 = vmul.f32 0.03125, %v33_v15  ;;  %v43_v18 = vmul.f32 %v39_v12, %v39_v12  ;;  %v45_v19 = vmul.f32 %v41_v13, %v41_v13 }
  0x97   :  { %v40_v20 = vsub.f32 %v16_v2, %v36_v16  ;;  %v42_v21 = vsub.f32 %v18_v5, %v38_v17  ;;  %v47_v22 = vsel %vm21_vm0, %v43_v18, 0.0  ;;  %v53_v23 = vsel %vm21_vm0, %v45_v19, 0.0 }
  0x98   :  { %48 = vadd.xlane.f32.xlu0 %v47_v22 }
  0x99   :  { %v44_v24 = vmul.f32 %v40_v20, %v40_v20  ;;  %v46_v25 = vmul.f32 %v42_v21, %v42_v21 }
  0x9b   :  { %v50_v26 = vsel %vm21_vm0, %v44_v24, 0.0  ;;  %v56_v27 = vsel %vm21_vm0, %v46_v25, 0.0 }
  0x9c   :  { %54 = vadd.xlane.f32.xlu0 %v53_v23  ;;  %51 = vadd.xlane.f32.xlu1 %v50_v26 }
  0xa0   :  { %57 = vadd.xlane.f32.xlu1 %v56_v27 }
 0x125   :  { %v49_v28 = vpop.xlane.xlu0 %48 }
 0x126   :  { %v59_v29 = vmul.f32 0.03125, %v49_v28 }
 0x128   :  { %v63_v30 = vadd.f32 1e-05, %v59_v29 }
 0x129   :  { %v52_v31 = vpop.xlane.xlu1 %51  ;;  %v55_v32 = vpop.xlane.xlu0 %54 }
 0x12a   :  { %120 = vrsqrt.f32 %v63_v30  ;;  %v60_v33 = vmul.f32 0.03125, %v52_v31  ;;  %v61_v34 = vmul.f32 0.03125, %v55_v32 }
 0x12c   :  { %v64_v35 = vadd.f32 1e-05, %v60_v33  ;;  %v65_v36 = vadd.f32 1e-05, %v61_v34 }
 0x12d   :  { %v58_v37 = vpop.xlane.xlu1 %57 }
 0x12e   :  { %122 = vrsqrt.f32 %v64_v35  ;;  %v62_v38 = vmul.f32 0.03125, %v58_v37 }
 0x12f   :  { %124 = vrsqrt.f32 %v65_v36 }
 0x130   :  { %v66_v39 = vadd.f32 1e-05, %v62_v38 }
 0x132   :  { %126 = vrsqrt.f32 %v66_v39 }
 0x134   :  { %v121_v40 = vpop.eup %120 }
 0x135   :  { %v71_v42 = vmul.f32 %v121_v40, %v39_v12 }
 0x137   :  { %v81_v44 = vmul.f32 %v115_v41, %v71_v42 }
 0x138   :  { %v123_v45 = vpop.eup %122 }
 0x139   :  { %v125_v46 = vpop.eup %124  ;;  %v91_v47 = vadd.f32 %v116_v43, %v81_v44  ;;  %v72_v48 = vmul.f32 %v123_v45, %v40_v20 }
 0x13a   :  { %v73_v49 = vmul.f32 %v125_v46, %v41_v13 }
 0x13b   :  { %95 = vst.msk [vmem:[#allocation2] sm:$0xff] %vm21_vm0, %v91_v47  ;;  %v82_v50 = vmul.f32 %v115_v41, %v72_v48 }
 0x13c   :  { %v127_v51 = vpop.eup %126  ;;  %v83_v52 = vmul.f32 %v115_v41, %v73_v49 }
 0x13d   :  { %v92_v53 = vadd.f32 %v116_v43, %v82_v50  ;;  %v74_v54 = vmul.f32 %v127_v51, %v42_v21 }
 0x13e   :  { %v93_v55 = vadd.f32 %v116_v43, %v83_v52 }
 0x13f   :  { %96 = vst.msk [vmem:[#allocation2 + $0x8] sm:$0xff] %vm21_vm0, %v92_v53  ;;  %v84_v56 = vmul.f32 %v115_v41, %v74_v54 }
 0x140   :  { %97 = vst.msk [vmem:[#allocation2 + $0x10] sm:$0xff] %vm21_vm0, %v93_v55 }
 0x141   :  { %v94_v57 = vadd.f32 %v116_v43, %v84_v56 }
 0x143   :  { %98 = vst.msk [vmem:[#allocation2 + $0x18] sm:$0xff] %vm21_vm0, %v94_v57 }
 0x144   :  { %139 = shalt.err (!%p136_p4)
}
 0x145   :  { %s140_s26 = scalar_lea.hbm %s220_s3, 512 }
 0x146   :  { %p141_p5 = scmp.ne.s32.totalorder %s220_s3, %s140_s26  ;;  %p144_p6 = scmp.lt.u32.totalorder %s140_s26, %s220_s3 }
 0x148   :  { %p146_p7 = pnand %p144_p6, %p141_p5 }
 0x14a   :  { %149 = shalt.err (!%p146_p7)
}
 0x14b   :  { %s153_s4 = smov 128   ;;  %s154_s5 = smov 8  }
 0x14c   :  { %110 = dma.vmem_to_hbm [thread:$0]  %s105_s23, 512, %s220_s3, [#allocation3], %s153_s4, %s153_s4, %s154_s5  }
 0x14d   :  { %150 = dma.done.wait [#allocation3], 512  }
 0x14e   :  { %151 = vsyncadd [#allocation3], 4294966784 }
 0x14f   :  { %114 = vsyncpa [#allocation3], 1 }

</bundles_post_ra>
